<compile_context>
chip_gen: v6e
topology: v6e:2x2x1
jax: 0.10.0
libtpu: 0.0.40
codegen_flags: <defaults>
</compile_context>

<pallas_src>
import functools

import jax
import jax.numpy as jnp
from jax import lax
from jax.experimental import pallas as pl
from jax.experimental.pallas import tpu as pltpu

# Budgeted against v7x's 64 MiB physical VMEM (~48 MiB usable); v5e/v6e have
# 128 MiB so this is safe everywhere while still far above the default limit.
_VMEM_LIMIT = 48 * 1024 * 1024


def _round_up(x, m):
    return (x + m - 1) // m * m


def _choose_tm(m):
    """M-tile: big tiles for big M, and >=2 M tiles whenever possible (v7x)."""
    if m >= 1024:
        return 512
    if m >= 512:
        return 256
    if m >= 16:
        return _round_up((m + 1) // 2, 8)   # two tiles -> both TensorCores busy
    return _round_up(max(m, 8), 8)


def _choose_tk(k_pad):
    if k_pad <= 2048:
        return k_pad
    for cand in (2048, 1024, 512, 256):
        if k_pad % cand == 0:
            return cand
    return 128


def _choose_affine_rows(m_pad, cout_pad):
    """Largest row tile (<=4 MiB f32, divides m_pad) for the mem-bound affine."""
    max_rows = max(8, (4 * 1024 * 1024) // (cout_pad * 4))
    for cand in (4096, 2048, 1024, 512, 256, 128, 64, 32, 16, 8):
        if cand <= m_pad and cand <= max_rows and m_pad % cand == 0:
            return cand
    return m_pad


# --------------------------------------------------------------------------
# Pallas kernels
# --------------------------------------------------------------------------
def _conv_matmul_kernel(*refs, slope, m_valid, tm, tk, n_k, emit_stats):
    """Tiled matmul: bf16 x bf16 -> f32 acc, bias folded into acc init.

    Weight ref holds the full-K panel (resident across M and K tiles); the
    current K chunk is sliced out of VMEM.  Optional epilogue: LeakyReLU and/or
    masked per-channel partial sum / sum-of-squares for fused BatchNorm stats.
    """
    if emit_stats:
        x_ref, w_ref, b_ref, o_ref, sum_ref, sq_ref, acc_ref = refs
    else:
        x_ref, w_ref, b_ref, o_ref, acc_ref = refs

    k = pl.program_id(2)
    # NOTE: program_id must be read at kernel top level (never inside a
    # pl.when body) — the when-body value is closed over below.
    row_base = pl.program_id(1) * tm

    @pl.when(k == 0)
    def _init():
        # Fold the conv bias into the accumulator initialization.
        acc_ref[...] = jnp.broadcast_to(b_ref[...], acc_ref.shape)

    if n_k == 1:
        w_blk = w_ref[...]
    else:
        w_blk = w_ref[pl.ds(k * tk, tk), :]
    acc_ref[...] += jnp.dot(x_ref[...], w_blk, preferred_element_type=jnp.float32)

    @pl.when(k == n_k - 1)
    def _finish():
        y = acc_ref[...]
        if emit_stats:
            rows = row_base + lax.broadcasted_iota(jnp.int32, (tm, 1), 0)
            valid = (rows < m_valid).astype(jnp.float32)
            ym = y * valid
            s = jnp.sum(ym, axis=0, keepdims=True)        # (1, tn)
            sq = jnp.sum(ym * ym, axis=0, keepdims=True)  # (1, tn)
            row0 = (
                lax.broadcasted_iota(jnp.int32, sum_ref.shape, 0) == 0
            ).astype(jnp.float32)
            sum_ref[...] = s * row0   # only sublane 0 carries the partial sum
            sq_ref[...] = sq * row0
        if slope is not None:
            y = jnp.where(y >= 0.0, y, y * slope)
        o_ref[...] = y.astype(o_ref.dtype)


def _affine_act_kernel(x_ref, scale_ref, shift_ref, o_ref, *, slope):
    y = x_ref[...].astype(jnp.float32) * scale_ref[...] + shift_ref[...]
    if slope is not None:
        y = jnp.where(y >= 0.0, y, y * slope)
    o_ref[...] = y.astype(o_ref.dtype)


# --------------------------------------------------------------------------
# Pallas wrappers
# --------------------------------------------------------------------------
def conv_bias_act(patches, w, bias, *, slope, m_valid, tm, emit_stats, out_dtype):
    """patches: (M_pad, K_pad) bf16, w: (K_pad, Cout_pad) bf16, bias: (1, Cout_pad) f32."""
    m_pad, _ = patches.shape
    k_pad, cout_pad = w.shape

    tn = cout_pad if cout_pad <= 512 else 256   # module caps channels at 512
    tk = _choose_tk(k_pad)
    n_i = m_pad // tm
    n_k = k_pad // tk
    # Grid order (j, i, k): weight block index depends only on j -> the full-K
    # weight panel is DMA'd once per Cout tile and reused across all M/K steps.
    grid = (cout_pad // tn, n_i, n_k)

    y_struct = jax.ShapeDtypeStruct((m_pad, cout_pad), out_dtype)
    y_spec = pl.BlockSpec((tm, tn), lambda j, i, k: (i, j))
    if emit_stats:
        stat_struct = jax.ShapeDtypeStruct((8 * n_i, cout_pad), jnp.float32)
        stat_spec = pl.BlockSpec((8, tn), lambda j, i, k: (i, j))
        out_shape = (y_struct, stat_struct, stat_struct)
        out_specs = (y_spec, stat_spec, stat_spec)
    else:
        out_shape = (y_struct,)
        out_specs = (y_spec,)

    outs = pl.pallas_call(
        functools.partial(
            _conv_matmul_kernel,
            slope=slope,
            m_valid=m_valid,
            tm=tm,
            tk=tk,
            n_k=n_k,
            emit_stats=emit_stats,
        ),
        out_shape=out_shape,
        grid_spec=pltpu.PrefetchScalarGridSpec(
            num_scalar_prefetch=0,
            grid=grid,
            in_specs=[
                pl.BlockSpec((tm, tk), lambda j, i, k: (i, k)),
                pl.BlockSpec((k_pad, tn), lambda j, i, k: (0, j)),   # resident W
                pl.BlockSpec((1, tn), lambda j, i, k: (0, j)),
            ],
            out_specs=out_specs,
            scratch_shapes=[pltpu.VMEM((tm, tn), jnp.float32)],
        ),
        compiler_params=pltpu.CompilerParams(
            dimension_semantics=("parallel", "parallel", "arbitrary"),
            vmem_limit_bytes=_VMEM_LIMIT,
        ),
    )(patches, w, bias)

    y = outs[0]
    if emit_stats:
        return y, outs[1], outs[2]
    return y, None, None


def affine_act(y, scale, shift, *, slope):
    """Per-channel scale/shift (+ optional LeakyReLU), large row tiles."""
    m_pad, cout_pad = y.shape
    tr = _choose_affine_rows(m_pad, cout_pad)
    grid = (m_pad // tr,)
    return pl.pallas_call(
        functools.partial(_affine_act_kernel, slope=slope),
        out_shape=jax.ShapeDtypeStruct((m_pad, cout_pad), jnp.float32),
        grid_spec=pltpu.PrefetchScalarGridSpec(
            num_scalar_prefetch=0,
            grid=grid,
            in_specs=[
                pl.BlockSpec((tr, cout_pad), lambda i: (i, 0)),
                pl.BlockSpec((1, cout_pad), lambda i: (0, 0)),
                pl.BlockSpec((1, cout_pad), lambda i: (0, 0)),
            ],
            out_specs=pl.BlockSpec((tr, cout_pad), lambda i: (i, 0)),
        ),
        compiler_params=pltpu.CompilerParams(
            dimension_semantics=("parallel",),
            vmem_limit_bytes=_VMEM_LIMIT,
        ),
    )(y, scale, shift)


# --------------------------------------------------------------------------
# Glue: im2col, avg-pool downsample, parameter construction
# --------------------------------------------------------------------------
def im2col(x_nhwc, k, stride, pad, k_pad):
    """Return ((N*Ho*Wo, k_pad) patches, (N, Ho, Wo)); tap order (dy, dx, cin).

    The K zero-padding is built directly into the concatenate (no extra pad
    copy of the slab).
    """
    n, h, w, c = x_nhwc.shape
    xp = jnp.pad(x_nhwc, ((0, 0), (pad, pad), (pad, pad), (0, 0)))
    ho = (h + 2 * pad - k) // stride + 1
    wo = (w + 2 * pad - k) // stride + 1
    cols = []
    for dy in range(k):
        for dx in range(k):
            patch = lax.slice(
                xp,
                (0, dy, dx, 0),
                (n, dy + (ho - 1) * stride + 1, dx + (wo - 1) * stride + 1, c),
                (1, stride, stride, 1),
            )
            cols.append(patch)
    k_log = k * k * c
    if k_pad > k_log:
        cols.append(jnp.zeros((n, ho, wo, k_pad - k_log), x_nhwc.dtype))
    patches = jnp.concatenate(cols, axis=-1)  # (N, Ho, Wo, k_pad)
    return patches.reshape(n * ho * wo, k_pad), (n, ho, wo)


def avg_pool_3x3_s2_nhwc(x):
    """AvgPool2d(3, stride=2, padding=1, count_include_pad=False), NHWC."""
    n, h, w, c = x.shape
    window = (1, 3, 3, 1)
    strides = (1, 2, 2, 1)
    pad = ((0, 0), (1, 1), (1, 1), (0, 0))
    s = lax.reduce_window(x, 0.0, lax.add, window, strides, pad)
    ones = jnp.ones((1, h, w, 1), x.dtype)
    cnt = lax.reduce_window(ones, 0.0, lax.add, window, strides, pad)
    return s / cnt


def build_layer_cfgs(input_nc, ndf, n_layers):
    """(cin, cout, stride, has_bn, has_act) for each of the n_layers+2 layers."""
    cfgs = [(input_nc, ndf, 2, False, True)]
    nf = ndf
    for _ in range(1, n_layers):
        nf_prev, nf = nf, min(nf * 2, 512)
        cfgs.append((nf_prev, nf, 2, True, True))
    nf_prev, nf = nf, min(nf * 2, 512)
    cfgs.append((nf_prev, nf, 1, True, True))
    cfgs.append((nf, 1, 1, False, False))
    return cfgs


def init_params(key, cfgs, num_D, kw=4):
    """Deterministic synthetic params.

    Conv weights stored as (K_pad, Cout_pad) bf16 in im2col (dy, dx, cin) order,
    zero-padded to 128-multiples; bias/gamma/beta kept f32, zero-padded.
    NOTE: real PyTorch Conv2d weights are (cout, cin, kh, kw); loading a
    checkpoint requires a transpose to (kh, kw, cin, cout) before this packing.
    """
    all_params = []
    for i in range(num_D):
        layers = []
        for j, (cin, cout, _stride, has_bn, _act) in enumerate(cfgs):
            kkey = jax.random.fold_in(jax.random.fold_in(key, i), j)
            w = 0.02 * jax.random.normal(kkey, (kw, kw, cin, cout), jnp.float32)
            k_log = kw * kw * cin
            k_pad = _round_up(k_log, 128)
            cout_pad = _round_up(cout, 128)
            w_mat = jnp.pad(
                w.reshape(k_log, cout),
                ((0, k_pad - k_log), (0, cout_pad - cout)),
            )
            p = {
                "w": w_mat.astype(jnp.bfloat16),
                "b": jnp.zeros((1, cout_pad), jnp.float32),
            }
            if has_bn:
                p["gamma"] = jnp.pad(
                    jnp.ones((cout,), jnp.float32), (0, cout_pad - cout)
                )
                p["beta"] = jnp.zeros((cout_pad,), jnp.float32)
            layers.append(p)
        all_params.append(layers)
    return all_params


# --------------------------------------------------------------------------
# Forward passes (NHWC throughout; NCHW only at the boundary)
# --------------------------------------------------------------------------
def conv_layer(x_nhwc, p, cfg, *, slope=0.2, kw=4, padw=2, eps=1e-5):
    _cin, cout, stride, has_bn, has_act = cfg
    k_pad, _cout_pad = p["w"].shape

    patches, (n, ho, wo) = im2col(
        x_nhwc.astype(jnp.bfloat16), kw, stride, padw, k_pad
    )
    m = n * ho * wo
    tm = _choose_tm(m)
    m_pad = _round_up(m, tm)
    if m_pad != m:
        # Rows-only pad of the slab (fuses with the im2col concatenate under jit).
        patches = jnp.pad(patches, ((0, m_pad - m), (0, 0)))

    fused_slope = slope if (has_act and not has_bn) else None
    # Conv outputs feeding BN are internal -> write bf16 to halve HBM traffic;
    # returned feature maps (no-BN layers, and the post-affine output) stay f32.
    out_dtype = jnp.bfloat16 if has_bn else jnp.float32
    y, psum, psq = conv_bias_act(
        patches, p["w"], p["b"],
        slope=fused_slope, m_valid=m, tm=tm, emit_stats=has_bn,
        out_dtype=out_dtype,
    )

    if has_bn:
        # Training-mode BatchNorm2d stats (biased variance) from fused f32
        # partials.  E[x^2]-E[x]^2 can cancel for huge activations; clamped >=0.
        total = jnp.sum(psum, axis=0)
        total_sq = jnp.sum(psq, axis=0)
        mean = total / m
        var = jnp.maximum(total_sq / m - mean * mean, 0.0)
        scale = p["gamma"] * lax.rsqrt(var + eps)
        shift = p["beta"] - mean * scale
        y = affine_act(
            y, scale.reshape(1, -1), shift.reshape(1, -1),
            slope=slope if has_act else None,
        )

    return y[:m, :cout].reshape(n, ho, wo, cout)


def single_d_forward(params, cfgs, x_nhwc, slope=0.2):
    """NLayerDiscriminator forward (getIntermFeat=True): per-layer NHWC outputs."""
    feats = []
    x = x_nhwc
    for cfg, p in zip(cfgs, params):
        x = conv_layer(x, p, cfg, slope=slope)
        feats.append(x)
    return feats


def multiscale_forward(all_params, x_nchw, cfgs, num_D):
    """MultiscaleDiscriminator forward (getIntermFeat=True, use_sigmoid=False)."""
    x = jnp.transpose(x_nchw, (0, 2, 3, 1)).astype(jnp.float32)  # -> NHWC once
    result = []
    for i in range(num_D):
        params = all_params[num_D - 1 - i]  # scale(num_D-1-i) at this resolution
        feats = single_d_forward(params, cfgs, x)
        result.append([jnp.transpose(f, (0, 3, 1, 2)) for f in feats])
        if i != num_D - 1:
            x = avg_pool_3x3_s2_nhwc(x)
    return result


# --------------------------------------------------------------------------
if __name__ == "__main__":
    # Small synthetic config consistent with the module: batch=2, input_nc=4,
    # spatial=16, ndf=8 (smaller than the default 64 to keep shapes tiny),
    # n_layers=3, num_D=3, use_sigmoid=False, getIntermFeat=True.
    input_nc, ndf, n_layers, num_D = 4, 8, 3, 3

    key = jax.random.PRNGKey(0)
    x_key, p_key = jax.random.split(key)
    x = jax.random.normal(x_key, (2, input_nc, 16, 16), jnp.float32)  # NCHW

    cfgs = build_layer_cfgs(input_nc, ndf, n_layers)
    params = init_params(p_key, cfgs, num_D)

    fwd = jax.jit(functools.partial(multiscale_forward, cfgs=cfgs, num_D=num_D))
    out = fwd(params, x)
    out = jax.block_until_ready(out)

    # Sanity: num_D discriminators, each with n_layers+2 intermediate outputs,
    # last output has a single channel; all finite.
    assert len(out) == num_D
    for feats in out:
        assert len(feats) == n_layers + 2
        assert feats[-1].shape[1] == 1
        for f in feats:
            assert bool(jnp.all(jnp.isfinite(f)))

    print("KERNEL_OK")
</pallas_src>

<mosaic_0001>
module attributes {stable_mosaic.version = 11 : i64} {
  func.func @_conv_matmul_kernel(%arg0: i32, %arg1: i32, %arg2: i32, %arg3: memref<88x128xbf16, #tpu.memory_space<vmem>>, %arg4: memref<128x128xbf16, #tpu.memory_space<vmem>>, %arg5: memref<1x128xf32, #tpu.memory_space<vmem>>, %arg6: memref<88x128xf32, #tpu.memory_space<vmem>>, %arg7: memref<88x128xf32, #tpu.memory_space<vmem>>) attributes {dimension_semantics = [#tpu.dimension_semantics<parallel>, #tpu.dimension_semantics<parallel>, #tpu.dimension_semantics<arbitrary>], iteration_bounds = array<i64: 1, 2, 1>, scalar_prefetch = 0 : i64, scratch_operands = 1 : i64, tpu.core_type = #tpu.core_type<tc>, window_params = [{transform_indices = @transform_0, window_bounds = array<i64: 88, 128>}, {transform_indices = @transform_1, window_bounds = array<i64: 128, 128>}, {transform_indices = @transform_2, window_bounds = array<i64: 1, 128>}, {transform_indices = @transform_3, window_bounds = array<i64: 88, 128>}]} {
    %c0_i32 = arith.constant 0 : i32
    %0 = arith.cmpi eq, %arg2, %c0_i32 : i32
    %1 = arith.extui %0 : i1 to i32
    %c0_i32_0 = arith.constant 0 : i32
    %2 = arith.cmpi ne, %1, %c0_i32_0 : i32
    scf.if %2 {
      %c0_10 = arith.constant 0 : index
      %c0_11 = arith.constant 0 : index
      %12 = vector.load %arg5[%c0_10, %c0_11] : memref<1x128xf32, #tpu.memory_space<vmem>>, vector<1x128xf32>
      %13 = vector.shape_cast %12 : vector<1x128xf32> to vector<1x128xf32>
      %14 = vector.broadcast %13 : vector<1x128xf32> to vector<88x128xf32>
      %c0_12 = arith.constant 0 : index
      %c0_13 = arith.constant 0 : index
      %15 = vector.load %arg7[%c0_12, %c0_13] : memref<88x128xf32, #tpu.memory_space<vmem>>, vector<88x128xf32>
      tpu.vector_store %arg7[%c0_12, %c0_13], %14 {strides = array<i32>} : memref<88x128xf32, #tpu.memory_space<vmem>>, vector<88x128xf32>,
    } else {
    }
    %c0 = arith.constant 0 : index
    %c0_1 = arith.constant 0 : index
    %3 = vector.load %arg4[%c0, %c0_1] : memref<128x128xbf16, #tpu.memory_space<vmem>>, vector<128x128xbf16>
    %c0_2 = arith.constant 0 : index
    %c0_3 = arith.constant 0 : index
    %4 = vector.load %arg7[%c0_2, %c0_3] : memref<88x128xf32, #tpu.memory_space<vmem>>, vector<88x128xf32>
    %c0_4 = arith.constant 0 : index
    %c0_5 = arith.constant 0 : index
    %5 = vector.load %arg3[%c0_4, %c0_5] : memref<88x128xbf16, #tpu.memory_space<vmem>>, vector<88x128xbf16>
    %cst = arith.constant dense<0.000000e+00> : vector<88x128xf32>
    %6 = tpu.matmul %5, %3, %cst {dimension_numbers = #tpu.dot_dimension_numbers<[1], [0], [0], [1], [0, 0, 1, 1], [], []>} : vector<88x128xbf16>, vector<128x128xbf16>, vector<88x128xf32> -> vector<88x128xf32>
    %7 = arith.addf %4, %6 : vector<88x128xf32>
    %c0_6 = arith.constant 0 : index
    %c0_7 = arith.constant 0 : index
    %8 = vector.load %arg7[%c0_6, %c0_7] : memref<88x128xf32, #tpu.memory_space<vmem>>, vector<88x128xf32>
    tpu.vector_store %arg7[%c0_6, %c0_7], %7 {strides = array<i32>} : memref<88x128xf32, #tpu.memory_space<vmem>>, vector<88x128xf32>,
    %c0_i32_8 = arith.constant 0 : i32
    %9 = arith.cmpi eq, %arg2, %c0_i32_8 : i32
    %10 = arith.extui %9 : i1 to i32
    %c0_i32_9 = arith.constant 0 : i32
    %11 = arith.cmpi ne, %10, %c0_i32_9 : i32
    scf.if %11 {
      %c0_10 = arith.constant 0 : index
      %c0_11 = arith.constant 0 : index
      %12 = vector.load %arg7[%c0_10, %c0_11] : memref<88x128xf32, #tpu.memory_space<vmem>>, vector<88x128xf32>
      %cst_12 = arith.constant 0.000000e+00 : f32
      %13 = vector.broadcast %cst_12 : f32 to vector<88x128xf32>
      %14 = arith.cmpf oge, %12, %13 : vector<88x128xf32>
      %cst_13 = arith.constant 2.000000e-01 : f32
      %15 = vector.broadcast %cst_13 : f32 to vector<88x128xf32>
      %16 = arith.mulf %12, %15 : vector<88x128xf32>
      %17 = arith.select %14, %12, %16 : vector<88x128xi1>, vector<88x128xf32>
      %c0_14 = arith.constant 0 : index
      %c0_15 = arith.constant 0 : index
      %18 = vector.load %arg6[%c0_14, %c0_15] : memref<88x128xf32, #tpu.memory_space<vmem>>, vector<88x128xf32>
      tpu.vector_store %arg6[%c0_14, %c0_15], %17 {strides = array<i32>} : memref<88x128xf32, #tpu.memory_space<vmem>>, vector<88x128xf32>,
    } else {
    }
    return
  }
  func.func @transform_0(%arg0: i32, %arg1: i32, %arg2: i32) -> (i32, i32) {
    %c0_i32 = arith.constant 0 : i32
    return %arg1, %arg2 : i32, i32
  }
  func.func @transform_1(%arg0: i32, %arg1: i32, %arg2: i32) -> (i32, i32) {
    %c0_i32 = arith.constant 0 : i32
    %c0_i32_0 = arith.constant 0 : i32
    return %c0_i32, %arg0 : i32, i32
  }
  func.func @transform_2(%arg0: i32, %arg1: i32, %arg2: i32) -> (i32, i32) {
    %c0_i32 = arith.constant 0 : i32
    %c0_i32_0 = arith.constant 0 : i32
    return %c0_i32, %arg0 : i32, i32
  }
  func.func @transform_3(%arg0: i32, %arg1: i32, %arg2: i32) -> (i32, i32) {
    %c0_i32 = arith.constant 0 : i32
    return %arg1, %arg0 : i32, i32
  }
}

module attributes {stable_mosaic.version = 11 : i64} {
  func.func @_affine_act_kernel(%arg0: i32, %arg1: memref<64x128xbf16, #tpu.memory_space<vmem>>, %arg2: memref<1x128xf32, #tpu.memory_space<vmem>>, %arg3: memref<1x128xf32, #tpu.memory_space<vmem>>, %arg4: memref<64x128xf32, #tpu.memory_space<vmem>>) attributes {dimension_semantics = [#tpu.dimension_semantics<parallel>], iteration_bounds = array<i64: 1>, scalar_prefetch = 0 : i64, scratch_operands = 0 : i64, tpu.core_type = #tpu.core_type<tc>, window_params = [{transform_indices = @transform_0, window_bounds = array<i64: 64, 128>}, {pipeline_mode = #tpu.pipeline_mode<synchronous>, transform_indices = @transform_1, window_bounds = array<i64: 1, 128>}, {pipeline_mode = #tpu.pipeline_mode<synchronous>, transform_indices = @transform_2, window_bounds = array<i64: 1, 128>}, {transform_indices = @transform_3, window_bounds = array<i64: 64, 128>}]} {
    %c0 = arith.constant 0 : index
    %c0_0 = arith.constant 0 : index
    %0 = vector.load %arg1[%c0, %c0_0] : memref<64x128xbf16, #tpu.memory_space<vmem>>, vector<64x128xbf16>
    %1 = arith.extf %0 : vector<64x128xbf16> to vector<64x128xf32>
    %c0_1 = arith.constant 0 : index
    %c0_2 = arith.constant 0 : index
    %2 = vector.load %arg2[%c0_1, %c0_2] : memref<1x128xf32, #tpu.memory_space<vmem>>, vector<1x128xf32>
    %3 = vector.broadcast %2 : vector<1x128xf32> to vector<64x128xf32>
    %4 = arith.mulf %1, %3 : vector<64x128xf32>
    %c0_3 = arith.constant 0 : index
    %c0_4 = arith.constant 0 : index
    %5 = vector.load %arg3[%c0_3, %c0_4] : memref<1x128xf32, #tpu.memory_space<vmem>>, vector<1x128xf32>
    %6 = vector.broadcast %5 : vector<1x128xf32> to vector<64x128xf32>
    %7 = arith.addf %4, %6 : vector<64x128xf32>
    %cst = arith.constant 0.000000e+00 : f32
    %8 = vector.broadcast %cst : f32 to vector<64x128xf32>
    %9 = arith.cmpf oge, %7, %8 : vector<64x128xf32>
    %cst_5 = arith.constant 2.000000e-01 : f32
    %10 = vector.broadcast %cst_5 : f32 to vector<64x128xf32>
    %11 = arith.mulf %7, %10 : vector<64x128xf32>
    %12 = arith.select %9, %7, %11 : vector<64x128xi1>, vector<64x128xf32>
    %c0_6 = arith.constant 0 : index
    %c0_7 = arith.constant 0 : index
    %13 = vector.load %arg4[%c0_6, %c0_7] : memref<64x128xf32, #tpu.memory_space<vmem>>, vector<64x128xf32>
    tpu.vector_store %arg4[%c0_6, %c0_7], %12 {strides = array<i32>} : memref<64x128xf32, #tpu.memory_space<vmem>>, vector<64x128xf32>,
    return
  }
  func.func @transform_0(%arg0: i32) -> (i32, i32) {
    %c0_i32 = arith.constant 0 : i32
    %c0_i32_0 = arith.constant 0 : i32
    return %arg0, %c0_i32 : i32, i32
  }
  func.func @transform_1(%arg0: i32) -> (i32, i32) {
    %c0_i32 = arith.constant 0 : i32
    %c0_i32_0 = arith.constant 0 : i32
    %c0_i32_1 = arith.constant 0 : i32
    return %c0_i32, %c0_i32_0 : i32, i32
  }
  func.func @transform_2(%arg0: i32) -> (i32, i32) {
    %c0_i32 = arith.constant 0 : i32
    %c0_i32_0 = arith.constant 0 : i32
    %c0_i32_1 = arith.constant 0 : i32
    return %c0_i32, %c0_i32_0 : i32, i32
  }
  func.func @transform_3(%arg0: i32) -> (i32, i32) {
    %c0_i32 = arith.constant 0 : i32
    %c0_i32_0 = arith.constant 0 : i32
    return %arg0, %c0_i32 : i32, i32
  }
}

module attributes {stable_mosaic.version = 11 : i64} {
  func.func @_conv_matmul_kernel(%arg0: i32, %arg1: i32, %arg2: i32, %arg3: memref<32x128xbf16, #tpu.memory_space<vmem>>, %arg4: memref<128x128xbf16, #tpu.memory_space<vmem>>, %arg5: memref<1x128xf32, #tpu.memory_space<vmem>>, %arg6: memref<32x128xbf16, #tpu.memory_space<vmem>>, %arg7: memref<8x128xf32, #tpu.memory_space<vmem>>, %arg8: memref<8x128xf32, #tpu.memory_space<vmem>>, %arg9: memref<32x128xf32, #tpu.memory_space<vmem>>) attributes {dimension_semantics = [#tpu.dimension_semantics<parallel>, #tpu.dimension_semantics<parallel>, #tpu.dimension_semantics<arbitrary>], iteration_bounds = array<i64: 1, 2, 1>, scalar_prefetch = 0 : i64, scratch_operands = 1 : i64, tpu.core_type = #tpu.core_type<tc>, window_params = [{transform_indices = @transform_0, window_bounds = array<i64: 32, 128>}, {transform_indices = @transform_1, window_bounds = array<i64: 128, 128>}, {transform_indices = @transform_2, window_bounds = array<i64: 1, 128>}, {transform_indices = @transform_3, window_bounds = array<i64: 32, 128>}, {transform_indices = @transform_4, window_bounds = array<i64: 8, 128>}, {transform_indices = @transform_5, window_bounds = array<i64: 8, 128>}]} {
    %c32_i32 = arith.constant 32 : i32
    %0 = arith.muli %arg1, %c32_i32 : i32
    %c0_i32 = arith.constant 0 : i32
    %1 = arith.cmpi eq, %arg2, %c0_i32 : i32
    %2 = arith.extui %1 : i1 to i32
    %c0_i32_0 = arith.constant 0 : i32
    %3 = arith.cmpi ne, %2, %c0_i32_0 : i32
    scf.if %3 {
      %c0_10 = arith.constant 0 : index
      %c0_11 = arith.constant 0 : index
      %13 = vector.load %arg5[%c0_10, %c0_11] : memref<1x128xf32, #tpu.memory_space<vmem>>, vector<1x128xf32>
      %14 = vector.shape_cast %13 : vector<1x128xf32> to vector<1x128xf32>
      %15 = vector.broadcast %14 : vector<1x128xf32> to vector<32x128xf32>
      %c0_12 = arith.constant 0 : index
      %c0_13 = arith.constant 0 : index
      %16 = vector.load %arg9[%c0_12, %c0_13] : memref<32x128xf32, #tpu.memory_space<vmem>>, vector<32x128xf32>
      tpu.vector_store %arg9[%c0_12, %c0_13], %15 {strides = array<i32>} : memref<32x128xf32, #tpu.memory_space<vmem>>, vector<32x128xf32>,
    } else {
    }
    %c0 = arith.constant 0 : index
    %c0_1 = arith.constant 0 : index
    %4 = vector.load %arg4[%c0, %c0_1] : memref<128x128xbf16, #tpu.memory_space<vmem>>, vector<128x128xbf16>
    %c0_2 = arith.constant 0 : index
    %c0_3 = arith.constant 0 : index
    %5 = vector.load %arg9[%c0_2, %c0_3] : memref<32x128xf32, #tpu.memory_space<vmem>>, vector<32x128xf32>
    %c0_4 = arith.constant 0 : index
    %c0_5 = arith.constant 0 : index
    %6 = vector.load %arg3[%c0_4, %c0_5] : memref<32x128xbf16, #tpu.memory_space<vmem>>, vector<32x128xbf16>
    %cst = arith.constant dense<0.000000e+00> : vector<32x128xf32>
    %7 = tpu.matmul %6, %4, %cst {dimension_numbers = #tpu.dot_dimension_numbers<[1], [0], [0], [1], [0, 0, 1, 1], [], []>} : vector<32x128xbf16>, vector<128x128xbf16>, vector<32x128xf32> -> vector<32x128xf32>
    %8 = arith.addf %5, %7 : vector<32x128xf32>
    %c0_6 = arith.constant 0 : index
    %c0_7 = arith.constant 0 : index
    %9 = vector.load %arg9[%c0_6, %c0_7] : memref<32x128xf32, #tpu.memory_space<vmem>>, vector<32x128xf32>
    tpu.vector_store %arg9[%c0_6, %c0_7], %8 {strides = array<i32>} : memref<32x128xf32, #tpu.memory_space<vmem>>, vector<32x128xf32>,
    %c0_i32_8 = arith.constant 0 : i32
    %10 = arith.cmpi eq, %arg2, %c0_i32_8 : i32
    %11 = arith.extui %10 : i1 to i32
    %c0_i32_9 = arith.constant 0 : i32
    %12 = arith.cmpi ne, %11, %c0_i32_9 : i32
    scf.if %12 {
      %c0_10 = arith.constant 0 : index
      %c0_11 = arith.constant 0 : index
      %13 = vector.load %arg9[%c0_10, %c0_11] : memref<32x128xf32, #tpu.memory_space<vmem>>, vector<32x128xf32>
      %14 = tpu.iota {dimensions = array<i32: 0>} : vector<32x1xi32>
      %15 = vector.broadcast %0 : i32 to vector<32x1xi32>
      %16 = arith.addi %15, %14 : vector<32x1xi32>
      %c50_i32 = arith.constant 50 : i32
      %17 = vector.broadcast %c50_i32 : i32 to vector<32x1xi32>
      %18 = arith.cmpi slt, %16, %17 : vector<32x1xi32>
      %19 = arith.extui %18 : vector<32x1xi1> to vector<32x1xi32>
      %20 = arith.sitofp %19 : vector<32x1xi32> to vector<32x1xf32>
      %21 = vector.broadcast %20 : vector<32x1xf32> to vector<32x128xf32>
      %22 = arith.mulf %13, %21 : vector<32x128xf32>
      %cst_12 = arith.constant dense<0.000000e+00> : vector<128xf32>
      %23 = vector.multi_reduction <add>, %22, %cst_12 [0] : vector<32x128xf32> to vector<128xf32>
      %24 = vector.shape_cast %23 : vector<128xf32> to vector<1x128xf32>
      %25 = arith.mulf %22, %22 : vector<32x128xf32>
      %cst_13 = arith.constant dense<0.000000e+00> : vector<128xf32>
      %26 = vector.multi_reduction <add>, %25, %cst_13 [0] : vector<32x128xf32> to vector<128xf32>
      %27 = vector.shape_cast %26 : vector<128xf32> to vector<1x128xf32>
      %28 = tpu.iota {dimensions = array<i32: 0>} : vector<8x128xi32>
      %c0_i32_14 = arith.constant 0 : i32
      %29 = vector.broadcast %c0_i32_14 : i32 to vector<8x128xi32>
      %30 = arith.cmpi eq, %28, %29 : vector<8x128xi32>
      %31 = arith.extui %30 : vector<8x128xi1> to vector<8x128xi32>
      %32 = arith.sitofp %31 : vector<8x128xi32> to vector<8x128xf32>
      %33 = vector.broadcast %24 : vector<1x128xf32> to vector<8x128xf32>
      %34 = arith.mulf %33, %32 : vector<8x128xf32>
      %c0_15 = arith.constant 0 : index
      %c0_16 = arith.constant 0 : index
      %35 = vector.load %arg7[%c0_15, %c0_16] : memref<8x128xf32, #tpu.memory_space<vmem>>, vector<8x128xf32>
      tpu.vector_store %arg7[%c0_15, %c0_16], %34 {strides = array<i32>} : memref<8x128xf32, #tpu.memory_space<vmem>>, vector<8x128xf32>,
      %36 = vector.broadcast %27 : vector<1x128xf32> to vector<8x128xf32>
      %37 = arith.mulf %36, %32 : vector<8x128xf32>
      %c0_17 = arith.constant 0 : index
      %c0_18 = arith.constant 0 : index
      %38 = vector.load %arg8[%c0_17, %c0_18] : memref<8x128xf32, #tpu.memory_space<vmem>>, vector<8x128xf32>
      tpu.vector_store %arg8[%c0_17, %c0_18], %37 {strides = array<i32>} : memref<8x128xf32, #tpu.memory_space<vmem>>, vector<8x128xf32>,
      %39 = arith.truncf %13 : vector<32x128xf32> to vector<32x128xbf16>
      %c0_19 = arith.constant 0 : index
      %c0_20 = arith.constant 0 : index
      %40 = vector.load %arg6[%c0_19, %c0_20] : memref<32x128xbf16, #tpu.memory_space<vmem>>, vector<32x128xbf16>
      tpu.vector_store %arg6[%c0_19, %c0_20], %39 {strides = array<i32>} : memref<32x128xbf16, #tpu.memory_space<vmem>>, vector<32x128xbf16>,
    } else {
    }
    return
  }
  func.func @transform_0(%arg0: i32, %arg1: i32, %arg2: i32) -> (i32, i32) {
    %c0_i32 = arith.constant 0 : i32
    return %arg1, %arg2 : i32, i32
  }
  func.func @transform_1(%arg0: i32, %arg1: i32, %arg2: i32) -> (i32, i32) {
    %c0_i32 = arith.constant 0 : i32
    %c0_i32_0 = arith.constant 0 : i32
    return %c0_i32, %arg0 : i32, i32
  }
  func.func @transform_2(%arg0: i32, %arg1: i32, %arg2: i32) -> (i32, i32) {
    %c0_i32 = arith.constant 0 : i32
    %c0_i32_0 = arith.constant 0 : i32
    return %c0_i32, %arg0 : i32, i32
  }
  func.func @transform_3(%arg0: i32, %arg1: i32, %arg2: i32) -> (i32, i32) {
    %c0_i32 = arith.constant 0 : i32
    return %arg1, %arg0 : i32, i32
  }
  func.func @transform_4(%arg0: i32, %arg1: i32, %arg2: i32) -> (i32, i32) {
    %c0_i32 = arith.constant 0 : i32
    return %arg1, %arg0 : i32, i32
  }
  func.func @transform_5(%arg0: i32, %arg1: i32, %arg2: i32) -> (i32, i32) {
    %c0_i32 = arith.constant 0 : i32
    return %arg1, %arg0 : i32, i32
  }
}

module attributes {stable_mosaic.version = 11 : i64} {
  func.func @_affine_act_kernel(%arg0: i32, %arg1: memref<32x128xbf16, #tpu.memory_space<vmem>>, %arg2: memref<1x128xf32, #tpu.memory_space<vmem>>, %arg3: memref<1x128xf32, #tpu.memory_space<vmem>>, %arg4: memref<32x128xf32, #tpu.memory_space<vmem>>) attributes {dimension_semantics = [#tpu.dimension_semantics<parallel>], iteration_bounds = array<i64: 1>, scalar_prefetch = 0 : i64, scratch_operands = 0 : i64, tpu.core_type = #tpu.core_type<tc>, window_params = [{transform_indices = @transform_0, window_bounds = array<i64: 32, 128>}, {pipeline_mode = #tpu.pipeline_mode<synchronous>, transform_indices = @transform_1, window_bounds = array<i64: 1, 128>}, {pipeline_mode = #tpu.pipeline_mode<synchronous>, transform_indices = @transform_2, window_bounds = array<i64: 1, 128>}, {transform_indices = @transform_3, window_bounds = array<i64: 32, 128>}]} {
    %c0 = arith.constant 0 : index
    %c0_0 = arith.constant 0 : index
    %0 = vector.load %arg1[%c0, %c0_0] : memref<32x128xbf16, #tpu.memory_space<vmem>>, vector<32x128xbf16>
    %1 = arith.extf %0 : vector<32x128xbf16> to vector<32x128xf32>
    %c0_1 = arith.constant 0 : index
    %c0_2 = arith.constant 0 : index
    %2 = vector.load %arg2[%c0_1, %c0_2] : memref<1x128xf32, #tpu.memory_space<vmem>>, vector<1x128xf32>
    %3 = vector.broadcast %2 : vector<1x128xf32> to vector<32x128xf32>
    %4 = arith.mulf %1, %3 : vector<32x128xf32>
    %c0_3 = arith.constant 0 : index
    %c0_4 = arith.constant 0 : index
    %5 = vector.load %arg3[%c0_3, %c0_4] : memref<1x128xf32, #tpu.memory_space<vmem>>, vector<1x128xf32>
    %6 = vector.broadcast %5 : vector<1x128xf32> to vector<32x128xf32>
    %7 = arith.addf %4, %6 : vector<32x128xf32>
    %cst = arith.constant 0.000000e+00 : f32
    %8 = vector.broadcast %cst : f32 to vector<32x128xf32>
    %9 = arith.cmpf oge, %7, %8 : vector<32x128xf32>
    %cst_5 = arith.constant 2.000000e-01 : f32
    %10 = vector.broadcast %cst_5 : f32 to vector<32x128xf32>
    %11 = arith.mulf %7, %10 : vector<32x128xf32>
    %12 = arith.select %9, %7, %11 : vector<32x128xi1>, vector<32x128xf32>
    %c0_6 = arith.constant 0 : index
    %c0_7 = arith.constant 0 : index
    %13 = vector.load %arg4[%c0_6, %c0_7] : memref<32x128xf32, #tpu.memory_space<vmem>>, vector<32x128xf32>
    tpu.vector_store %arg4[%c0_6, %c0_7], %12 {strides = array<i32>} : memref<32x128xf32, #tpu.memory_space<vmem>>, vector<32x128xf32>,
    return
  }
  func.func @transform_0(%arg0: i32) -> (i32, i32) {
    %c0_i32 = arith.constant 0 : i32
    %c0_i32_0 = arith.constant 0 : i32
    return %arg0, %c0_i32 : i32, i32
  }
  func.func @transform_1(%arg0: i32) -> (i32, i32) {
    %c0_i32 = arith.constant 0 : i32
    %c0_i32_0 = arith.constant 0 : i32
    %c0_i32_1 = arith.constant 0 : i32
    return %c0_i32, %c0_i32_0 : i32, i32
  }
  func.func @transform_2(%arg0: i32) -> (i32, i32) {
    %c0_i32 = arith.constant 0 : i32
    %c0_i32_0 = arith.constant 0 : i32
    %c0_i32_1 = arith.constant 0 : i32
    return %c0_i32, %c0_i32_0 : i32, i32
  }
  func.func @transform_3(%arg0: i32) -> (i32, i32) {
    %c0_i32 = arith.constant 0 : i32
    %c0_i32_0 = arith.constant 0 : i32
    return %arg0, %c0_i32 : i32, i32
  }
}

module attributes {stable_mosaic.version = 11 : i64} {
  func.func @_conv_matmul_kernel(%arg0: i32, %arg1: i32, %arg2: i32, %arg3: memref<16x256xbf16, #tpu.memory_space<vmem>>, %arg4: memref<256x128xbf16, #tpu.memory_space<vmem>>, %arg5: memref<1x128xf32, #tpu.memory_space<vmem>>, %arg6: memref<16x128xbf16, #tpu.memory_space<vmem>>, %arg7: memref<8x128xf32, #tpu.memory_space<vmem>>, %arg8: memref<8x128xf32, #tpu.memory_space<vmem>>, %arg9: memref<16x128xf32, #tpu.memory_space<vmem>>) attributes {dimension_semantics = [#tpu.dimension_semantics<parallel>, #tpu.dimension_semantics<parallel>, #tpu.dimension_semantics<arbitrary>], iteration_bounds = array<i64: 1, 2, 1>, scalar_prefetch = 0 : i64, scratch_operands = 1 : i64, tpu.core_type = #tpu.core_type<tc>, window_params = [{transform_indices = @transform_0, window_bounds = array<i64: 16, 256>}, {transform_indices = @transform_1, window_bounds = array<i64: 256, 128>}, {transform_indices = @transform_2, window_bounds = array<i64: 1, 128>}, {transform_indices = @transform_3, window_bounds = array<i64: 16, 128>}, {transform_indices = @transform_4, window_bounds = array<i64: 8, 128>}, {transform_indices = @transform_5, window_bounds = array<i64: 8, 128>}]} {
    %c16_i32 = arith.constant 16 : i32
    %0 = arith.muli %arg1, %c16_i32 : i32
    %c0_i32 = arith.constant 0 : i32
    %1 = arith.cmpi eq, %arg2, %c0_i32 : i32
    %2 = arith.extui %1 : i1 to i32
    %c0_i32_0 = arith.constant 0 : i32
    %3 = arith.cmpi ne, %2, %c0_i32_0 : i32
    scf.if %3 {
      %c0_10 = arith.constant 0 : index
      %c0_11 = arith.constant 0 : index
      %13 = vector.load %arg5[%c0_10, %c0_11] : memref<1x128xf32, #tpu.memory_space<vmem>>, vector<1x128xf32>
      %14 = vector.shape_cast %13 : vector<1x128xf32> to vector<1x128xf32>
      %15 = vector.broadcast %14 : vector<1x128xf32> to vector<16x128xf32>
      %c0_12 = arith.constant 0 : index
      %c0_13 = arith.constant 0 : index
      %16 = vector.load %arg9[%c0_12, %c0_13] : memref<16x128xf32, #tpu.memory_space<vmem>>, vector<16x128xf32>
      tpu.vector_store %arg9[%c0_12, %c0_13], %15 {strides = array<i32>} : memref<16x128xf32, #tpu.memory_space<vmem>>, vector<16x128xf32>,
    } else {
    }
    %c0 = arith.constant 0 : index
    %c0_1 = arith.constant 0 : index
    %4 = vector.load %arg4[%c0, %c0_1] : memref<256x128xbf16, #tpu.memory_space<vmem>>, vector<256x128xbf16>
    %c0_2 = arith.constant 0 : index
    %c0_3 = arith.constant 0 : index
    %5 = vector.load %arg9[%c0_2, %c0_3] : memref<16x128xf32, #tpu.memory_space<vmem>>, vector<16x128xf32>
    %c0_4 = arith.constant 0 : index
    %c0_5 = arith.constant 0 : index
    %6 = vector.load %arg3[%c0_4, %c0_5] : memref<16x256xbf16, #tpu.memory_space<vmem>>, vector<16x256xbf16>
    %cst = arith.constant dense<0.000000e+00> : vector<16x128xf32>
    %7 = tpu.matmul %6, %4, %cst {dimension_numbers = #tpu.dot_dimension_numbers<[1], [0], [0], [1], [0, 0, 1, 1], [], []>} : vector<16x256xbf16>, vector<256x128xbf16>, vector<16x128xf32> -> vector<16x128xf32>
    %8 = arith.addf %5, %7 : vector<16x128xf32>
    %c0_6 = arith.constant 0 : index
    %c0_7 = arith.constant 0 : index
    %9 = vector.load %arg9[%c0_6, %c0_7] : memref<16x128xf32, #tpu.memory_space<vmem>>, vector<16x128xf32>
    tpu.vector_store %arg9[%c0_6, %c0_7], %8 {strides = array<i32>} : memref<16x128xf32, #tpu.memory_space<vmem>>, vector<16x128xf32>,
    %c0_i32_8 = arith.constant 0 : i32
    %10 = arith.cmpi eq, %arg2, %c0_i32_8 : i32
    %11 = arith.extui %10 : i1 to i32
    %c0_i32_9 = arith.constant 0 : i32
    %12 = arith.cmpi ne, %11, %c0_i32_9 : i32
    scf.if %12 {
      %c0_10 = arith.constant 0 : index
      %c0_11 = arith.constant 0 : index
      %13 = vector.load %arg9[%c0_10, %c0_11] : memref<16x128xf32, #tpu.memory_space<vmem>>, vector<16x128xf32>
      %14 = tpu.iota {dimensions = array<i32: 0>} : vector<16x1xi32>
      %15 = vector.broadcast %0 : i32 to vector<16x1xi32>
      %16 = arith.addi %15, %14 : vector<16x1xi32>
      %c18_i32 = arith.constant 18 : i32
      %17 = vector.broadcast %c18_i32 : i32 to vector<16x1xi32>
      %18 = arith.cmpi slt, %16, %17 : vector<16x1xi32>
      %19 = arith.extui %18 : vector<16x1xi1> to vector<16x1xi32>
      %20 = arith.sitofp %19 : vector<16x1xi32> to vector<16x1xf32>
      %21 = vector.broadcast %20 : vector<16x1xf32> to vector<16x128xf32>
      %22 = arith.mulf %13, %21 : vector<16x128xf32>
      %cst_12 = arith.constant dense<0.000000e+00> : vector<128xf32>
      %23 = vector.multi_reduction <add>, %22, %cst_12 [0] : vector<16x128xf32> to vector<128xf32>
      %24 = vector.shape_cast %23 : vector<128xf32> to vector<1x128xf32>
      %25 = arith.mulf %22, %22 : vector<16x128xf32>
      %cst_13 = arith.constant dense<0.000000e+00> : vector<128xf32>
      %26 = vector.multi_reduction <add>, %25, %cst_13 [0] : vector<16x128xf32> to vector<128xf32>
      %27 = vector.shape_cast %26 : vector<128xf32> to vector<1x128xf32>
      %28 = tpu.iota {dimensions = array<i32: 0>} : vector<8x128xi32>
      %c0_i32_14 = arith.constant 0 : i32
      %29 = vector.broadcast %c0_i32_14 : i32 to vector<8x128xi32>
      %30 = arith.cmpi eq, %28, %29 : vector<8x128xi32>
      %31 = arith.extui %30 : vector<8x128xi1> to vector<8x128xi32>
      %32 = arith.sitofp %31 : vector<8x128xi32> to vector<8x128xf32>
      %33 = vector.broadcast %24 : vector<1x128xf32> to vector<8x128xf32>
      %34 = arith.mulf %33, %32 : vector<8x128xf32>
      %c0_15 = arith.constant 0 : index
      %c0_16 = arith.constant 0 : index
      %35 = vector.load %arg7[%c0_15, %c0_16] : memref<8x128xf32, #tpu.memory_space<vmem>>, vector<8x128xf32>
      tpu.vector_store %arg7[%c0_15, %c0_16], %34 {strides = array<i32>} : memref<8x128xf32, #tpu.memory_space<vmem>>, vector<8x128xf32>,
      %36 = vector.broadcast %27 : vector<1x128xf32> to vector<8x128xf32>
      %37 = arith.mulf %36, %32 : vector<8x128xf32>
      %c0_17 = arith.constant 0 : index
      %c0_18 = arith.constant 0 : index
      %38 = vector.load %arg8[%c0_17, %c0_18] : memref<8x128xf32, #tpu.memory_space<vmem>>, vector<8x128xf32>
      tpu.vector_store %arg8[%c0_17, %c0_18], %37 {strides = array<i32>} : memref<8x128xf32, #tpu.memory_space<vmem>>, vector<8x128xf32>,
      %39 = arith.truncf %13 : vector<16x128xf32> to vector<16x128xbf16>
      %c0_19 = arith.constant 0 : index
      %c0_20 = arith.constant 0 : index
      %40 = vector.load %arg6[%c0_19, %c0_20] : memref<16x128xbf16, #tpu.memory_space<vmem>>, vector<16x128xbf16>
      tpu.vector_store %arg6[%c0_19, %c0_20], %39 {strides = array<i32>} : memref<16x128xbf16, #tpu.memory_space<vmem>>, vector<16x128xbf16>,
    } else {
    }
    return
  }
  func.func @transform_0(%arg0: i32, %arg1: i32, %arg2: i32) -> (i32, i32) {
    %c0_i32 = arith.constant 0 : i32
    return %arg1, %arg2 : i32, i32
  }
  func.func @transform_1(%arg0: i32, %arg1: i32, %arg2: i32) -> (i32, i32) {
    %c0_i32 = arith.constant 0 : i32
    %c0_i32_0 = arith.constant 0 : i32
    return %c0_i32, %arg0 : i32, i32
  }
  func.func @transform_2(%arg0: i32, %arg1: i32, %arg2: i32) -> (i32, i32) {
    %c0_i32 = arith.constant 0 : i32
    %c0_i32_0 = arith.constant 0 : i32
    return %c0_i32, %arg0 : i32, i32
  }
  func.func @transform_3(%arg0: i32, %arg1: i32, %arg2: i32) -> (i32, i32) {
    %c0_i32 = arith.constant 0 : i32
    return %arg1, %arg0 : i32, i32
  }
  func.func @transform_4(%arg0: i32, %arg1: i32, %arg2: i32) -> (i32, i32) {
    %c0_i32 = arith.constant 0 : i32
    return %arg1, %arg0 : i32, i32
  }
  func.func @transform_5(%arg0: i32, %arg1: i32, %arg2: i32) -> (i32, i32) {
    %c0_i32 = arith.constant 0 : i32
    return %arg1, %arg0 : i32, i32
  }
}

module attributes {stable_mosaic.version = 11 : i64} {
  func.func @_conv_matmul_kernel(%arg0: i32, %arg1: i32, %arg2: i32, %arg3: memref<16x512xbf16, #tpu.memory_space<vmem>>, %arg4: memref<512x128xbf16, #tpu.memory_space<vmem>>, %arg5: memref<1x128xf32, #tpu.memory_space<vmem>>, %arg6: memref<16x128xbf16, #tpu.memory_space<vmem>>, %arg7: memref<8x128xf32, #tpu.memory_space<vmem>>, %arg8: memref<8x128xf32, #tpu.memory_space<vmem>>, %arg9: memref<16x128xf32, #tpu.memory_space<vmem>>) attributes {dimension_semantics = [#tpu.dimension_semantics<parallel>, #tpu.dimension_semantics<parallel>, #tpu.dimension_semantics<arbitrary>], iteration_bounds = array<i64: 1, 2, 1>, scalar_prefetch = 0 : i64, scratch_operands = 1 : i64, tpu.core_type = #tpu.core_type<tc>, window_params = [{transform_indices = @transform_0, window_bounds = array<i64: 16, 512>}, {transform_indices = @transform_1, window_bounds = array<i64: 512, 128>}, {transform_indices = @transform_2, window_bounds = array<i64: 1, 128>}, {transform_indices = @transform_3, window_bounds = array<i64: 16, 128>}, {transform_indices = @transform_4, window_bounds = array<i64: 8, 128>}, {transform_indices = @transform_5, window_bounds = array<i64: 8, 128>}]} {
    %c16_i32 = arith.constant 16 : i32
    %0 = arith.muli %arg1, %c16_i32 : i32
    %c0_i32 = arith.constant 0 : i32
    %1 = arith.cmpi eq, %arg2, %c0_i32 : i32
    %2 = arith.extui %1 : i1 to i32
    %c0_i32_0 = arith.constant 0 : i32
    %3 = arith.cmpi ne, %2, %c0_i32_0 : i32
    scf.if %3 {
      %c0_10 = arith.constant 0 : index
      %c0_11 = arith.constant 0 : index
      %13 = vector.load %arg5[%c0_10, %c0_11] : memref<1x128xf32, #tpu.memory_space<vmem>>, vector<1x128xf32>
      %14 = vector.shape_cast %13 : vector<1x128xf32> to vector<1x128xf32>
      %15 = vector.broadcast %14 : vector<1x128xf32> to vector<16x128xf32>
      %c0_12 = arith.constant 0 : index
      %c0_13 = arith.constant 0 : index
      %16 = vector.load %arg9[%c0_12, %c0_13] : memref<16x128xf32, #tpu.memory_space<vmem>>, vector<16x128xf32>
      tpu.vector_store %arg9[%c0_12, %c0_13], %15 {strides = array<i32>} : memref<16x128xf32, #tpu.memory_space<vmem>>, vector<16x128xf32>,
    } else {
    }
    %c0 = arith.constant 0 : index
    %c0_1 = arith.constant 0 : index
    %4 = vector.load %arg4[%c0, %c0_1] : memref<512x128xbf16, #tpu.memory_space<vmem>>, vector<512x128xbf16>
    %c0_2 = arith.constant 0 : index
    %c0_3 = arith.constant 0 : index
    %5 = vector.load %arg9[%c0_2, %c0_3] : memref<16x128xf32, #tpu.memory_space<vmem>>, vector<16x128xf32>
    %c0_4 = arith.constant 0 : index
    %c0_5 = arith.constant 0 : index
    %6 = vector.load %arg3[%c0_4, %c0_5] : memref<16x512xbf16, #tpu.memory_space<vmem>>, vector<16x512xbf16>
    %cst = arith.constant dense<0.000000e+00> : vector<16x128xf32>
    %7 = tpu.matmul %6, %4, %cst {dimension_numbers = #tpu.dot_dimension_numbers<[1], [0], [0], [1], [0, 0, 1, 1], [], []>} : vector<16x512xbf16>, vector<512x128xbf16>, vector<16x128xf32> -> vector<16x128xf32>
    %8 = arith.addf %5, %7 : vector<16x128xf32>
    %c0_6 = arith.constant 0 : index
    %c0_7 = arith.constant 0 : index
    %9 = vector.load %arg9[%c0_6, %c0_7] : memref<16x128xf32, #tpu.memory_space<vmem>>, vector<16x128xf32>
    tpu.vector_store %arg9[%c0_6, %c0_7], %8 {strides = array<i32>} : memref<16x128xf32, #tpu.memory_space<vmem>>, vector<16x128xf32>,
    %c0_i32_8 = arith.constant 0 : i32
    %10 = arith.cmpi eq, %arg2, %c0_i32_8 : i32
    %11 = arith.extui %10 : i1 to i32
    %c0_i32_9 = arith.constant 0 : i32
    %12 = arith.cmpi ne, %11, %c0_i32_9 : i32
    scf.if %12 {
      %c0_10 = arith.constant 0 : index
      %c0_11 = arith.constant 0 : index
      %13 = vector.load %arg9[%c0_10, %c0_11] : memref<16x128xf32, #tpu.memory_space<vmem>>, vector<16x128xf32>
      %14 = tpu.iota {dimensions = array<i32: 0>} : vector<16x1xi32>
      %15 = vector.broadcast %0 : i32 to vector<16x1xi32>
      %16 = arith.addi %15, %14 : vector<16x1xi32>
      %c32_i32 = arith.constant 32 : i32
      %17 = vector.broadcast %c32_i32 : i32 to vector<16x1xi32>
      %18 = arith.cmpi slt, %16, %17 : vector<16x1xi32>
      %19 = arith.extui %18 : vector<16x1xi1> to vector<16x1xi32>
      %20 = arith.sitofp %19 : vector<16x1xi32> to vector<16x1xf32>
      %21 = vector.broadcast %20 : vector<16x1xf32> to vector<16x128xf32>
      %22 = arith.mulf %13, %21 : vector<16x128xf32>
      %cst_12 = arith.constant dense<0.000000e+00> : vector<128xf32>
      %23 = vector.multi_reduction <add>, %22, %cst_12 [0] : vector<16x128xf32> to vector<128xf32>
      %24 = vector.shape_cast %23 : vector<128xf32> to vector<1x128xf32>
      %25 = arith.mulf %22, %22 : vector<16x128xf32>
      %cst_13 = arith.constant dense<0.000000e+00> : vector<128xf32>
      %26 = vector.multi_reduction <add>, %25, %cst_13 [0] : vector<16x128xf32> to vector<128xf32>
      %27 = vector.shape_cast %26 : vector<128xf32> to vector<1x128xf32>
      %28 = tpu.iota {dimensions = array<i32: 0>} : vector<8x128xi32>
      %c0_i32_14 = arith.constant 0 : i32
      %29 = vector.broadcast %c0_i32_14 : i32 to vector<8x128xi32>
      %30 = arith.cmpi eq, %28, %29 : vector<8x128xi32>
      %31 = arith.extui %30 : vector<8x128xi1> to vector<8x128xi32>
      %32 = arith.sitofp %31 : vector<8x128xi32> to vector<8x128xf32>
      %33 = vector.broadcast %24 : vector<1x128xf32> to vector<8x128xf32>
      %34 = arith.mulf %33, %32 : vector<8x128xf32>
      %c0_15 = arith.constant 0 : index
      %c0_16 = arith.constant 0 : index
      %35 = vector.load %arg7[%c0_15, %c0_16] : memref<8x128xf32, #tpu.memory_space<vmem>>, vector<8x128xf32>
      tpu.vector_store %arg7[%c0_15, %c0_16], %34 {strides = array<i32>} : memref<8x128xf32, #tpu.memory_space<vmem>>, vector<8x128xf32>,
      %36 = vector.broadcast %27 : vector<1x128xf32> to vector<8x128xf32>
      %37 = arith.mulf %36, %32 : vector<8x128xf32>
      %c0_17 = arith.constant 0 : index
      %c0_18 = arith.constant 0 : index
      %38 = vector.load %arg8[%c0_17, %c0_18] : memref<8x128xf32, #tpu.memory_space<vmem>>, vector<8x128xf32>
      tpu.vector_store %arg8[%c0_17, %c0_18], %37 {strides = array<i32>} : memref<8x128xf32, #tpu.memory_space<vmem>>, vector<8x128xf32>,
      %39 = arith.truncf %13 : vector<16x128xf32> to vector<16x128xbf16>
      %c0_19 = arith.constant 0 : index
      %c0_20 = arith.constant 0 : index
      %40 = vector.load %arg6[%c0_19, %c0_20] : memref<16x128xbf16, #tpu.memory_space<vmem>>, vector<16x128xbf16>
      tpu.vector_store %arg6[%c0_19, %c0_20], %39 {strides = array<i32>} : memref<16x128xbf16, #tpu.memory_space<vmem>>, vector<16x128xbf16>,
    } else {
    }
    return
  }
  func.func @transform_0(%arg0: i32, %arg1: i32, %arg2: i32) -> (i32, i32) {
    %c0_i32 = arith.constant 0 : i32
    return %arg1, %arg2 : i32, i32
  }
  func.func @transform_1(%arg0: i32, %arg1: i32, %arg2: i32) -> (i32, i32) {
    %c0_i32 = arith.constant 0 : i32
    %c0_i32_0 = arith.constant 0 : i32
    return %c0_i32, %arg0 : i32, i32
  }
  func.func @transform_2(%arg0: i32, %arg1: i32, %arg2: i32) -> (i32, i32) {
    %c0_i32 = arith.constant 0 : i32
    %c0_i32_0 = arith.constant 0 : i32
    return %c0_i32, %arg0 : i32, i32
  }
  func.func @transform_3(%arg0: i32, %arg1: i32, %arg2: i32) -> (i32, i32) {
    %c0_i32 = arith.constant 0 : i32
    return %arg1, %arg0 : i32, i32
  }
  func.func @transform_4(%arg0: i32, %arg1: i32, %arg2: i32) -> (i32, i32) {
    %c0_i32 = arith.constant 0 : i32
    return %arg1, %arg0 : i32, i32
  }
  func.func @transform_5(%arg0: i32, %arg1: i32, %arg2: i32) -> (i32, i32) {
    %c0_i32 = arith.constant 0 : i32
    return %arg1, %arg0 : i32, i32
  }
}

module attributes {stable_mosaic.version = 11 : i64} {
  func.func @_conv_matmul_kernel(%arg0: i32, %arg1: i32, %arg2: i32, %arg3: memref<32x1024xbf16, #tpu.memory_space<vmem>>, %arg4: memref<1024x128xbf16, #tpu.memory_space<vmem>>, %arg5: memref<1x128xf32, #tpu.memory_space<vmem>>, %arg6: memref<32x128xf32, #tpu.memory_space<vmem>>, %arg7: memref<32x128xf32, #tpu.memory_space<vmem>>) attributes {dimension_semantics = [#tpu.dimension_semantics<parallel>, #tpu.dimension_semantics<parallel>, #tpu.dimension_semantics<arbitrary>], iteration_bounds = array<i64: 1, 2, 1>, scalar_prefetch = 0 : i64, scratch_operands = 1 : i64, tpu.core_type = #tpu.core_type<tc>, window_params = [{transform_indices = @transform_0, window_bounds = array<i64: 32, 1024>}, {transform_indices = @transform_1, window_bounds = array<i64: 1024, 128>}, {transform_indices = @transform_2, window_bounds = array<i64: 1, 128>}, {transform_indices = @transform_3, window_bounds = array<i64: 32, 128>}]} {
    %c0_i32 = arith.constant 0 : i32
    %0 = arith.cmpi eq, %arg2, %c0_i32 : i32
    %1 = arith.extui %0 : i1 to i32
    %c0_i32_0 = arith.constant 0 : i32
    %2 = arith.cmpi ne, %1, %c0_i32_0 : i32
    scf.if %2 {
      %c0_10 = arith.constant 0 : index
      %c0_11 = arith.constant 0 : index
      %12 = vector.load %arg5[%c0_10, %c0_11] : memref<1x128xf32, #tpu.memory_space<vmem>>, vector<1x128xf32>
      %13 = vector.shape_cast %12 : vector<1x128xf32> to vector<1x128xf32>
      %14 = vector.broadcast %13 : vector<1x128xf32> to vector<32x128xf32>
      %c0_12 = arith.constant 0 : index
      %c0_13 = arith.constant 0 : index
      %15 = vector.load %arg7[%c0_12, %c0_13] : memref<32x128xf32, #tpu.memory_space<vmem>>, vector<32x128xf32>
      tpu.vector_store %arg7[%c0_12, %c0_13], %14 {strides = array<i32>} : memref<32x128xf32, #tpu.memory_space<vmem>>, vector<32x128xf32>,
    } else {
    }
    %c0 = arith.constant 0 : index
    %c0_1 = arith.constant 0 : index
    %3 = vector.load %arg4[%c0, %c0_1] : memref<1024x128xbf16, #tpu.memory_space<vmem>>, vector<1024x128xbf16>
    %c0_2 = arith.constant 0 : index
    %c0_3 = arith.constant 0 : index
    %4 = vector.load %arg7[%c0_2, %c0_3] : memref<32x128xf32, #tpu.memory_space<vmem>>, vector<32x128xf32>
    %c0_4 = arith.constant 0 : index
    %c0_5 = arith.constant 0 : index
    %5 = vector.load %arg3[%c0_4, %c0_5] : memref<32x1024xbf16, #tpu.memory_space<vmem>>, vector<32x1024xbf16>
    %cst = arith.constant dense<0.000000e+00> : vector<32x128xf32>
    %6 = tpu.matmul %5, %3, %cst {dimension_numbers = #tpu.dot_dimension_numbers<[1], [0], [0], [1], [0, 0, 1, 1], [], []>} : vector<32x1024xbf16>, vector<1024x128xbf16>, vector<32x128xf32> -> vector<32x128xf32>
    %7 = arith.addf %4, %6 : vector<32x128xf32>
    %c0_6 = arith.constant 0 : index
    %c0_7 = arith.constant 0 : index
    %8 = vector.load %arg7[%c0_6, %c0_7] : memref<32x128xf32, #tpu.memory_space<vmem>>, vector<32x128xf32>
    tpu.vector_store %arg7[%c0_6, %c0_7], %7 {strides = array<i32>} : memref<32x128xf32, #tpu.memory_space<vmem>>, vector<32x128xf32>,
    %c0_i32_8 = arith.constant 0 : i32
    %9 = arith.cmpi eq, %arg2, %c0_i32_8 : i32
    %10 = arith.extui %9 : i1 to i32
    %c0_i32_9 = arith.constant 0 : i32
    %11 = arith.cmpi ne, %10, %c0_i32_9 : i32
    scf.if %11 {
      %c0_10 = arith.constant 0 : index
      %c0_11 = arith.constant 0 : index
      %12 = vector.load %arg7[%c0_10, %c0_11] : memref<32x128xf32, #tpu.memory_space<vmem>>, vector<32x128xf32>
      %c0_12 = arith.constant 0 : index
      %c0_13 = arith.constant 0 : index
      %13 = vector.load %arg6[%c0_12, %c0_13] : memref<32x128xf32, #tpu.memory_space<vmem>>, vector<32x128xf32>
      tpu.vector_store %arg6[%c0_12, %c0_13], %12 {strides = array<i32>} : memref<32x128xf32, #tpu.memory_space<vmem>>, vector<32x128xf32>,
    } else {
    }
    return
  }
  func.func @transform_0(%arg0: i32, %arg1: i32, %arg2: i32) -> (i32, i32) {
    %c0_i32 = arith.constant 0 : i32
    return %arg1, %arg2 : i32, i32
  }
  func.func @transform_1(%arg0: i32, %arg1: i32, %arg2: i32) -> (i32, i32) {
    %c0_i32 = arith.constant 0 : i32
    %c0_i32_0 = arith.constant 0 : i32
    return %c0_i32, %arg0 : i32, i32
  }
  func.func @transform_2(%arg0: i32, %arg1: i32, %arg2: i32) -> (i32, i32) {
    %c0_i32 = arith.constant 0 : i32
    %c0_i32_0 = arith.constant 0 : i32
    return %c0_i32, %arg0 : i32, i32
  }
  func.func @transform_3(%arg0: i32, %arg1: i32, %arg2: i32) -> (i32, i32) {
    %c0_i32 = arith.constant 0 : i32
    return %arg1, %arg0 : i32, i32
  }
}

module attributes {stable_mosaic.version = 11 : i64} {
  func.func @_conv_matmul_kernel(%arg0: i32, %arg1: i32, %arg2: i32, %arg3: memref<32x128xbf16, #tpu.memory_space<vmem>>, %arg4: memref<128x128xbf16, #tpu.memory_space<vmem>>, %arg5: memref<1x128xf32, #tpu.memory_space<vmem>>, %arg6: memref<32x128xf32, #tpu.memory_space<vmem>>, %arg7: memref<32x128xf32, #tpu.memory_space<vmem>>) attributes {dimension_semantics = [#tpu.dimension_semantics<parallel>, #tpu.dimension_semantics<parallel>, #tpu.dimension_semantics<arbitrary>], iteration_bounds = array<i64: 1, 2, 1>, scalar_prefetch = 0 : i64, scratch_operands = 1 : i64, tpu.core_type = #tpu.core_type<tc>, window_params = [{transform_indices = @transform_0, window_bounds = array<i64: 32, 128>}, {transform_indices = @transform_1, window_bounds = array<i64: 128, 128>}, {transform_indices = @transform_2, window_bounds = array<i64: 1, 128>}, {transform_indices = @transform_3, window_bounds = array<i64: 32, 128>}]} {
    %c0_i32 = arith.constant 0 : i32
    %0 = arith.cmpi eq, %arg2, %c0_i32 : i32
    %1 = arith.extui %0 : i1 to i32
    %c0_i32_0 = arith.constant 0 : i32
    %2 = arith.cmpi ne, %1, %c0_i32_0 : i32
    scf.if %2 {
      %c0_10 = arith.constant 0 : index
      %c0_11 = arith.constant 0 : index
      %12 = vector.load %arg5[%c0_10, %c0_11] : memref<1x128xf32, #tpu.memory_space<vmem>>, vector<1x128xf32>
      %13 = vector.shape_cast %12 : vector<1x128xf32> to vector<1x128xf32>
      %14 = vector.broadcast %13 : vector<1x128xf32> to vector<32x128xf32>
      %c0_12 = arith.constant 0 : index
      %c0_13 = arith.constant 0 : index
      %15 = vector.load %arg7[%c0_12, %c0_13] : memref<32x128xf32, #tpu.memory_space<vmem>>, vector<32x128xf32>
      tpu.vector_store %arg7[%c0_12, %c0_13], %14 {strides = array<i32>} : memref<32x128xf32, #tpu.memory_space<vmem>>, vector<32x128xf32>,
    } else {
    }
    %c0 = arith.constant 0 : index
    %c0_1 = arith.constant 0 : index
    %3 = vector.load %arg4[%c0, %c0_1] : memref<128x128xbf16, #tpu.memory_space<vmem>>, vector<128x128xbf16>
    %c0_2 = arith.constant 0 : index
    %c0_3 = arith.constant 0 : index
    %4 = vector.load %arg7[%c0_2, %c0_3] : memref<32x128xf32, #tpu.memory_space<vmem>>, vector<32x128xf32>
    %c0_4 = arith.constant 0 : index
    %c0_5 = arith.constant 0 : index
    %5 = vector.load %arg3[%c0_4, %c0_5] : memref<32x128xbf16, #tpu.memory_space<vmem>>, vector<32x128xbf16>
    %cst = arith.constant dense<0.000000e+00> : vector<32x128xf32>
    %6 = tpu.matmul %5, %3, %cst {dimension_numbers = #tpu.dot_dimension_numbers<[1], [0], [0], [1], [0, 0, 1, 1], [], []>} : vector<32x128xbf16>, vector<128x128xbf16>, vector<32x128xf32> -> vector<32x128xf32>
    %7 = arith.addf %4, %6 : vector<32x128xf32>
    %c0_6 = arith.constant 0 : index
    %c0_7 = arith.constant 0 : index
    %8 = vector.load %arg7[%c0_6, %c0_7] : memref<32x128xf32, #tpu.memory_space<vmem>>, vector<32x128xf32>
    tpu.vector_store %arg7[%c0_6, %c0_7], %7 {strides = array<i32>} : memref<32x128xf32, #tpu.memory_space<vmem>>, vector<32x128xf32>,
    %c0_i32_8 = arith.constant 0 : i32
    %9 = arith.cmpi eq, %arg2, %c0_i32_8 : i32
    %10 = arith.extui %9 : i1 to i32
    %c0_i32_9 = arith.constant 0 : i32
    %11 = arith.cmpi ne, %10, %c0_i32_9 : i32
    scf.if %11 {
      %c0_10 = arith.constant 0 : index
      %c0_11 = arith.constant 0 : index
      %12 = vector.load %arg7[%c0_10, %c0_11] : memref<32x128xf32, #tpu.memory_space<vmem>>, vector<32x128xf32>
      %cst_12 = arith.constant 0.000000e+00 : f32
      %13 = vector.broadcast %cst_12 : f32 to vector<32x128xf32>
      %14 = arith.cmpf oge, %12, %13 : vector<32x128xf32>
      %cst_13 = arith.constant 2.000000e-01 : f32
      %15 = vector.broadcast %cst_13 : f32 to vector<32x128xf32>
      %16 = arith.mulf %12, %15 : vector<32x128xf32>
      %17 = arith.select %14, %12, %16 : vector<32x128xi1>, vector<32x128xf32>
      %c0_14 = arith.constant 0 : index
      %c0_15 = arith.constant 0 : index
      %18 = vector.load %arg6[%c0_14, %c0_15] : memref<32x128xf32, #tpu.memory_space<vmem>>, vector<32x128xf32>
      tpu.vector_store %arg6[%c0_14, %c0_15], %17 {strides = array<i32>} : memref<32x128xf32, #tpu.memory_space<vmem>>, vector<32x128xf32>,
    } else {
    }
    return
  }
  func.func @transform_0(%arg0: i32, %arg1: i32, %arg2: i32) -> (i32, i32) {
    %c0_i32 = arith.constant 0 : i32
    return %arg1, %arg2 : i32, i32
  }
  func.func @transform_1(%arg0: i32, %arg1: i32, %arg2: i32) -> (i32, i32) {
    %c0_i32 = arith.constant 0 : i32
    %c0_i32_0 = arith.constant 0 : i32
    return %c0_i32, %arg0 : i32, i32
  }
  func.func @transform_2(%arg0: i32, %arg1: i32, %arg2: i32) -> (i32, i32) {
    %c0_i32 = arith.constant 0 : i32
    %c0_i32_0 = arith.constant 0 : i32
    return %c0_i32, %arg0 : i32, i32
  }
  func.func @transform_3(%arg0: i32, %arg1: i32, %arg2: i32) -> (i32, i32) {
    %c0_i32 = arith.constant 0 : i32
    return %arg1, %arg0 : i32, i32
  }
}

module attributes {stable_mosaic.version = 11 : i64} {
  func.func @_conv_matmul_kernel(%arg0: i32, %arg1: i32, %arg2: i32, %arg3: memref<16x128xbf16, #tpu.memory_space<vmem>>, %arg4: memref<128x128xbf16, #tpu.memory_space<vmem>>, %arg5: memref<1x128xf32, #tpu.memory_space<vmem>>, %arg6: memref<16x128xbf16, #tpu.memory_space<vmem>>, %arg7: memref<8x128xf32, #tpu.memory_space<vmem>>, %arg8: memref<8x128xf32, #tpu.memory_space<vmem>>, %arg9: memref<16x128xf32, #tpu.memory_space<vmem>>) attributes {dimension_semantics = [#tpu.dimension_semantics<parallel>, #tpu.dimension_semantics<parallel>, #tpu.dimension_semantics<arbitrary>], iteration_bounds = array<i64: 1, 2, 1>, scalar_prefetch = 0 : i64, scratch_operands = 1 : i64, tpu.core_type = #tpu.core_type<tc>, window_params = [{transform_indices = @transform_0, window_bounds = array<i64: 16, 128>}, {transform_indices = @transform_1, window_bounds = array<i64: 128, 128>}, {transform_indices = @transform_2, window_bounds = array<i64: 1, 128>}, {transform_indices = @transform_3, window_bounds = array<i64: 16, 128>}, {transform_indices = @transform_4, window_bounds = array<i64: 8, 128>}, {transform_indices = @transform_5, window_bounds = array<i64: 8, 128>}]} {
    %c16_i32 = arith.constant 16 : i32
    %0 = arith.muli %arg1, %c16_i32 : i32
    %c0_i32 = arith.constant 0 : i32
    %1 = arith.cmpi eq, %arg2, %c0_i32 : i32
    %2 = arith.extui %1 : i1 to i32
    %c0_i32_0 = arith.constant 0 : i32
    %3 = arith.cmpi ne, %2, %c0_i32_0 : i32
    scf.if %3 {
      %c0_10 = arith.constant 0 : index
      %c0_11 = arith.constant 0 : index
      %13 = vector.load %arg5[%c0_10, %c0_11] : memref<1x128xf32, #tpu.memory_space<vmem>>, vector<1x128xf32>
      %14 = vector.shape_cast %13 : vector<1x128xf32> to vector<1x128xf32>
      %15 = vector.broadcast %14 : vector<1x128xf32> to vector<16x128xf32>
      %c0_12 = arith.constant 0 : index
      %c0_13 = arith.constant 0 : index
      %16 = vector.load %arg9[%c0_12, %c0_13] : memref<16x128xf32, #tpu.memory_space<vmem>>, vector<16x128xf32>
      tpu.vector_store %arg9[%c0_12, %c0_13], %15 {strides = array<i32>} : memref<16x128xf32, #tpu.memory_space<vmem>>, vector<16x128xf32>,
    } else {
    }
    %c0 = arith.constant 0 : index
    %c0_1 = arith.constant 0 : index
    %4 = vector.load %arg4[%c0, %c0_1] : memref<128x128xbf16, #tpu.memory_space<vmem>>, vector<128x128xbf16>
    %c0_2 = arith.constant 0 : index
    %c0_3 = arith.constant 0 : index
    %5 = vector.load %arg9[%c0_2, %c0_3] : memref<16x128xf32, #tpu.memory_space<vmem>>, vector<16x128xf32>
    %c0_4 = arith.constant 0 : index
    %c0_5 = arith.constant 0 : index
    %6 = vector.load %arg3[%c0_4, %c0_5] : memref<16x128xbf16, #tpu.memory_space<vmem>>, vector<16x128xbf16>
    %cst = arith.constant dense<0.000000e+00> : vector<16x128xf32>
    %7 = tpu.matmul %6, %4, %cst {dimension_numbers = #tpu.dot_dimension_numbers<[1], [0], [0], [1], [0, 0, 1, 1], [], []>} : vector<16x128xbf16>, vector<128x128xbf16>, vector<16x128xf32> -> vector<16x128xf32>
    %8 = arith.addf %5, %7 : vector<16x128xf32>
    %c0_6 = arith.constant 0 : index
    %c0_7 = arith.constant 0 : index
    %9 = vector.load %arg9[%c0_6, %c0_7] : memref<16x128xf32, #tpu.memory_space<vmem>>, vector<16x128xf32>
    tpu.vector_store %arg9[%c0_6, %c0_7], %8 {strides = array<i32>} : memref<16x128xf32, #tpu.memory_space<vmem>>, vector<16x128xf32>,
    %c0_i32_8 = arith.constant 0 : i32
    %10 = arith.cmpi eq, %arg2, %c0_i32_8 : i32
    %11 = arith.extui %10 : i1 to i32
    %c0_i32_9 = arith.constant 0 : i32
    %12 = arith.cmpi ne, %11, %c0_i32_9 : i32
    scf.if %12 {
      %c0_10 = arith.constant 0 : index
      %c0_11 = arith.constant 0 : index
      %13 = vector.load %arg9[%c0_10, %c0_11] : memref<16x128xf32, #tpu.memory_space<vmem>>, vector<16x128xf32>
      %14 = tpu.iota {dimensions = array<i32: 0>} : vector<16x1xi32>
      %15 = vector.broadcast %0 : i32 to vector<16x1xi32>
      %16 = arith.addi %15, %14 : vector<16x1xi32>
      %c18_i32 = arith.constant 18 : i32
      %17 = vector.broadcast %c18_i32 : i32 to vector<16x1xi32>
      %18 = arith.cmpi slt, %16, %17 : vector<16x1xi32>
      %19 = arith.extui %18 : vector<16x1xi1> to vector<16x1xi32>
      %20 = arith.sitofp %19 : vector<16x1xi32> to vector<16x1xf32>
      %21 = vector.broadcast %20 : vector<16x1xf32> to vector<16x128xf32>
      %22 = arith.mulf %13, %21 : vector<16x128xf32>
      %cst_12 = arith.constant dense<0.000000e+00> : vector<128xf32>
      %23 = vector.multi_reduction <add>, %22, %cst_12 [0] : vector<16x128xf32> to vector<128xf32>
      %24 = vector.shape_cast %23 : vector<128xf32> to vector<1x128xf32>
      %25 = arith.mulf %22, %22 : vector<16x128xf32>
      %cst_13 = arith.constant dense<0.000000e+00> : vector<128xf32>
      %26 = vector.multi_reduction <add>, %25, %cst_13 [0] : vector<16x128xf32> to vector<128xf32>
      %27 = vector.shape_cast %26 : vector<128xf32> to vector<1x128xf32>
      %28 = tpu.iota {dimensions = array<i32: 0>} : vector<8x128xi32>
      %c0_i32_14 = arith.constant 0 : i32
      %29 = vector.broadcast %c0_i32_14 : i32 to vector<8x128xi32>
      %30 = arith.cmpi eq, %28, %29 : vector<8x128xi32>
      %31 = arith.extui %30 : vector<8x128xi1> to vector<8x128xi32>
      %32 = arith.sitofp %31 : vector<8x128xi32> to vector<8x128xf32>
      %33 = vector.broadcast %24 : vector<1x128xf32> to vector<8x128xf32>
      %34 = arith.mulf %33, %32 : vector<8x128xf32>
      %c0_15 = arith.constant 0 : index
      %c0_16 = arith.constant 0 : index
      %35 = vector.load %arg7[%c0_15, %c0_16] : memref<8x128xf32, #tpu.memory_space<vmem>>, vector<8x128xf32>
      tpu.vector_store %arg7[%c0_15, %c0_16], %34 {strides = array<i32>} : memref<8x128xf32, #tpu.memory_space<vmem>>, vector<8x128xf32>,
      %36 = vector.broadcast %27 : vector<1x128xf32> to vector<8x128xf32>
      %37 = arith.mulf %36, %32 : vector<8x128xf32>
      %c0_17 = arith.constant 0 : index
      %c0_18 = arith.constant 0 : index
      %38 = vector.load %arg8[%c0_17, %c0_18] : memref<8x128xf32, #tpu.memory_space<vmem>>, vector<8x128xf32>
      tpu.vector_store %arg8[%c0_17, %c0_18], %37 {strides = array<i32>} : memref<8x128xf32, #tpu.memory_space<vmem>>, vector<8x128xf32>,
      %39 = arith.truncf %13 : vector<16x128xf32> to vector<16x128xbf16>
      %c0_19 = arith.constant 0 : index
      %c0_20 = arith.constant 0 : index
      %40 = vector.load %arg6[%c0_19, %c0_20] : memref<16x128xbf16, #tpu.memory_space<vmem>>, vector<16x128xbf16>
      tpu.vector_store %arg6[%c0_19, %c0_20], %39 {strides = array<i32>} : memref<16x128xbf16, #tpu.memory_space<vmem>>, vector<16x128xbf16>,
    } else {
    }
    return
  }
  func.func @transform_0(%arg0: i32, %arg1: i32, %arg2: i32) -> (i32, i32) {
    %c0_i32 = arith.constant 0 : i32
    return %arg1, %arg2 : i32, i32
  }
  func.func @transform_1(%arg0: i32, %arg1: i32, %arg2: i32) -> (i32, i32) {
    %c0_i32 = arith.constant 0 : i32
    %c0_i32_0 = arith.constant 0 : i32
    return %c0_i32, %arg0 : i32, i32
  }
  func.func @transform_2(%arg0: i32, %arg1: i32, %arg2: i32) -> (i32, i32) {
    %c0_i32 = arith.constant 0 : i32
    %c0_i32_0 = arith.constant 0 : i32
    return %c0_i32, %arg0 : i32, i32
  }
  func.func @transform_3(%arg0: i32, %arg1: i32, %arg2: i32) -> (i32, i32) {
    %c0_i32 = arith.constant 0 : i32
    return %arg1, %arg0 : i32, i32
  }
  func.func @transform_4(%arg0: i32, %arg1: i32, %arg2: i32) -> (i32, i32) {
    %c0_i32 = arith.constant 0 : i32
    return %arg1, %arg0 : i32, i32
  }
  func.func @transform_5(%arg0: i32, %arg1: i32, %arg2: i32) -> (i32, i32) {
    %c0_i32 = arith.constant 0 : i32
    return %arg1, %arg0 : i32, i32
  }
}

module attributes {stable_mosaic.version = 11 : i64} {
  func.func @_affine_act_kernel(%arg0: i32, %arg1: memref<8x128xbf16, #tpu.memory_space<vmem>>, %arg2: memref<1x128xf32, #tpu.memory_space<vmem>>, %arg3: memref<1x128xf32, #tpu.memory_space<vmem>>, %arg4: memref<8x128xf32, #tpu.memory_space<vmem>>) attributes {dimension_semantics = [#tpu.dimension_semantics<parallel>], iteration_bounds = array<i64: 1>, scalar_prefetch = 0 : i64, scratch_operands = 0 : i64, tpu.core_type = #tpu.core_type<tc>, window_params = [{transform_indices = @transform_0, window_bounds = array<i64: 8, 128>}, {pipeline_mode = #tpu.pipeline_mode<synchronous>, transform_indices = @transform_1, window_bounds = array<i64: 1, 128>}, {pipeline_mode = #tpu.pipeline_mode<synchronous>, transform_indices = @transform_2, window_bounds = array<i64: 1, 128>}, {transform_indices = @transform_3, window_bounds = array<i64: 8, 128>}]} {
    %c0 = arith.constant 0 : index
    %c0_0 = arith.constant 0 : index
    %0 = vector.load %arg1[%c0, %c0_0] : memref<8x128xbf16, #tpu.memory_space<vmem>>, vector<8x128xbf16>
    %1 = arith.extf %0 : vector<8x128xbf16> to vector<8x128xf32>
    %c0_1 = arith.constant 0 : index
    %c0_2 = arith.constant 0 : index
    %2 = vector.load %arg2[%c0_1, %c0_2] : memref<1x128xf32, #tpu.memory_space<vmem>>, vector<1x128xf32>
    %3 = vector.broadcast %2 : vector<1x128xf32> to vector<8x128xf32>
    %4 = arith.mulf %1, %3 : vector<8x128xf32>
    %c0_3 = arith.constant 0 : index
    %c0_4 = arith.constant 0 : index
    %5 = vector.load %arg3[%c0_3, %c0_4] : memref<1x128xf32, #tpu.memory_space<vmem>>, vector<1x128xf32>
    %6 = vector.broadcast %5 : vector<1x128xf32> to vector<8x128xf32>
    %7 = arith.addf %4, %6 : vector<8x128xf32>
    %cst = arith.constant 0.000000e+00 : f32
    %8 = vector.broadcast %cst : f32 to vector<8x128xf32>
    %9 = arith.cmpf oge, %7, %8 : vector<8x128xf32>
    %cst_5 = arith.constant 2.000000e-01 : f32
    %10 = vector.broadcast %cst_5 : f32 to vector<8x128xf32>
    %11 = arith.mulf %7, %10 : vector<8x128xf32>
    %12 = arith.select %9, %7, %11 : vector<8x128xi1>, vector<8x128xf32>
    %c0_6 = arith.constant 0 : index
    %c0_7 = arith.constant 0 : index
    %13 = vector.load %arg4[%c0_6, %c0_7] : memref<8x128xf32, #tpu.memory_space<vmem>>, vector<8x128xf32>
    tpu.vector_store %arg4[%c0_6, %c0_7], %12 {strides = array<i32>} : memref<8x128xf32, #tpu.memory_space<vmem>>, vector<8x128xf32>,
    return
  }
  func.func @transform_0(%arg0: i32) -> (i32, i32) {
    %c0_i32 = arith.constant 0 : i32
    %c0_i32_0 = arith.constant 0 : i32
    return %arg0, %c0_i32 : i32, i32
  }
  func.func @transform_1(%arg0: i32) -> (i32, i32) {
    %c0_i32 = arith.constant 0 : i32
    %c0_i32_0 = arith.constant 0 : i32
    %c0_i32_1 = arith.constant 0 : i32
    return %c0_i32, %c0_i32_0 : i32, i32
  }
  func.func @transform_2(%arg0: i32) -> (i32, i32) {
    %c0_i32 = arith.constant 0 : i32
    %c0_i32_0 = arith.constant 0 : i32
    %c0_i32_1 = arith.constant 0 : i32
    return %c0_i32, %c0_i32_0 : i32, i32
  }
  func.func @transform_3(%arg0: i32) -> (i32, i32) {
    %c0_i32 = arith.constant 0 : i32
    %c0_i32_0 = arith.constant 0 : i32
    return %arg0, %c0_i32 : i32, i32
  }
}

module attributes {stable_mosaic.version = 11 : i64} {
  func.func @_conv_matmul_kernel(%arg0: i32, %arg1: i32, %arg2: i32, %arg3: memref<8x256xbf16, #tpu.memory_space<vmem>>, %arg4: memref<256x128xbf16, #tpu.memory_space<vmem>>, %arg5: memref<1x128xf32, #tpu.memory_space<vmem>>, %arg6: memref<8x128xbf16, #tpu.memory_space<vmem>>, %arg7: memref<8x128xf32, #tpu.memory_space<vmem>>, %arg8: memref<8x128xf32, #tpu.memory_space<vmem>>, %arg9: memref<8x128xf32, #tpu.memory_space<vmem>>) attributes {dimension_semantics = [#tpu.dimension_semantics<parallel>, #tpu.dimension_semantics<parallel>, #tpu.dimension_semantics<arbitrary>], iteration_bounds = array<i64: 1, 1, 1>, scalar_prefetch = 0 : i64, scratch_operands = 1 : i64, tpu.core_type = #tpu.core_type<tc>, window_params = [{transform_indices = @transform_0, window_bounds = array<i64: 8, 256>}, {transform_indices = @transform_1, window_bounds = array<i64: 256, 128>}, {transform_indices = @transform_2, window_bounds = array<i64: 1, 128>}, {transform_indices = @transform_3, window_bounds = array<i64: 8, 128>}, {transform_indices = @transform_4, window_bounds = array<i64: 8, 128>}, {transform_indices = @transform_5, window_bounds = array<i64: 8, 128>}]} {
    %c8_i32 = arith.constant 8 : i32
    %0 = arith.muli %arg1, %c8_i32 : i32
    %c0_i32 = arith.constant 0 : i32
    %1 = arith.cmpi eq, %arg2, %c0_i32 : i32
    %2 = arith.extui %1 : i1 to i32
    %c0_i32_0 = arith.constant 0 : i32
    %3 = arith.cmpi ne, %2, %c0_i32_0 : i32
    scf.if %3 {
      %c0_10 = arith.constant 0 : index
      %c0_11 = arith.constant 0 : index
      %13 = vector.load %arg5[%c0_10, %c0_11] : memref<1x128xf32, #tpu.memory_space<vmem>>, vector<1x128xf32>
      %14 = vector.shape_cast %13 : vector<1x128xf32> to vector<1x128xf32>
      %15 = vector.broadcast %14 : vector<1x128xf32> to vector<8x128xf32>
      %c0_12 = arith.constant 0 : index
      %c0_13 = arith.constant 0 : index
      %16 = vector.load %arg9[%c0_12, %c0_13] : memref<8x128xf32, #tpu.memory_space<vmem>>, vector<8x128xf32>
      tpu.vector_store %arg9[%c0_12, %c0_13], %15 {strides = array<i32>} : memref<8x128xf32, #tpu.memory_space<vmem>>, vector<8x128xf32>,
    } else {
    }
    %c0 = arith.constant 0 : index
    %c0_1 = arith.constant 0 : index
    %4 = vector.load %arg4[%c0, %c0_1] : memref<256x128xbf16, #tpu.memory_space<vmem>>, vector<256x128xbf16>
    %c0_2 = arith.constant 0 : index
    %c0_3 = arith.constant 0 : index
    %5 = vector.load %arg9[%c0_2, %c0_3] : memref<8x128xf32, #tpu.memory_space<vmem>>, vector<8x128xf32>
    %c0_4 = arith.constant 0 : index
    %c0_5 = arith.constant 0 : index
    %6 = vector.load %arg3[%c0_4, %c0_5] : memref<8x256xbf16, #tpu.memory_space<vmem>>, vector<8x256xbf16>
    %cst = arith.constant dense<0.000000e+00> : vector<8x128xf32>
    %7 = tpu.matmul %6, %4, %cst {dimension_numbers = #tpu.dot_dimension_numbers<[1], [0], [0], [1], [0, 0, 1, 1], [], []>} : vector<8x256xbf16>, vector<256x128xbf16>, vector<8x128xf32> -> vector<8x128xf32>
    %8 = arith.addf %5, %7 : vector<8x128xf32>
    %c0_6 = arith.constant 0 : index
    %c0_7 = arith.constant 0 : index
    %9 = vector.load %arg9[%c0_6, %c0_7] : memref<8x128xf32, #tpu.memory_space<vmem>>, vector<8x128xf32>
    tpu.vector_store %arg9[%c0_6, %c0_7], %8 {strides = array<i32>} : memref<8x128xf32, #tpu.memory_space<vmem>>, vector<8x128xf32>,
    %c0_i32_8 = arith.constant 0 : i32
    %10 = arith.cmpi eq, %arg2, %c0_i32_8 : i32
    %11 = arith.extui %10 : i1 to i32
    %c0_i32_9 = arith.constant 0 : i32
    %12 = arith.cmpi ne, %11, %c0_i32_9 : i32
    scf.if %12 {
      %c0_10 = arith.constant 0 : index
      %c0_11 = arith.constant 0 : index
      %13 = vector.load %arg9[%c0_10, %c0_11] : memref<8x128xf32, #tpu.memory_space<vmem>>, vector<8x128xf32>
      %14 = tpu.iota {dimensions = array<i32: 0>} : vector<8x1xi32>
      %15 = vector.broadcast %0 : i32 to vector<8x1xi32>
      %16 = arith.addi %15, %14 : vector<8x1xi32>
      %c8_i32_12 = arith.constant 8 : i32
      %17 = vector.broadcast %c8_i32_12 : i32 to vector<8x1xi32>
      %18 = arith.cmpi slt, %16, %17 : vector<8x1xi32>
      %19 = arith.extui %18 : vector<8x1xi1> to vector<8x1xi32>
      %20 = arith.sitofp %19 : vector<8x1xi32> to vector<8x1xf32>
      %21 = vector.broadcast %20 : vector<8x1xf32> to vector<8x128xf32>
      %22 = arith.mulf %13, %21 : vector<8x128xf32>
      %cst_13 = arith.constant dense<0.000000e+00> : vector<128xf32>
      %23 = vector.multi_reduction <add>, %22, %cst_13 [0] : vector<8x128xf32> to vector<128xf32>
      %24 = vector.shape_cast %23 : vector<128xf32> to vector<1x128xf32>
      %25 = arith.mulf %22, %22 : vector<8x128xf32>
      %cst_14 = arith.constant dense<0.000000e+00> : vector<128xf32>
      %26 = vector.multi_reduction <add>, %25, %cst_14 [0] : vector<8x128xf32> to vector<128xf32>
      %27 = vector.shape_cast %26 : vector<128xf32> to vector<1x128xf32>
      %28 = tpu.iota {dimensions = array<i32: 0>} : vector<8x128xi32>
      %c0_i32_15 = arith.constant 0 : i32
      %29 = vector.broadcast %c0_i32_15 : i32 to vector<8x128xi32>
      %30 = arith.cmpi eq, %28, %29 : vector<8x128xi32>
      %31 = arith.extui %30 : vector<8x128xi1> to vector<8x128xi32>
      %32 = arith.sitofp %31 : vector<8x128xi32> to vector<8x128xf32>
      %33 = vector.broadcast %24 : vector<1x128xf32> to vector<8x128xf32>
      %34 = arith.mulf %33, %32 : vector<8x128xf32>
      %c0_16 = arith.constant 0 : index
      %c0_17 = arith.constant 0 : index
      %35 = vector.load %arg7[%c0_16, %c0_17] : memref<8x128xf32, #tpu.memory_space<vmem>>, vector<8x128xf32>
      tpu.vector_store %arg7[%c0_16, %c0_17], %34 {strides = array<i32>} : memref<8x128xf32, #tpu.memory_space<vmem>>, vector<8x128xf32>,
      %36 = vector.broadcast %27 : vector<1x128xf32> to vector<8x128xf32>
      %37 = arith.mulf %36, %32 : vector<8x128xf32>
      %c0_18 = arith.constant 0 : index
      %c0_19 = arith.constant 0 : index
      %38 = vector.load %arg8[%c0_18, %c0_19] : memref<8x128xf32, #tpu.memory_space<vmem>>, vector<8x128xf32>
      tpu.vector_store %arg8[%c0_18, %c0_19], %37 {strides = array<i32>} : memref<8x128xf32, #tpu.memory_space<vmem>>, vector<8x128xf32>,
      %39 = arith.truncf %13 : vector<8x128xf32> to vector<8x128xbf16>
      %c0_20 = arith.constant 0 : index
      %c0_21 = arith.constant 0 : index
      %40 = vector.load %arg6[%c0_20, %c0_21] : memref<8x128xbf16, #tpu.memory_space<vmem>>, vector<8x128xbf16>
      tpu.vector_store %arg6[%c0_20, %c0_21], %39 {strides = array<i32>} : memref<8x128xbf16, #tpu.memory_space<vmem>>, vector<8x128xbf16>,
    } else {
    }
    return
  }
  func.func @transform_0(%arg0: i32, %arg1: i32, %arg2: i32) -> (i32, i32) {
    %c0_i32 = arith.constant 0 : i32
    return %arg1, %arg2 : i32, i32
  }
  func.func @transform_1(%arg0: i32, %arg1: i32, %arg2: i32) -> (i32, i32) {
    %c0_i32 = arith.constant 0 : i32
    %c0_i32_0 = arith.constant 0 : i32
    return %c0_i32, %arg0 : i32, i32
  }
  func.func @transform_2(%arg0: i32, %arg1: i32, %arg2: i32) -> (i32, i32) {
    %c0_i32 = arith.constant 0 : i32
    %c0_i32_0 = arith.constant 0 : i32
    return %c0_i32, %arg0 : i32, i32
  }
  func.func @transform_3(%arg0: i32, %arg1: i32, %arg2: i32) -> (i32, i32) {
    %c0_i32 = arith.constant 0 : i32
    return %arg1, %arg0 : i32, i32
  }
  func.func @transform_4(%arg0: i32, %arg1: i32, %arg2: i32) -> (i32, i32) {
    %c0_i32 = arith.constant 0 : i32
    return %arg1, %arg0 : i32, i32
  }
  func.func @transform_5(%arg0: i32, %arg1: i32, %arg2: i32) -> (i32, i32) {
    %c0_i32 = arith.constant 0 : i32
    return %arg1, %arg0 : i32, i32
  }
}

module attributes {stable_mosaic.version = 11 : i64} {
  func.func @_conv_matmul_kernel(%arg0: i32, %arg1: i32, %arg2: i32, %arg3: memref<16x512xbf16, #tpu.memory_space<vmem>>, %arg4: memref<512x128xbf16, #tpu.memory_space<vmem>>, %arg5: memref<1x128xf32, #tpu.memory_space<vmem>>, %arg6: memref<16x128xbf16, #tpu.memory_space<vmem>>, %arg7: memref<8x128xf32, #tpu.memory_space<vmem>>, %arg8: memref<8x128xf32, #tpu.memory_space<vmem>>, %arg9: memref<16x128xf32, #tpu.memory_space<vmem>>) attributes {dimension_semantics = [#tpu.dimension_semantics<parallel>, #tpu.dimension_semantics<parallel>, #tpu.dimension_semantics<arbitrary>], iteration_bounds = array<i64: 1, 2, 1>, scalar_prefetch = 0 : i64, scratch_operands = 1 : i64, tpu.core_type = #tpu.core_type<tc>, window_params = [{transform_indices = @transform_0, window_bounds = array<i64: 16, 512>}, {transform_indices = @transform_1, window_bounds = array<i64: 512, 128>}, {transform_indices = @transform_2, window_bounds = array<i64: 1, 128>}, {transform_indices = @transform_3, window_bounds = array<i64: 16, 128>}, {transform_indices = @transform_4, window_bounds = array<i64: 8, 128>}, {transform_indices = @transform_5, window_bounds = array<i64: 8, 128>}]} {
    %c16_i32 = arith.constant 16 : i32
    %0 = arith.muli %arg1, %c16_i32 : i32
    %c0_i32 = arith.constant 0 : i32
    %1 = arith.cmpi eq, %arg2, %c0_i32 : i32
    %2 = arith.extui %1 : i1 to i32
    %c0_i32_0 = arith.constant 0 : i32
    %3 = arith.cmpi ne, %2, %c0_i32_0 : i32
    scf.if %3 {
      %c0_10 = arith.constant 0 : index
      %c0_11 = arith.constant 0 : index
      %13 = vector.load %arg5[%c0_10, %c0_11] : memref<1x128xf32, #tpu.memory_space<vmem>>, vector<1x128xf32>
      %14 = vector.shape_cast %13 : vector<1x128xf32> to vector<1x128xf32>
      %15 = vector.broadcast %14 : vector<1x128xf32> to vector<16x128xf32>
      %c0_12 = arith.constant 0 : index
      %c0_13 = arith.constant 0 : index
      %16 = vector.load %arg9[%c0_12, %c0_13] : memref<16x128xf32, #tpu.memory_space<vmem>>, vector<16x128xf32>
      tpu.vector_store %arg9[%c0_12, %c0_13], %15 {strides = array<i32>} : memref<16x128xf32, #tpu.memory_space<vmem>>, vector<16x128xf32>,
    } else {
    }
    %c0 = arith.constant 0 : index
    %c0_1 = arith.constant 0 : index
    %4 = vector.load %arg4[%c0, %c0_1] : memref<512x128xbf16, #tpu.memory_space<vmem>>, vector<512x128xbf16>
    %c0_2 = arith.constant 0 : index
    %c0_3 = arith.constant 0 : index
    %5 = vector.load %arg9[%c0_2, %c0_3] : memref<16x128xf32, #tpu.memory_space<vmem>>, vector<16x128xf32>
    %c0_4 = arith.constant 0 : index
    %c0_5 = arith.constant 0 : index
    %6 = vector.load %arg3[%c0_4, %c0_5] : memref<16x512xbf16, #tpu.memory_space<vmem>>, vector<16x512xbf16>
    %cst = arith.constant dense<0.000000e+00> : vector<16x128xf32>
    %7 = tpu.matmul %6, %4, %cst {dimension_numbers = #tpu.dot_dimension_numbers<[1], [0], [0], [1], [0, 0, 1, 1], [], []>} : vector<16x512xbf16>, vector<512x128xbf16>, vector<16x128xf32> -> vector<16x128xf32>
    %8 = arith.addf %5, %7 : vector<16x128xf32>
    %c0_6 = arith.constant 0 : index
    %c0_7 = arith.constant 0 : index
    %9 = vector.load %arg9[%c0_6, %c0_7] : memref<16x128xf32, #tpu.memory_space<vmem>>, vector<16x128xf32>
    tpu.vector_store %arg9[%c0_6, %c0_7], %8 {strides = array<i32>} : memref<16x128xf32, #tpu.memory_space<vmem>>, vector<16x128xf32>,
    %c0_i32_8 = arith.constant 0 : i32
    %10 = arith.cmpi eq, %arg2, %c0_i32_8 : i32
    %11 = arith.extui %10 : i1 to i32
    %c0_i32_9 = arith.constant 0 : i32
    %12 = arith.cmpi ne, %11, %c0_i32_9 : i32
    scf.if %12 {
      %c0_10 = arith.constant 0 : index
      %c0_11 = arith.constant 0 : index
      %13 = vector.load %arg9[%c0_10, %c0_11] : memref<16x128xf32, #tpu.memory_space<vmem>>, vector<16x128xf32>
      %14 = tpu.iota {dimensions = array<i32: 0>} : vector<16x1xi32>
      %15 = vector.broadcast %0 : i32 to vector<16x1xi32>
      %16 = arith.addi %15, %14 : vector<16x1xi32>
      %c18_i32 = arith.constant 18 : i32
      %17 = vector.broadcast %c18_i32 : i32 to vector<16x1xi32>
      %18 = arith.cmpi slt, %16, %17 : vector<16x1xi32>
      %19 = arith.extui %18 : vector<16x1xi1> to vector<16x1xi32>
      %20 = arith.sitofp %19 : vector<16x1xi32> to vector<16x1xf32>
      %21 = vector.broadcast %20 : vector<16x1xf32> to vector<16x128xf32>
      %22 = arith.mulf %13, %21 : vector<16x128xf32>
      %cst_12 = arith.constant dense<0.000000e+00> : vector<128xf32>
      %23 = vector.multi_reduction <add>, %22, %cst_12 [0] : vector<16x128xf32> to vector<128xf32>
      %24 = vector.shape_cast %23 : vector<128xf32> to vector<1x128xf32>
      %25 = arith.mulf %22, %22 : vector<16x128xf32>
      %cst_13 = arith.constant dense<0.000000e+00> : vector<128xf32>
      %26 = vector.multi_reduction <add>, %25, %cst_13 [0] : vector<16x128xf32> to vector<128xf32>
      %27 = vector.shape_cast %26 : vector<128xf32> to vector<1x128xf32>
      %28 = tpu.iota {dimensions = array<i32: 0>} : vector<8x128xi32>
      %c0_i32_14 = arith.constant 0 : i32
      %29 = vector.broadcast %c0_i32_14 : i32 to vector<8x128xi32>
      %30 = arith.cmpi eq, %28, %29 : vector<8x128xi32>
      %31 = arith.extui %30 : vector<8x128xi1> to vector<8x128xi32>
      %32 = arith.sitofp %31 : vector<8x128xi32> to vector<8x128xf32>
      %33 = vector.broadcast %24 : vector<1x128xf32> to vector<8x128xf32>
      %34 = arith.mulf %33, %32 : vector<8x128xf32>
      %c0_15 = arith.constant 0 : index
      %c0_16 = arith.constant 0 : index
      %35 = vector.load %arg7[%c0_15, %c0_16] : memref<8x128xf32, #tpu.memory_space<vmem>>, vector<8x128xf32>
      tpu.vector_store %arg7[%c0_15, %c0_16], %34 {strides = array<i32>} : memref<8x128xf32, #tpu.memory_space<vmem>>, vector<8x128xf32>,
      %36 = vector.broadcast %27 : vector<1x128xf32> to vector<8x128xf32>
      %37 = arith.mulf %36, %32 : vector<8x128xf32>
      %c0_17 = arith.constant 0 : index
      %c0_18 = arith.constant 0 : index
      %38 = vector.load %arg8[%c0_17, %c0_18] : memref<8x128xf32, #tpu.memory_space<vmem>>, vector<8x128xf32>
      tpu.vector_store %arg8[%c0_17, %c0_18], %37 {strides = array<i32>} : memref<8x128xf32, #tpu.memory_space<vmem>>, vector<8x128xf32>,
      %39 = arith.truncf %13 : vector<16x128xf32> to vector<16x128xbf16>
      %c0_19 = arith.constant 0 : index
      %c0_20 = arith.constant 0 : index
      %40 = vector.load %arg6[%c0_19, %c0_20] : memref<16x128xbf16, #tpu.memory_space<vmem>>, vector<16x128xbf16>
      tpu.vector_store %arg6[%c0_19, %c0_20], %39 {strides = array<i32>} : memref<16x128xbf16, #tpu.memory_space<vmem>>, vector<16x128xbf16>,
    } else {
    }
    return
  }
  func.func @transform_0(%arg0: i32, %arg1: i32, %arg2: i32) -> (i32, i32) {
    %c0_i32 = arith.constant 0 : i32
    return %arg1, %arg2 : i32, i32
  }
  func.func @transform_1(%arg0: i32, %arg1: i32, %arg2: i32) -> (i32, i32) {
    %c0_i32 = arith.constant 0 : i32
    %c0_i32_0 = arith.constant 0 : i32
    return %c0_i32, %arg0 : i32, i32
  }
  func.func @transform_2(%arg0: i32, %arg1: i32, %arg2: i32) -> (i32, i32) {
    %c0_i32 = arith.constant 0 : i32
    %c0_i32_0 = arith.constant 0 : i32
    return %c0_i32, %arg0 : i32, i32
  }
  func.func @transform_3(%arg0: i32, %arg1: i32, %arg2: i32) -> (i32, i32) {
    %c0_i32 = arith.constant 0 : i32
    return %arg1, %arg0 : i32, i32
  }
  func.func @transform_4(%arg0: i32, %arg1: i32, %arg2: i32) -> (i32, i32) {
    %c0_i32 = arith.constant 0 : i32
    return %arg1, %arg0 : i32, i32
  }
  func.func @transform_5(%arg0: i32, %arg1: i32, %arg2: i32) -> (i32, i32) {
    %c0_i32 = arith.constant 0 : i32
    return %arg1, %arg0 : i32, i32
  }
}

module attributes {stable_mosaic.version = 11 : i64} {
  func.func @_conv_matmul_kernel(%arg0: i32, %arg1: i32, %arg2: i32, %arg3: memref<16x1024xbf16, #tpu.memory_space<vmem>>, %arg4: memref<1024x128xbf16, #tpu.memory_space<vmem>>, %arg5: memref<1x128xf32, #tpu.memory_space<vmem>>, %arg6: memref<16x128xf32, #tpu.memory_space<vmem>>, %arg7: memref<16x128xf32, #tpu.memory_space<vmem>>) attributes {dimension_semantics = [#tpu.dimension_semantics<parallel>, #tpu.dimension_semantics<parallel>, #tpu.dimension_semantics<arbitrary>], iteration_bounds = array<i64: 1, 2, 1>, scalar_prefetch = 0 : i64, scratch_operands = 1 : i64, tpu.core_type = #tpu.core_type<tc>, window_params = [{transform_indices = @transform_0, window_bounds = array<i64: 16, 1024>}, {transform_indices = @transform_1, window_bounds = array<i64: 1024, 128>}, {transform_indices = @transform_2, window_bounds = array<i64: 1, 128>}, {transform_indices = @transform_3, window_bounds = array<i64: 16, 128>}]} {
    %c0_i32 = arith.constant 0 : i32
    %0 = arith.cmpi eq, %arg2, %c0_i32 : i32
    %1 = arith.extui %0 : i1 to i32
    %c0_i32_0 = arith.constant 0 : i32
    %2 = arith.cmpi ne, %1, %c0_i32_0 : i32
    scf.if %2 {
      %c0_10 = arith.constant 0 : index
      %c0_11 = arith.constant 0 : index
      %12 = vector.load %arg5[%c0_10, %c0_11] : memref<1x128xf32, #tpu.memory_space<vmem>>, vector<1x128xf32>
      %13 = vector.shape_cast %12 : vector<1x128xf32> to vector<1x128xf32>
      %14 = vector.broadcast %13 : vector<1x128xf32> to vector<16x128xf32>
      %c0_12 = arith.constant 0 : index
      %c0_13 = arith.constant 0 : index
      %15 = vector.load %arg7[%c0_12, %c0_13] : memref<16x128xf32, #tpu.memory_space<vmem>>, vector<16x128xf32>
      tpu.vector_store %arg7[%c0_12, %c0_13], %14 {strides = array<i32>} : memref<16x128xf32, #tpu.memory_space<vmem>>, vector<16x128xf32>,
    } else {
    }
    %c0 = arith.constant 0 : index
    %c0_1 = arith.constant 0 : index
    %3 = vector.load %arg4[%c0, %c0_1] : memref<1024x128xbf16, #tpu.memory_space<vmem>>, vector<1024x128xbf16>
    %c0_2 = arith.constant 0 : index
    %c0_3 = arith.constant 0 : index
    %4 = vector.load %arg7[%c0_2, %c0_3] : memref<16x128xf32, #tpu.memory_space<vmem>>, vector<16x128xf32>
    %c0_4 = arith.constant 0 : index
    %c0_5 = arith.constant 0 : index
    %5 = vector.load %arg3[%c0_4, %c0_5] : memref<16x1024xbf16, #tpu.memory_space<vmem>>, vector<16x1024xbf16>
    %cst = arith.constant dense<0.000000e+00> : vector<16x128xf32>
    %6 = tpu.matmul %5, %3, %cst {dimension_numbers = #tpu.dot_dimension_numbers<[1], [0], [0], [1], [0, 0, 1, 1], [], []>} : vector<16x1024xbf16>, vector<1024x128xbf16>, vector<16x128xf32> -> vector<16x128xf32>
    %7 = arith.addf %4, %6 : vector<16x128xf32>
    %c0_6 = arith.constant 0 : index
    %c0_7 = arith.constant 0 : index
    %8 = vector.load %arg7[%c0_6, %c0_7] : memref<16x128xf32, #tpu.memory_space<vmem>>, vector<16x128xf32>
    tpu.vector_store %arg7[%c0_6, %c0_7], %7 {strides = array<i32>} : memref<16x128xf32, #tpu.memory_space<vmem>>, vector<16x128xf32>,
    %c0_i32_8 = arith.constant 0 : i32
    %9 = arith.cmpi eq, %arg2, %c0_i32_8 : i32
    %10 = arith.extui %9 : i1 to i32
    %c0_i32_9 = arith.constant 0 : i32
    %11 = arith.cmpi ne, %10, %c0_i32_9 : i32
    scf.if %11 {
      %c0_10 = arith.constant 0 : index
      %c0_11 = arith.constant 0 : index
      %12 = vector.load %arg7[%c0_10, %c0_11] : memref<16x128xf32, #tpu.memory_space<vmem>>, vector<16x128xf32>
      %c0_12 = arith.constant 0 : index
      %c0_13 = arith.constant 0 : index
      %13 = vector.load %arg6[%c0_12, %c0_13] : memref<16x128xf32, #tpu.memory_space<vmem>>, vector<16x128xf32>
      tpu.vector_store %arg6[%c0_12, %c0_13], %12 {strides = array<i32>} : memref<16x128xf32, #tpu.memory_space<vmem>>, vector<16x128xf32>,
    } else {
    }
    return
  }
  func.func @transform_0(%arg0: i32, %arg1: i32, %arg2: i32) -> (i32, i32) {
    %c0_i32 = arith.constant 0 : i32
    return %arg1, %arg2 : i32, i32
  }
  func.func @transform_1(%arg0: i32, %arg1: i32, %arg2: i32) -> (i32, i32) {
    %c0_i32 = arith.constant 0 : i32
    %c0_i32_0 = arith.constant 0 : i32
    return %c0_i32, %arg0 : i32, i32
  }
  func.func @transform_2(%arg0: i32, %arg1: i32, %arg2: i32) -> (i32, i32) {
    %c0_i32 = arith.constant 0 : i32
    %c0_i32_0 = arith.constant 0 : i32
    return %c0_i32, %arg0 : i32, i32
  }
  func.func @transform_3(%arg0: i32, %arg1: i32, %arg2: i32) -> (i32, i32) {
    %c0_i32 = arith.constant 0 : i32
    return %arg1, %arg0 : i32, i32
  }
}

module attributes {stable_mosaic.version = 11 : i64} {
  func.func @_conv_matmul_kernel(%arg0: i32, %arg1: i32, %arg2: i32, %arg3: memref<16x128xbf16, #tpu.memory_space<vmem>>, %arg4: memref<128x128xbf16, #tpu.memory_space<vmem>>, %arg5: memref<1x128xf32, #tpu.memory_space<vmem>>, %arg6: memref<16x128xf32, #tpu.memory_space<vmem>>, %arg7: memref<16x128xf32, #tpu.memory_space<vmem>>) attributes {dimension_semantics = [#tpu.dimension_semantics<parallel>, #tpu.dimension_semantics<parallel>, #tpu.dimension_semantics<arbitrary>], iteration_bounds = array<i64: 1, 2, 1>, scalar_prefetch = 0 : i64, scratch_operands = 1 : i64, tpu.core_type = #tpu.core_type<tc>, window_params = [{transform_indices = @transform_0, window_bounds = array<i64: 16, 128>}, {transform_indices = @transform_1, window_bounds = array<i64: 128, 128>}, {transform_indices = @transform_2, window_bounds = array<i64: 1, 128>}, {transform_indices = @transform_3, window_bounds = array<i64: 16, 128>}]} {
    %c0_i32 = arith.constant 0 : i32
    %0 = arith.cmpi eq, %arg2, %c0_i32 : i32
    %1 = arith.extui %0 : i1 to i32
    %c0_i32_0 = arith.constant 0 : i32
    %2 = arith.cmpi ne, %1, %c0_i32_0 : i32
    scf.if %2 {
      %c0_10 = arith.constant 0 : index
      %c0_11 = arith.constant 0 : index
      %12 = vector.load %arg5[%c0_10, %c0_11] : memref<1x128xf32, #tpu.memory_space<vmem>>, vector<1x128xf32>
      %13 = vector.shape_cast %12 : vector<1x128xf32> to vector<1x128xf32>
      %14 = vector.broadcast %13 : vector<1x128xf32> to vector<16x128xf32>
      %c0_12 = arith.constant 0 : index
      %c0_13 = arith.constant 0 : index
      %15 = vector.load %arg7[%c0_12, %c0_13] : memref<16x128xf32, #tpu.memory_space<vmem>>, vector<16x128xf32>
      tpu.vector_store %arg7[%c0_12, %c0_13], %14 {strides = array<i32>} : memref<16x128xf32, #tpu.memory_space<vmem>>, vector<16x128xf32>,
    } else {
    }
    %c0 = arith.constant 0 : index
    %c0_1 = arith.constant 0 : index
    %3 = vector.load %arg4[%c0, %c0_1] : memref<128x128xbf16, #tpu.memory_space<vmem>>, vector<128x128xbf16>
    %c0_2 = arith.constant 0 : index
    %c0_3 = arith.constant 0 : index
    %4 = vector.load %arg7[%c0_2, %c0_3] : memref<16x128xf32, #tpu.memory_space<vmem>>, vector<16x128xf32>
    %c0_4 = arith.constant 0 : index
    %c0_5 = arith.constant 0 : index
    %5 = vector.load %arg3[%c0_4, %c0_5] : memref<16x128xbf16, #tpu.memory_space<vmem>>, vector<16x128xbf16>
    %cst = arith.constant dense<0.000000e+00> : vector<16x128xf32>
    %6 = tpu.matmul %5, %3, %cst {dimension_numbers = #tpu.dot_dimension_numbers<[1], [0], [0], [1], [0, 0, 1, 1], [], []>} : vector<16x128xbf16>, vector<128x128xbf16>, vector<16x128xf32> -> vector<16x128xf32>
    %7 = arith.addf %4, %6 : vector<16x128xf32>
    %c0_6 = arith.constant 0 : index
    %c0_7 = arith.constant 0 : index
    %8 = vector.load %arg7[%c0_6, %c0_7] : memref<16x128xf32, #tpu.memory_space<vmem>>, vector<16x128xf32>
    tpu.vector_store %arg7[%c0_6, %c0_7], %7 {strides = array<i32>} : memref<16x128xf32, #tpu.memory_space<vmem>>, vector<16x128xf32>,
    %c0_i32_8 = arith.constant 0 : i32
    %9 = arith.cmpi eq, %arg2, %c0_i32_8 : i32
    %10 = arith.extui %9 : i1 to i32
    %c0_i32_9 = arith.constant 0 : i32
    %11 = arith.cmpi ne, %10, %c0_i32_9 : i32
    scf.if %11 {
      %c0_10 = arith.constant 0 : index
      %c0_11 = arith.constant 0 : index
      %12 = vector.load %arg7[%c0_10, %c0_11] : memref<16x128xf32, #tpu.memory_space<vmem>>, vector<16x128xf32>
      %cst_12 = arith.constant 0.000000e+00 : f32
      %13 = vector.broadcast %cst_12 : f32 to vector<16x128xf32>
      %14 = arith.cmpf oge, %12, %13 : vector<16x128xf32>
      %cst_13 = arith.constant 2.000000e-01 : f32
      %15 = vector.broadcast %cst_13 : f32 to vector<16x128xf32>
      %16 = arith.mulf %12, %15 : vector<16x128xf32>
      %17 = arith.select %14, %12, %16 : vector<16x128xi1>, vector<16x128xf32>
      %c0_14 = arith.constant 0 : index
      %c0_15 = arith.constant 0 : index
      %18 = vector.load %arg6[%c0_14, %c0_15] : memref<16x128xf32, #tpu.memory_space<vmem>>, vector<16x128xf32>
      tpu.vector_store %arg6[%c0_14, %c0_15], %17 {strides = array<i32>} : memref<16x128xf32, #tpu.memory_space<vmem>>, vector<16x128xf32>,
    } else {
    }
    return
  }
  func.func @transform_0(%arg0: i32, %arg1: i32, %arg2: i32) -> (i32, i32) {
    %c0_i32 = arith.constant 0 : i32
    return %arg1, %arg2 : i32, i32
  }
  func.func @transform_1(%arg0: i32, %arg1: i32, %arg2: i32) -> (i32, i32) {
    %c0_i32 = arith.constant 0 : i32
    %c0_i32_0 = arith.constant 0 : i32
    return %c0_i32, %arg0 : i32, i32
  }
  func.func @transform_2(%arg0: i32, %arg1: i32, %arg2: i32) -> (i32, i32) {
    %c0_i32 = arith.constant 0 : i32
    %c0_i32_0 = arith.constant 0 : i32
    return %c0_i32, %arg0 : i32, i32
  }
  func.func @transform_3(%arg0: i32, %arg1: i32, %arg2: i32) -> (i32, i32) {
    %c0_i32 = arith.constant 0 : i32
    return %arg1, %arg0 : i32, i32
  }
}

module attributes {stable_mosaic.version = 11 : i64} {
  func.func @_conv_matmul_kernel(%arg0: i32, %arg1: i32, %arg2: i32, %arg3: memref<8x128xbf16, #tpu.memory_space<vmem>>, %arg4: memref<128x128xbf16, #tpu.memory_space<vmem>>, %arg5: memref<1x128xf32, #tpu.memory_space<vmem>>, %arg6: memref<8x128xbf16, #tpu.memory_space<vmem>>, %arg7: memref<8x128xf32, #tpu.memory_space<vmem>>, %arg8: memref<8x128xf32, #tpu.memory_space<vmem>>, %arg9: memref<8x128xf32, #tpu.memory_space<vmem>>) attributes {dimension_semantics = [#tpu.dimension_semantics<parallel>, #tpu.dimension_semantics<parallel>, #tpu.dimension_semantics<arbitrary>], iteration_bounds = array<i64: 1, 1, 1>, scalar_prefetch = 0 : i64, scratch_operands = 1 : i64, tpu.core_type = #tpu.core_type<tc>, window_params = [{transform_indices = @transform_0, window_bounds = array<i64: 8, 128>}, {transform_indices = @transform_1, window_bounds = array<i64: 128, 128>}, {transform_indices = @transform_2, window_bounds = array<i64: 1, 128>}, {transform_indices = @transform_3, window_bounds = array<i64: 8, 128>}, {transform_indices = @transform_4, window_bounds = array<i64: 8, 128>}, {transform_indices = @transform_5, window_bounds = array<i64: 8, 128>}]} {
    %c8_i32 = arith.constant 8 : i32
    %0 = arith.muli %arg1, %c8_i32 : i32
    %c0_i32 = arith.constant 0 : i32
    %1 = arith.cmpi eq, %arg2, %c0_i32 : i32
    %2 = arith.extui %1 : i1 to i32
    %c0_i32_0 = arith.constant 0 : i32
    %3 = arith.cmpi ne, %2, %c0_i32_0 : i32
    scf.if %3 {
      %c0_10 = arith.constant 0 : index
      %c0_11 = arith.constant 0 : index
      %13 = vector.load %arg5[%c0_10, %c0_11] : memref<1x128xf32, #tpu.memory_space<vmem>>, vector<1x128xf32>
      %14 = vector.shape_cast %13 : vector<1x128xf32> to vector<1x128xf32>
      %15 = vector.broadcast %14 : vector<1x128xf32> to vector<8x128xf32>
      %c0_12 = arith.constant 0 : index
      %c0_13 = arith.constant 0 : index
      %16 = vector.load %arg9[%c0_12, %c0_13] : memref<8x128xf32, #tpu.memory_space<vmem>>, vector<8x128xf32>
      tpu.vector_store %arg9[%c0_12, %c0_13], %15 {strides = array<i32>} : memref<8x128xf32, #tpu.memory_space<vmem>>, vector<8x128xf32>,
    } else {
    }
    %c0 = arith.constant 0 : index
    %c0_1 = arith.constant 0 : index
    %4 = vector.load %arg4[%c0, %c0_1] : memref<128x128xbf16, #tpu.memory_space<vmem>>, vector<128x128xbf16>
    %c0_2 = arith.constant 0 : index
    %c0_3 = arith.constant 0 : index
    %5 = vector.load %arg9[%c0_2, %c0_3] : memref<8x128xf32, #tpu.memory_space<vmem>>, vector<8x128xf32>
    %c0_4 = arith.constant 0 : index
    %c0_5 = arith.constant 0 : index
    %6 = vector.load %arg3[%c0_4, %c0_5] : memref<8x128xbf16, #tpu.memory_space<vmem>>, vector<8x128xbf16>
    %cst = arith.constant dense<0.000000e+00> : vector<8x128xf32>
    %7 = tpu.matmul %6, %4, %cst {dimension_numbers = #tpu.dot_dimension_numbers<[1], [0], [0], [1], [0, 0, 1, 1], [], []>} : vector<8x128xbf16>, vector<128x128xbf16>, vector<8x128xf32> -> vector<8x128xf32>
    %8 = arith.addf %5, %7 : vector<8x128xf32>
    %c0_6 = arith.constant 0 : index
    %c0_7 = arith.constant 0 : index
    %9 = vector.load %arg9[%c0_6, %c0_7] : memref<8x128xf32, #tpu.memory_space<vmem>>, vector<8x128xf32>
    tpu.vector_store %arg9[%c0_6, %c0_7], %8 {strides = array<i32>} : memref<8x128xf32, #tpu.memory_space<vmem>>, vector<8x128xf32>,
    %c0_i32_8 = arith.constant 0 : i32
    %10 = arith.cmpi eq, %arg2, %c0_i32_8 : i32
    %11 = arith.extui %10 : i1 to i32
    %c0_i32_9 = arith.constant 0 : i32
    %12 = arith.cmpi ne, %11, %c0_i32_9 : i32
    scf.if %12 {
      %c0_10 = arith.constant 0 : index
      %c0_11 = arith.constant 0 : index
      %13 = vector.load %arg9[%c0_10, %c0_11] : memref<8x128xf32, #tpu.memory_space<vmem>>, vector<8x128xf32>
      %14 = tpu.iota {dimensions = array<i32: 0>} : vector<8x1xi32>
      %15 = vector.broadcast %0 : i32 to vector<8x1xi32>
      %16 = arith.addi %15, %14 : vector<8x1xi32>
      %c8_i32_12 = arith.constant 8 : i32
      %17 = vector.broadcast %c8_i32_12 : i32 to vector<8x1xi32>
      %18 = arith.cmpi slt, %16, %17 : vector<8x1xi32>
      %19 = arith.extui %18 : vector<8x1xi1> to vector<8x1xi32>
      %20 = arith.sitofp %19 : vector<8x1xi32> to vector<8x1xf32>
      %21 = vector.broadcast %20 : vector<8x1xf32> to vector<8x128xf32>
      %22 = arith.mulf %13, %21 : vector<8x128xf32>
      %cst_13 = arith.constant dense<0.000000e+00> : vector<128xf32>
      %23 = vector.multi_reduction <add>, %22, %cst_13 [0] : vector<8x128xf32> to vector<128xf32>
      %24 = vector.shape_cast %23 : vector<128xf32> to vector<1x128xf32>
      %25 = arith.mulf %22, %22 : vector<8x128xf32>
      %cst_14 = arith.constant dense<0.000000e+00> : vector<128xf32>
      %26 = vector.multi_reduction <add>, %25, %cst_14 [0] : vector<8x128xf32> to vector<128xf32>
      %27 = vector.shape_cast %26 : vector<128xf32> to vector<1x128xf32>
      %28 = tpu.iota {dimensions = array<i32: 0>} : vector<8x128xi32>
      %c0_i32_15 = arith.constant 0 : i32
      %29 = vector.broadcast %c0_i32_15 : i32 to vector<8x128xi32>
      %30 = arith.cmpi eq, %28, %29 : vector<8x128xi32>
      %31 = arith.extui %30 : vector<8x128xi1> to vector<8x128xi32>
      %32 = arith.sitofp %31 : vector<8x128xi32> to vector<8x128xf32>
      %33 = vector.broadcast %24 : vector<1x128xf32> to vector<8x128xf32>
      %34 = arith.mulf %33, %32 : vector<8x128xf32>
      %c0_16 = arith.constant 0 : index
      %c0_17 = arith.constant 0 : index
      %35 = vector.load %arg7[%c0_16, %c0_17] : memref<8x128xf32, #tpu.memory_space<vmem>>, vector<8x128xf32>
      tpu.vector_store %arg7[%c0_16, %c0_17], %34 {strides = array<i32>} : memref<8x128xf32, #tpu.memory_space<vmem>>, vector<8x128xf32>,
      %36 = vector.broadcast %27 : vector<1x128xf32> to vector<8x128xf32>
      %37 = arith.mulf %36, %32 : vector<8x128xf32>
      %c0_18 = arith.constant 0 : index
      %c0_19 = arith.constant 0 : index
      %38 = vector.load %arg8[%c0_18, %c0_19] : memref<8x128xf32, #tpu.memory_space<vmem>>, vector<8x128xf32>
      tpu.vector_store %arg8[%c0_18, %c0_19], %37 {strides = array<i32>} : memref<8x128xf32, #tpu.memory_space<vmem>>, vector<8x128xf32>,
      %39 = arith.truncf %13 : vector<8x128xf32> to vector<8x128xbf16>
      %c0_20 = arith.constant 0 : index
      %c0_21 = arith.constant 0 : index
      %40 = vector.load %arg6[%c0_20, %c0_21] : memref<8x128xbf16, #tpu.memory_space<vmem>>, vector<8x128xbf16>
      tpu.vector_store %arg6[%c0_20, %c0_21], %39 {strides = array<i32>} : memref<8x128xbf16, #tpu.memory_space<vmem>>, vector<8x128xbf16>,
    } else {
    }
    return
  }
  func.func @transform_0(%arg0: i32, %arg1: i32, %arg2: i32) -> (i32, i32) {
    %c0_i32 = arith.constant 0 : i32
    return %arg1, %arg2 : i32, i32
  }
  func.func @transform_1(%arg0: i32, %arg1: i32, %arg2: i32) -> (i32, i32) {
    %c0_i32 = arith.constant 0 : i32
    %c0_i32_0 = arith.constant 0 : i32
    return %c0_i32, %arg0 : i32, i32
  }
  func.func @transform_2(%arg0: i32, %arg1: i32, %arg2: i32) -> (i32, i32) {
    %c0_i32 = arith.constant 0 : i32
    %c0_i32_0 = arith.constant 0 : i32
    return %c0_i32, %arg0 : i32, i32
  }
  func.func @transform_3(%arg0: i32, %arg1: i32, %arg2: i32) -> (i32, i32) {
    %c0_i32 = arith.constant 0 : i32
    return %arg1, %arg0 : i32, i32
  }
  func.func @transform_4(%arg0: i32, %arg1: i32, %arg2: i32) -> (i32, i32) {
    %c0_i32 = arith.constant 0 : i32
    return %arg1, %arg0 : i32, i32
  }
  func.func @transform_5(%arg0: i32, %arg1: i32, %arg2: i32) -> (i32, i32) {
    %c0_i32 = arith.constant 0 : i32
    return %arg1, %arg0 : i32, i32
  }
}

</mosaic_0001>

<bundles_post_ra>
// kernel: multiscale_forward.24
= control target key start
LH: loop header
LB: loop body
LE: loop exit
PB: predicated region body
PF: predicated region fallthrough
CT: control target
= control target key end

     0   :  { %s820_s12 = smov 0   ;;  %s822_s13 = smov 0   ;;  %s918_s0 = inlined_call_operand.vmem [shape: bf16[176,128], index: 0, kind: input, shape index: {}]   ;;  %s919_s1 = inlined_call_operand.vmem [shape: bf16[128,128], index: 1, kind: input, shape index: {}]   ;;  %s920_s2 = inlined_call_operand.vmem [shape: f32[1,128], index: 2, kind: input, shape index: {}]   ;;  %s921_s3 = inlined_call_operand.vmem [shape: f32[176,128], index: 3, kind: output, shape index: {}]  }
   0x1   :  { %s824_s14 = smov 0  }
   0x2 LB: > { %s28_s15 = sadd.s32 1, %s794_s13  ;;  %p660_p0 = scmp.ge.s32.totalorder %s798_s14, 1  ;;  %s798_s14 = sphi %s824_s14, %s13_s14   ;;  %s794_s13 = sphi %s822_s13, %s923_s13   ;;  %s790_s12 = sphi %s820_s12, %s922_s12  }
   0x3   : > { %p30_p1 = scmp.ge.s32.totalorder %s28_s15, 2  ;;  %p181_p2 = scmp.lt.s32.totalorder %s798_s14, 3 }
   0x5   : > { %s925_s15 = smov (%p30_p1, %s28_s15), 0  ;;  %p182_p3 = pnand %p660_p0, %p181_p2 }
   0x6   : > { %s218_s18 = smul.u32 (!%p182_p3), 11, %s790_s12 }
   0x7   : > { %185 = sbr.rel (%p182_p3) target bundleno = 258 (0x102), region = 32 }
   0x8   : > { %p219_p4 = scmp.lt.s32.totalorder (!%p182_p3), %s218_s18, 21 }
   0xc   : > { %v762_v0 = vld [vmem:[%s919_s1 + $0x38] sm:$0xff]   ;;  %v763_v1 = vld [vmem:[%s919_s1 + $0x30] sm:$0xff]   ;;  %v764_v2 = vld [vmem:[%s919_s1 + $0x28] sm:$0xff]   ;;  %s927_s18 = smov (!%p219_p4, %s218_s18), 21 }
   0xd   : > { %694 = vmatprep.subr.bf16.mxu0 %v762_v0  ;;  %722 = vmatprep.subr.bf16.mxu1 %v762_v0  ;;  %s661_s23 = sshll.u32 %s927_s18, 2  ;;  %v765_v3 = vld [vmem:[%s919_s1 + $0x20] sm:$0xff]   ;;  %v766_v6 = vld [vmem:[%s919_s1 + $0x18] sm:$0xff]   ;;  %v767_v7 = vld [vmem:[%s919_s1 + $0x10] sm:$0xff]   ;;  %s662_s12 = sshll.u32 %s927_s18, 3 }
   0xe   : > { %695 = vmatpush3.bf16.msra.mxu0 %v762_v0  ;;  %730 = vmatpush3.bf16.msra.mxu1 %v762_v0  ;;  %s856_s28 = scalar_lea.vmem %s918_s0, %s661_s23  ;;  %v768_v8 = vld [vmem:[%s919_s1 + $0x8] sm:$0xff]   ;;  %v769_v9 = vld [vmem:[%s919_s1] sm:$0xff]   ;;  %s887_s19 = scalar_lea.vmem %s921_s3, %s662_s12 }
   0xf   : > { %696 = vmatprep.subr.bf16.mxu0 %v763_v1  ;;  %723 = vmatprep.subr.bf16.mxu1 %v763_v1  ;;  %v770_v4 = vld [vmem:[%s856_s28] sm:$0xff]   ;;  %v771_v5 = vld [vmem:[%s856_s28 + $0x10] sm:$0xff]   ;;  %v772_v10 = vld [vmem:[%s856_s28 + $0x8] sm:$0xff]  }
  0x10   : > { %710 = vmatprep.mubr.bf16.mxu0 %v770_v4  ;;  %714 = vmatprep.mubr.bf16.mxu1 %v771_v5  ;;  %v773_v11 = vld [vmem:[%s856_s28 + $0x18] sm:$0xff]   ;;  %v774_v12 = vld [vmem:[%s856_s28 + $0x20] sm:$0xff]   ;;  %v775_v13 = vld [vmem:[%s856_s28 + $0x28] ss:$0 sps:$4 sm:$0xff]  }
  0x11   : > { %v879_v14 = vld [vmem:[%s920_s2] ss:$0 sm:$0xff] }
  0x12   : > { %697 = vmatpush3.bf16.msra.mxu0 %v763_v1  ;;  %731 = vmatpush3.bf16.msra.mxu1 %v763_v1 }
  0x13   : > { %698 = vmatprep.subr.bf16.mxu0 %v764_v2  ;;  %724 = vmatprep.subr.bf16.mxu1 %v764_v2 }
  0x16   : > { %699 = vmatpush3.bf16.msra.mxu0 %v764_v2  ;;  %732 = vmatpush3.bf16.msra.mxu1 %v764_v2 }
  0x17   : > { %700 = vmatprep.subr.bf16.mxu0 %v765_v3  ;;  %725 = vmatprep.subr.bf16.mxu1 %v765_v3 }
  0x1a   : > { %701 = vmatpush3.bf16.msra.mxu0 %v765_v3  ;;  %733 = vmatpush3.bf16.msra.mxu1 %v765_v3 }
  0x1b   : > { %702 = vmatprep.subr.bf16.mxu0 %v766_v6  ;;  %726 = vmatprep.subr.bf16.mxu1 %v766_v6 }
  0x1e   : > { %703 = vmatpush3.bf16.msra.mxu0 %v766_v6  ;;  %734 = vmatpush3.bf16.msra.mxu1 %v766_v6 }
  0x1f   : > { %704 = vmatprep.subr.bf16.mxu0 %v767_v7  ;;  %727 = vmatprep.subr.bf16.mxu1 %v767_v7 }
  0x22   : > { %705 = vmatpush3.bf16.msra.mxu0 %v767_v7  ;;  %735 = vmatpush3.bf16.msra.mxu1 %v767_v7 }
  0x23   : > { %706 = vmatprep.subr.bf16.mxu0 %v768_v8  ;;  %728 = vmatprep.subr.bf16.mxu1 %v768_v8 }
  0x26   : > { %707 = vmatpush3.bf16.msra.mxu0 %v768_v8  ;;  %736 = vmatpush3.bf16.msra.mxu1 %v768_v8 }
  0x27   : > { %708 = vmatprep.subr.bf16.mxu0 %v769_v9  ;;  %729 = vmatprep.subr.bf16.mxu1 %v769_v9 }
  0x2a   : > { %709 = vmatpush3.bf16.msra.mxu0 %v769_v9  ;;  %737 = vmatpush3.bf16.msra.mxu1 %v769_v9 }
  0x2d   : > { %711 = vmatmul.mubr.bf16.vlgmr.msra.gmra.mxu0 %v772_v10  ;;  %715 = vmatmul.mubr.bf16.vlgmr.msra.gmra.mxu1 %v773_v11 }
  0x2e   : > { %718 = vmatprep.mubr.bf16.mxu1 %v774_v12 }
  0x35   : > { %719 = vmatmul.mubr.bf16.gmra.mxu1 %v775_v13 }
  0xed   : > { %v712_v15 = vpop.f32.mrf.mxu0  ;;  %v716_v16 = vpop.f32.mrf.mxu1 }
  0xee   : > { %v468_v17 = vadd.f32 %v712_v15, %v879_v14  ;;  %v472_v18 = vadd.f32 %v716_v16, %v879_v14 }
  0xef   : > { %v420_v19 = vpop.f32.mrf.mxu0  ;;  %v436_v20 = vpop.f32.mrf.mxu1 }
  0xf0   : > { %vm504_vm0 = vcmp.ge.f32.partialorder %v468_v17, 0.0  ;;  %v515_v21 = vmul.f32 0.2, %v468_v17  ;;  %vm508_vm1 = vcmp.ge.f32.partialorder %v472_v18, 0.0  ;;  %v519_v22 = vmul.f32 0.2, %v472_v18 }
  0xf1   : > { %v466_v23 = vadd.f32 %v879_v14, %v420_v19  ;;  %v470_v24 = vadd.f32 %v879_v14, %v436_v20  ;;  %v713_v25 = vpop.f32.mrf.mxu0  ;;  %v717_v26 = vpop.f32.mrf.mxu1 }
  0xf2   : > { %v526_v27 = vsel %vm504_vm0, %v468_v17, %v515_v21  ;;  %v530_v28 = vsel %vm508_vm1, %v472_v18, %v519_v22  ;;  %v469_v29 = vadd.f32 %v713_v25, %v879_v14  ;;  %v473_v30 = vadd.f32 %v717_v26, %v879_v14 }
  0xf3   : > { %537 = vst [vmem:[%s887_s19 + $0x10] sm:$0xff] %v526_v27  ;;  %541 = vst [vmem:[%s887_s19 + $0x30] sm:$0xff] %v530_v28  ;;  %vm502_vm2 = vcmp.ge.f32.partialorder %v466_v23, 0.0  ;;  %v513_v31 = vmul.f32 0.2, %v466_v23  ;;  %vm506_vm3 = vcmp.ge.f32.partialorder %v470_v24, 0.0  ;;  %v423_v33 = vpop.f32.mrf.mxu0  ;;  %v439_v34 = vpop.f32.mrf.mxu1 }
  0xf4   : > { %v517_v32 = vmul.f32 0.2, %v470_v24  ;;  %vm505_vm4 = vcmp.ge.f32.partialorder %v469_v29, 0.0  ;;  %v516_v35 = vmul.f32 0.2, %v469_v29  ;;  %vm509_vm5 = vcmp.ge.f32.partialorder %v473_v30, 0.0 }
  0xf5   : > { %v520_v36 = vmul.f32 0.2, %v473_v30  ;;  %v524_v37 = vsel %vm502_vm2, %v466_v23, %v513_v31  ;;  %v467_v39 = vadd.f32 %v879_v14, %v423_v33  ;;  %v471_v40 = vadd.f32 %v879_v14, %v439_v34  ;;  %v720_v41 = vpop.f32.mrf.mxu1 }
  0xf6   : > { %v528_v38 = vsel %vm506_vm3, %v470_v24, %v517_v32  ;;  %535 = vst [vmem:[%s887_s19] sm:$0xff] %v524_v37  ;;  %v527_v42 = vsel %vm505_vm4, %v469_v29, %v516_v35  ;;  %v476_v44 = vadd.f32 %v720_v41, %v879_v14 }
  0xf7   : > { %539 = vst [vmem:[%s887_s19 + $0x20] sm:$0xff] %v528_v38  ;;  %v531_v43 = vsel %vm509_vm5, %v473_v30, %v520_v36  ;;  %538 = vst [vmem:[%s887_s19 + $0x18] sm:$0xff] %v527_v42  ;;  %vm503_vm6 = vcmp.ge.f32.partialorder %v467_v39, 0.0  ;;  %v514_v45 = vmul.f32 0.2, %v467_v39  ;;  %vm507_vm7 = vcmp.ge.f32.partialorder %v471_v40, 0.0  ;;  %v452_v47 = vpop.f32.mrf.mxu1 }
  0xf8   : > { %542 = vst [vmem:[%s887_s19 + $0x38] sm:$0xff] %v531_v43  ;;  %v518_v46 = vmul.f32 0.2, %v471_v40  ;;  %vm512_vm8 = vcmp.ge.f32.partialorder %v476_v44, 0.0  ;;  %v523_v48 = vmul.f32 0.2, %v476_v44  ;;  %v474_v49 = vadd.f32 %v879_v14, %v452_v47 }
  0xf9   : > { %v525_v50 = vsel %vm503_vm6, %v467_v39, %v514_v45  ;;  %v721_v52 = vpop.f32.mrf.mxu1 }
  0xfa   : > { %v529_v51 = vsel %vm507_vm7, %v471_v40, %v518_v46  ;;  %536 = vst [vmem:[%s887_s19 + $0x8] sm:$0xff] %v525_v50  ;;  %v534_v53 = vsel %vm512_vm8, %v476_v44, %v523_v48  ;;  %vm510_vm9 = vcmp.ge.f32.partialorder %v474_v49, 0.0  ;;  %v521_v54 = vmul.f32 0.2, %v474_v49 }
  0xfb   : > { %540 = vst [vmem:[%s887_s19 + $0x28] sm:$0xff] %v529_v51  ;;  %545 = vst [vmem:[%s887_s19 + $0x50] sm:$0xff] %v534_v53  ;;  %v455_v55 = vpop.f32.mrf.mxu1 }
  0xfc   : > { %v532_v56 = vsel %vm510_vm9, %v474_v49, %v521_v54  ;;  %v475_v57 = vadd.f32 %v879_v14, %v455_v55 }
  0xfd   : > { %543 = vst [vmem:[%s887_s19 + $0x40] sm:$0xff] %v532_v56 }
  0xfe   : > { %vm511_vm10 = vcmp.ge.f32.partialorder %v475_v57, 0.0  ;;  %v522_v58 = vmul.f32 0.2, %v475_v57 }
 0x100   : > { %v533_v59 = vsel %vm511_vm10, %v475_v57, %v522_v58 }
 0x101   : > { %544 = vst [vmem:[%s887_s19 + $0x48] sm:$0xff] %v533_v59 }
 0x102 PF: > { %s13_s14 = sadd.s32 1, %s798_s14   ;;  %s922_s12 = smov %s794_s13 }
 0x103   : > { %p10_p5 = scmp.ge.s32.totalorder %s13_s14, 4   ;;  %s923_s13 = smov %s925_s15 }
 0x105   :  { %12 = sbr.rel (!%p10_p5) target bundleno = 2 (0x2), region = 76 }

// kernel: multiscale_forward.26
= control target key start
LH: loop header
LB: loop body
LE: loop exit
PB: predicated region body
PF: predicated region fallthrough
CT: control target
= control target key end

     0   :  { %s179_s0 = inlined_call_operand.vmem [shape: bf16[64,128], index: 0, kind: input, shape index: {}]   ;;  %s180_s1 = inlined_call_operand.vmem [shape: f32[1,128], index: 1, kind: input, shape index: {}]   ;;  %s181_s2 = inlined_call_operand.vmem [shape: f32[1,128], index: 2, kind: input, shape index: {}]   ;;  %s182_s3 = inlined_call_operand.vmem [shape: f32[64,128], index: 3, kind: output, shape index: {}]  }
   0x1   :  { %v99_v0 = vld [vmem:[%s179_s0] sm:$0xff]   ;;  %v114_v4 = vld [vmem:[%s179_s0 + $0x8] sm:$0xff]   ;;  %v115_v5 = vld [vmem:[%s179_s0 + $0x10] sm:$0xff]  }
   0x2   :  { %v96_v1 = vld [vmem:[%s180_s1] ss:$0 sm:$0xff]  ;;  %v100_v2 = vunpack.c.l.bf16 %v99_v0  ;;  %v101_v3 = vunpack.c.h.bf16 %v99_v0  ;;  %v116_v6 = vld [vmem:[%s179_s0 + $0x18] sm:$0xff]   ;;  %v104_v8 = vunpack.c.l.bf16 %v114_v4  ;;  %v105_v9 = vunpack.c.h.bf16 %v114_v4 }
   0x3   :  { %v97_v7 = vld [vmem:[%s181_s2] ss:$0 sm:$0xff]  ;;  %v108_v10 = vunpack.c.l.bf16 %v115_v5  ;;  %v109_v11 = vunpack.c.h.bf16 %v115_v5  ;;  %v112_v14 = vunpack.c.l.bf16 %v116_v6  ;;  %v113_v15 = vunpack.c.h.bf16 %v116_v6 }
   0x4   :  { %v37_v12 = vmul.f32 %v100_v2, %v96_v1  ;;  %v38_v13 = vmul.f32 %v101_v3, %v96_v1  ;;  %v39_v16 = vmul.f32 %v104_v8, %v96_v1  ;;  %v40_v17 = vmul.f32 %v105_v9, %v96_v1 }
   0x5   :  { %v41_v18 = vmul.f32 %v108_v10, %v96_v1  ;;  %v42_v19 = vmul.f32 %v109_v11, %v96_v1  ;;  %v43_v22 = vmul.f32 %v112_v14, %v96_v1  ;;  %v44_v23 = vmul.f32 %v113_v15, %v96_v1 }
   0x6   :  { %v52_v20 = vadd.f32 %v97_v7, %v37_v12  ;;  %v53_v21 = vadd.f32 %v97_v7, %v38_v13  ;;  %v54_v24 = vadd.f32 %v97_v7, %v39_v16  ;;  %v55_v25 = vadd.f32 %v97_v7, %v40_v17 }
   0x7   :  { %v56_v26 = vadd.f32 %v97_v7, %v41_v18  ;;  %v57_v27 = vadd.f32 %v97_v7, %v42_v19  ;;  %v58_v39 = vadd.f32 %v97_v7, %v43_v22  ;;  %v59_v40 = vadd.f32 %v97_v7, %v44_v23 }
   0x8   :  { %vm60_vm0 = vcmp.ge.f32.partialorder %v52_v20, 0.0  ;;  %v68_v28 = vmul.f32 0.2, %v52_v20  ;;  %vm61_vm1 = vcmp.ge.f32.partialorder %v53_v21, 0.0  ;;  %v69_v29 = vmul.f32 0.2, %v53_v21 }
   0x9   :  { %vm62_vm2 = vcmp.ge.f32.partialorder %v54_v24, 0.0  ;;  %v70_v30 = vmul.f32 0.2, %v54_v24  ;;  %vm63_vm3 = vcmp.ge.f32.partialorder %v55_v25, 0.0  ;;  %v71_v31 = vmul.f32 0.2, %v55_v25 }
   0xa   :  { %v76_v32 = vsel %vm60_vm0, %v52_v20, %v68_v28  ;;  %v77_v33 = vsel %vm61_vm1, %v53_v21, %v69_v29  ;;  %vm64_vm4 = vcmp.ge.f32.partialorder %v56_v26, 0.0  ;;  %v72_v34 = vmul.f32 0.2, %v56_v26 }
   0xb   :  { %84 = vst [vmem:[%s182_s3] sm:$0xff] %v76_v32  ;;  %85 = vst [vmem:[%s182_s3 + $0x8] sm:$0xff] %v77_v33  ;;  %v78_v35 = vsel %vm62_vm2, %v54_v24, %v70_v30  ;;  %v79_v36 = vsel %vm63_vm3, %v55_v25, %v71_v31  ;;  %vm65_vm5 = vcmp.ge.f32.partialorder %v57_v27, 0.0  ;;  %v73_v37 = vmul.f32 0.2, %v57_v27 }
   0xc   :  { %86 = vst [vmem:[%s182_s3 + $0x10] sm:$0xff] %v78_v35  ;;  %87 = vst [vmem:[%s182_s3 + $0x18] sm:$0xff] %v79_v36  ;;  %v80_v38 = vsel %vm64_vm4, %v56_v26, %v72_v34  ;;  %vm66_vm6 = vcmp.ge.f32.partialorder %v58_v39, 0.0  ;;  %v74_v42 = vmul.f32 0.2, %v58_v39  ;;  %vm67_vm7 = vcmp.ge.f32.partialorder %v59_v40, 0.0 }
   0xd   :  { %88 = vst [vmem:[%s182_s3 + $0x20] sm:$0xff] %v80_v38  ;;  %v81_v41 = vsel %vm65_vm5, %v57_v27, %v73_v37  ;;  %v75_v43 = vmul.f32 0.2, %v59_v40 }
   0xe   :  { %89 = vst [vmem:[%s182_s3 + $0x28] sm:$0xff] %v81_v41  ;;  %v82_v44 = vsel %vm66_vm6, %v58_v39, %v74_v42 }
   0xf   :  { %v83_v45 = vsel %vm67_vm7, %v59_v40, %v75_v43  ;;  %90 = vst [vmem:[%s182_s3 + $0x30] sm:$0xff] %v82_v44 }
  0x10   :  { %91 = vst [vmem:[%s182_s3 + $0x38] sm:$0xff] %v83_v45 }

// kernel: multiscale_forward.25
= control target key start
LH: loop header
LB: loop body
LE: loop exit
PB: predicated region body
PF: predicated region fallthrough
CT: control target
= control target key end

     0   :  { %s935_s18 = smov 0   ;;  %s937_s19 = smov 0   ;;  %s1014_s0 = inlined_call_operand.vmem [shape: bf16[64,128], index: 0, kind: input, shape index: {}]   ;;  %s1015_s1 = inlined_call_operand.vmem [shape: bf16[128,128], index: 1, kind: input, shape index: {}]   ;;  %s1016_s2 = inlined_call_operand.vmem [shape: f32[1,128], index: 2, kind: input, shape index: {}]   ;;  %s1017_s3 = inlined_call_operand.vmem [shape: bf16[64,128], index: 3, kind: output, shape index: {0}]   ;;  %s1018_s4 = inlined_call_operand.vmem [shape: f32[16,128], index: 4, kind: output, shape index: {1}]   ;;  %s1019_s5 = inlined_call_operand.vmem [shape: f32[16,128], index: 5, kind: output, shape index: {2}]  }
   0x1   :  { %s939_s20 = smov 0  }
   0x2 LB: > { %s31_s21 = sadd.s32 1, %s898_s19  ;;  %p770_p0 = scmp.ge.s32.totalorder %s902_s20, 1  ;;  %s902_s20 = sphi %s939_s20, %s16_s20   ;;  %s898_s19 = sphi %s937_s19, %s1021_s19   ;;  %s894_s18 = sphi %s935_s18, %s1020_s18  }
   0x3   : > { %p33_p1 = scmp.ge.s32.totalorder %s31_s21, 2  ;;  %p240_p2 = scmp.lt.s32.totalorder %s902_s20, 3 }
   0x5   : > { %s1023_s21 = smov (%p33_p1, %s31_s21), 0  ;;  %p241_p3 = pnand %p770_p0, %p240_p2 }
   0x6   : > { %s771_s24 = sshll.u32 (!%p241_p3), %s894_s18, 2  ;;  %s777_s22 = sshll.u32 (!%p241_p3), %s894_s18, 5 }
   0x7   : > { %244 = sbr.rel (%p241_p3) target bundleno = 271 (0x10f), region = 32  ;;  %p296_p4 = scmp.lt.s32.totalorder (!%p241_p3), %s771_s24, 7 }
   0x8   : > { %p320_p5 = scmp.lt.s32.totalorder (!%p241_p3), %s894_s18, 1 }
   0xc   : > { %v870_v0 = vld [vmem:[%s1015_s1 + $0x38] sm:$0xff]   ;;  %v871_v1 = vld [vmem:[%s1015_s1 + $0x30] sm:$0xff]   ;;  %s1025_s24 = smov (!%p296_p4, %s771_s24), 7  ;;  %v872_v2 = vld [vmem:[%s1015_s1 + $0x28] sm:$0xff]   ;;  %v499_v10 = vlaneseq  ;;  %v504_v14 = vstv %s777_s22  ;;  %v904_v24 = vmov 0.0   ;;  %s1027_s18 = smov (!%p320_p5, %s894_s18), 1 }
   0xd   : > { %825 = vmatprep.subr.bf16.mxu0 %v870_v0  ;;  %s772_s29 = sshll.u32 %s1025_s24, 2  ;;  %v873_v3 = vld [vmem:[%s1015_s1 + $0x20] sm:$0xff]   ;;  %v874_v5 = vld [vmem:[%s1015_s1 + $0x18] sm:$0xff]   ;;  %v875_v6 = vld [vmem:[%s1015_s1 + $0x10] sm:$0xff]   ;;  %s775_s24 = sshll.u32 %s1027_s18, 3 }
   0xe   : > { %826 = vmatpush3.bf16.msra.mxu0 %v870_v0  ;;  %s302_s7 = scalar_lea.vmem %s1014_s0, %s772_s29  ;;  %v876_v7 = vld [vmem:[%s1015_s1 + $0x8] sm:$0xff]   ;;  %v877_v8 = vld [vmem:[%s1015_s1] sm:$0xff]   ;;  %v500_v11 = vshrl.u32 %v499_v10, 7  ;;  %s318_s28 = scalar_lea.vmem %s1017_s3, %s772_s29 }
   0xf   : > { %827 = vmatprep.subr.bf16.mxu0 %v871_v1  ;;  %v878_v4 = vld [vmem:[%s302_s7] sm:$0xff]   ;;  %v879_v9 = vld [vmem:[%s302_s7 + $0x8] sm:$0xff]   ;;  %s326_s6 = scalar_lea.vmem %s1018_s4, %s775_s24  ;;  %s333_s9 = scalar_lea.vmem %s1019_s5, %s775_s24 }
  0x10   : > { %841 = vmatprep.mubr.bf16.mxu0 %v878_v4  ;;  %v502_v12 = vadd.s32 16, %v500_v11  ;;  %v501_v13 = vadd.s32 8, %v500_v11  ;;  %v505_v15 = vadd.s32 %v504_v14, %v500_v11  ;;  %v503_v16 = vadd.s32 24, %v500_v11  ;;  %v778_v21 = vld [vmem:[%s1016_s2] ss:$0 sm:$0xff] }
  0x11   : > { %vm547_vm4 = vcmp.eq.s32.totalorder %v500_v11, 0 }
  0x12   : > { %828 = vmatpush3.bf16.msra.mxu0 %v871_v1  ;;  %v507_v17 = vadd.s32 %v504_v14, %v502_v12  ;;  %v506_v18 = vadd.s32 %v504_v14, %v501_v13  ;;  %vm509_vm0 = vcmp.lt.s32.totalorder %v505_v15, 50  ;;  %v508_v20 = vadd.s32 %v504_v14, %v503_v16 }
  0x13   : > { %829 = vmatprep.subr.bf16.mxu0 %v872_v2  ;;  %v789_v25 = vsel %vm509_vm0, 1.0, %v904_v24  ;;  %v793_v59 = vsel %vm547_vm4, 1.0, %v904_v24 }
  0x14   : > { %vm511_vm1 = vcmp.lt.s32.totalorder %v507_v17, 50  ;;  %vm510_vm2 = vcmp.lt.s32.totalorder %v506_v18, 50  ;;  %vm512_vm3 = vcmp.lt.s32.totalorder %v508_v20, 50 }
  0x15   : > { %v791_v28 = vsel %vm511_vm1, 1.0, %v904_v24  ;;  %v790_v31 = vsel %vm510_vm2, 1.0, %v904_v24  ;;  %v792_v34 = vsel %vm512_vm3, 1.0, %v904_v24 }
  0x16   : > { %830 = vmatpush3.bf16.msra.mxu0 %v872_v2 }
  0x17   : > { %831 = vmatprep.subr.bf16.mxu0 %v873_v3 }
  0x1a   : > { %832 = vmatpush3.bf16.msra.mxu0 %v873_v3 }
  0x1b   : > { %833 = vmatprep.subr.bf16.mxu0 %v874_v5 }
  0x1e   : > { %834 = vmatpush3.bf16.msra.mxu0 %v874_v5 }
  0x1f   : > { %835 = vmatprep.subr.bf16.mxu0 %v875_v6 }
  0x22   : > { %836 = vmatpush3.bf16.msra.mxu0 %v875_v6 }
  0x23   : > { %837 = vmatprep.subr.bf16.mxu0 %v876_v7 }
  0x26   : > { %838 = vmatpush3.bf16.msra.mxu0 %v876_v7 }
  0x27   : > { %839 = vmatprep.subr.bf16.mxu0 %v877_v8 }
  0x2a   : > { %840 = vmatpush3.bf16.msra.mxu0 %v877_v8 }
  0x2d   : > { %842 = vmatmul.mubr.bf16.vlgmr.msra.gmra.mxu0 %v879_v9 }
  0xed   : > { %v843_v19 = vpop.f32.mrf.mxu0 }
  0xee   : > { %v486_v27 = vadd.f32 %v843_v19, %v778_v21 }
  0xef   : > { %v469_v22 = vpop.f32.mrf.mxu0 }
  0xf0   : > { %v484_v23 = vadd.f32 %v778_v21, %v469_v22  ;;  %v523_v35 = vmul.f32 %v791_v28, %v486_v27 }
  0xf1   : > { %v844_v26 = vpop.f32.mrf.mxu0 }
  0xf2   : > { %v487_v29 = vadd.f32 %v844_v26, %v778_v21  ;;  %v521_v32 = vmul.f32 %v789_v25, %v484_v23  ;;  %v536_v43 = vmul.f32 %v523_v35, %v523_v35 }
  0xf3   : > { %v472_v30 = vpop.f32.mrf.mxu0 }
  0xf4   : > { %v485_v33 = vadd.f32 %v778_v21, %v472_v30  ;;  %v812_v38 = vpack.c.bf16 %v487_v29, %v486_v27  ;;  %v534_v39 = vmul.f32 %v521_v32, %v521_v32  ;;  %v524_v40 = vmul.f32 %v792_v34, %v487_v29 }
  0xf6   : > { %v522_v36 = vmul.f32 %v790_v31, %v485_v33  ;;  %v807_v37 = vpack.c.bf16 %v485_v33, %v484_v23  ;;  %814 = vst [vmem:[%s318_s28 + $0x8] sm:$0xff] %v812_v38   ;;  %v537_v46 = vmul.f32 %v524_v40, %v524_v40 }
  0xf8   : > { %v525_v41 = vadd.f32 %v522_v36, %v521_v32  ;;  %v535_v42 = vmul.f32 %v522_v36, %v522_v36  ;;  %808 = vst [vmem:[%s318_s28] sm:$0xff] %v807_v37  }
  0xfa   : > { %v526_v44 = vadd.f32 %v525_v41, %v523_v35  ;;  %v538_v45 = vadd.f32 %v535_v42, %v534_v39 }
  0xfc   : > { %v527_v47 = vadd.f32 %v526_v44, %v524_v40  ;;  %v539_v48 = vadd.f32 %v538_v45, %v536_v43 }
  0xfe   : > { %v528_v49 = vrot.slane %v527_v47, 4  ;;  %v540_v50 = vadd.f32 %v539_v48, %v537_v46 }
 0x100   : > { %v529_v51 = vadd.f32 %v528_v49, %v527_v47  ;;  %v541_v52 = vrot.slane %v540_v50, 4 }
 0x102   : > { %v530_v53 = vrot.slane %v529_v51, 2  ;;  %v542_v54 = vadd.f32 %v541_v52, %v540_v50 }
 0x104   : > { %v531_v55 = vadd.f32 %v530_v53, %v529_v51  ;;  %v543_v56 = vrot.slane %v542_v54, 2 }
 0x106   : > { %v532_v57 = vrot.slane %v531_v55, 1  ;;  %v544_v58 = vadd.f32 %v543_v56, %v542_v54 }
 0x108   : > { %v533_v60 = vadd.f32 %v532_v57, %v531_v55  ;;  %v545_v61 = vrot.slane %v544_v58, 1 }
 0x10a   : > { %v546_v62 = vadd.f32 %v545_v61, %v544_v58  ;;  %v550_v63 = vmul.f32 %v793_v59, %v533_v60 }
 0x10c   : > { %551 = vst [vmem:[%s326_s6] sm:$0xff] %v550_v63  ;;  %v552_v0 = vmul.f32 %v793_v59, %v546_v62 }
 0x10e   : > { %553 = vst [vmem:[%s333_s9] sm:$0xff] %v552_v0 }
 0x10f PF: > { %s16_s20 = sadd.s32 1, %s902_s20   ;;  %s1020_s18 = smov %s898_s19 }
 0x110   : > { %p13_p6 = scmp.ge.s32.totalorder %s16_s20, 4   ;;  %s1021_s19 = smov %s1023_s21 }
 0x112   :  { %15 = sbr.rel (!%p13_p6) target bundleno = 2 (0x2), region = 100 }

// kernel: multiscale_forward.28
= control target key start
LH: loop header
LB: loop body
LE: loop exit
PB: predicated region body
PF: predicated region fallthrough
CT: control target
= control target key end

     0   :  { %s119_s0 = inlined_call_operand.vmem [shape: bf16[32,128], index: 0, kind: input, shape index: {}]   ;;  %s120_s1 = inlined_call_operand.vmem [shape: f32[1,128], index: 1, kind: input, shape index: {}]   ;;  %s121_s2 = inlined_call_operand.vmem [shape: f32[1,128], index: 2, kind: input, shape index: {}]   ;;  %s122_s3 = inlined_call_operand.vmem [shape: f32[32,128], index: 3, kind: output, shape index: {}]  }
   0x1   :  { %v67_v0 = vld [vmem:[%s119_s0] sm:$0xff]   ;;  %v74_v4 = vld [vmem:[%s119_s0 + $0x8] sm:$0xff]  }
   0x2   :  { %v64_v1 = vld [vmem:[%s120_s1] ss:$0 sm:$0xff]  ;;  %v68_v2 = vunpack.c.l.bf16 %v67_v0  ;;  %v69_v3 = vunpack.c.h.bf16 %v67_v0  ;;  %v72_v6 = vunpack.c.l.bf16 %v74_v4  ;;  %v73_v7 = vunpack.c.h.bf16 %v74_v4 }
   0x3   :  { %v65_v5 = vld [vmem:[%s121_s2] ss:$0 sm:$0xff] }
   0x4   :  { %v29_v8 = vmul.f32 %v68_v2, %v64_v1  ;;  %v30_v9 = vmul.f32 %v69_v3, %v64_v1  ;;  %v31_v10 = vmul.f32 %v72_v6, %v64_v1  ;;  %v32_v11 = vmul.f32 %v73_v7, %v64_v1 }
   0x6   :  { %v40_v12 = vadd.f32 %v65_v5, %v29_v8  ;;  %v41_v13 = vadd.f32 %v65_v5, %v30_v9  ;;  %v42_v14 = vadd.f32 %v65_v5, %v31_v10  ;;  %v43_v15 = vadd.f32 %v65_v5, %v32_v11 }
   0x8   :  { %vm44_vm0 = vcmp.ge.f32.partialorder %v40_v12, 0.0  ;;  %v48_v16 = vmul.f32 0.2, %v40_v12  ;;  %vm45_vm1 = vcmp.ge.f32.partialorder %v41_v13, 0.0  ;;  %v49_v17 = vmul.f32 0.2, %v41_v13 }
   0x9   :  { %vm46_vm2 = vcmp.ge.f32.partialorder %v42_v14, 0.0  ;;  %v50_v18 = vmul.f32 0.2, %v42_v14  ;;  %vm47_vm3 = vcmp.ge.f32.partialorder %v43_v15, 0.0  ;;  %v51_v19 = vmul.f32 0.2, %v43_v15 }
   0xa   :  { %v52_v20 = vsel %vm44_vm0, %v40_v12, %v48_v16  ;;  %v53_v21 = vsel %vm45_vm1, %v41_v13, %v49_v17 }
   0xb   :  { %56 = vst [vmem:[%s122_s3] sm:$0xff] %v52_v20  ;;  %57 = vst [vmem:[%s122_s3 + $0x8] sm:$0xff] %v53_v21  ;;  %v54_v22 = vsel %vm46_vm2, %v42_v14, %v50_v18  ;;  %v55_v23 = vsel %vm47_vm3, %v43_v15, %v51_v19 }
   0xc   :  { %58 = vst [vmem:[%s122_s3 + $0x10] sm:$0xff] %v54_v22  ;;  %59 = vst [vmem:[%s122_s3 + $0x18] sm:$0xff] %v55_v23 }

// kernel: multiscale_forward.27
= control target key start
LH: loop header
LB: loop body
LE: loop exit
PB: predicated region body
PF: predicated region fallthrough
CT: control target
= control target key end

     0   :  { %s959_s18 = smov 0   ;;  %s961_s19 = smov 0   ;;  %s1059_s0 = inlined_call_operand.vmem [shape: bf16[32,256], index: 0, kind: input, shape index: {}]   ;;  %s1060_s1 = inlined_call_operand.vmem [shape: bf16[256,128], index: 1, kind: input, shape index: {}]   ;;  %s1061_s2 = inlined_call_operand.vmem [shape: f32[1,128], index: 2, kind: input, shape index: {}]   ;;  %s1062_s3 = inlined_call_operand.vmem [shape: bf16[32,128], index: 3, kind: output, shape index: {0}]   ;;  %s1063_s4 = inlined_call_operand.vmem [shape: f32[16,128], index: 4, kind: output, shape index: {1}]   ;;  %s1064_s5 = inlined_call_operand.vmem [shape: f32[16,128], index: 5, kind: output, shape index: {2}]  }
   0x1   :  { %s963_s20 = smov 0  }
   0x2 LB: > { %s31_s21 = sadd.s32 1, %s922_s19  ;;  %p795_p0 = scmp.ge.s32.totalorder %s926_s20, 1  ;;  %s926_s20 = sphi %s963_s20, %s16_s20   ;;  %s922_s19 = sphi %s961_s19, %s1066_s19   ;;  %s918_s18 = sphi %s959_s18, %s1065_s18  }
   0x3   : > { %p33_p1 = scmp.ge.s32.totalorder %s31_s21, 2  ;;  %p243_p2 = scmp.lt.s32.totalorder %s926_s20, 3 }
   0x5   : > { %s1068_s21 = smov (%p33_p1, %s31_s21), 0  ;;  %p244_p3 = pnand %p795_p0, %p243_p2 }
   0x6   : > { %s796_s24 = sshll.u32 (!%p244_p3), %s918_s18, 1  ;;  %p328_p5 = scmp.lt.s32.totalorder (!%p244_p3), %s918_s18, 1 }
   0x7   : > { %247 = sbr.rel (%p244_p3) target bundleno = 269 (0x10d), region = 32  ;;  %p302_p4 = scmp.lt.s32.totalorder (!%p244_p3), %s796_s24, 3 }
   0xc   : > { %v885_v0 = vld [vmem:[%s1060_s1 + $0x78] sm:$0xff]   ;;  %v887_v2 = vld [vmem:[%s1060_s1 + $0x70] sm:$0xff]   ;;  %v889_v4 = vld [vmem:[%s1060_s1 + $0x68] sm:$0xff]   ;;  %s1070_s24 = smov (!%p302_p4, %s796_s24), 3  ;;  %v549_v18 = vlaneseq  ;;  %v928_v30 = vmov 0.0  }
   0xd   : > { %v886_v1 = vld [vmem:[%s1060_s1 + $0x38] sm:$0xff]   ;;  %838 = vmatprep.subr.bf16.mxu0 %v885_v0  ;;  %v888_v3 = vld [vmem:[%s1060_s1 + $0x30] sm:$0xff]   ;;  %v890_v5 = vld [vmem:[%s1060_s1 + $0x28] sm:$0xff]   ;;  %s830_s14 = sshll.u32 %s1070_s24, 3  ;;  %s800_s17 = sshll.u32 %s1070_s24, 2 }
   0xe   : > { %839 = vmatpush3.bf16.msra.mxu0 %v886_v1  ;;  %v891_v6 = vld [vmem:[%s1060_s1 + $0x60] sm:$0xff]   ;;  %v893_v8 = vld [vmem:[%s1060_s1 + $0x58] sm:$0xff]   ;;  %s309_s23 = scalar_lea.vmem %s1059_s0, %s830_s14  ;;  %v895_v10 = vld [vmem:[%s1060_s1 + $0x50] sm:$0xff]   ;;  %s803_s14 = sshll.u32 %s918_s18, 4  ;;  %v550_v19 = vshrl.u32 %v549_v18, 7 }
   0xf   : > { %840 = vmatprep.subr.bf16.mxu0 %v887_v2  ;;  %v892_v7 = vld [vmem:[%s1060_s1 + $0x20] sm:$0xff]   ;;  %v894_v9 = vld [vmem:[%s1060_s1 + $0x18] sm:$0xff]   ;;  %v896_v12 = vld [vmem:[%s1060_s1 + $0x10] sm:$0xff]   ;;  %v552_v20 = vstv %s803_s14  ;;  %s326_s25 = scalar_lea.vmem %s1062_s3, %s800_s17  ;;  %s1072_s18 = smov (!%p328_p5, %s918_s18), 1 }
  0x10   : > { %v903_v11 = vld [vmem:[%s309_s23 + $0x4] ss:$8 sps:$4 sm:$0xff]   ;;  %v901_v17 = vld [vmem:[%s309_s23] ss:$8 sps:$4 sm:$0xff]   ;;  %v551_v21 = vadd.s32 8, %v550_v19  ;;  %v553_v22 = vadd.s32 %v552_v20, %v550_v19  ;;  %vm579_vm2 = vcmp.eq.s32.totalorder %v550_v19, 0 }
  0x11   : > { %531 = vmatprep.mubr.bf16.mxu0 %v903_v11  ;;  %v897_v13 = vld [vmem:[%s1060_s1 + $0x48] sm:$0xff]   ;;  %v899_v15 = vld [vmem:[%s1060_s1 + $0x40] sm:$0xff]   ;;  %s801_s24 = sshll.u32 %s1072_s18, 3  ;;  %v825_v52 = vsel %vm579_vm2, 1.0, %v928_v30 }
  0x12   : > { %841 = vmatpush3.bf16.msra.mxu0 %v888_v3  ;;  %v898_v14 = vld [vmem:[%s1060_s1 + $0x8] sm:$0xff]   ;;  %v900_v16 = vld [vmem:[%s1060_s1] sm:$0xff]   ;;  %v554_v24 = vadd.s32 %v552_v20, %v551_v21  ;;  %vm555_vm0 = vcmp.lt.s32.totalorder %v553_v22, 18  ;;  %s334_s28 = scalar_lea.vmem %s1063_s4, %s801_s24  ;;  %s341_s6 = scalar_lea.vmem %s1064_s5, %s801_s24 }
  0x13   : > { %842 = vmatprep.subr.bf16.mxu0 %v889_v4  ;;  %v804_v25 = vld [vmem:[%s1061_s2] ss:$0 sm:$0xff]  ;;  %v823_v31 = vsel %vm555_vm0, 1.0, %v928_v30 }
  0x14   : > { %vm556_vm1 = vcmp.lt.s32.totalorder %v554_v24, 18 }
  0x15   : > { %v824_v34 = vsel %vm556_vm1, 1.0, %v928_v30 }
  0x16   : > { %843 = vmatpush3.bf16.msra.mxu0 %v890_v5 }
  0x17   : > { %844 = vmatprep.subr.bf16.mxu0 %v891_v6 }
  0x1a   : > { %845 = vmatpush3.bf16.msra.mxu0 %v892_v7 }
  0x1b   : > { %846 = vmatprep.subr.bf16.mxu0 %v893_v8 }
  0x1e   : > { %847 = vmatpush3.bf16.msra.mxu0 %v894_v9 }
  0x1f   : > { %848 = vmatprep.subr.bf16.mxu0 %v895_v10 }
  0x22   : > { %849 = vmatpush3.bf16.msra.mxu0 %v896_v12 }
  0x23   : > { %850 = vmatprep.subr.bf16.mxu0 %v897_v13 }
  0x26   : > { %851 = vmatpush3.bf16.msra.mxu0 %v898_v14 }
  0x27   : > { %852 = vmatprep.subr.bf16.mxu0 %v899_v15 }
  0x2a   : > { %853 = vmatpush3.bf16.msra.mxu0 %v900_v16 }
  0x2d   : > { %532 = vmatmul.mubr.bf16.vlgmr.msra.gmra.mxu0 %v901_v17 }
  0xed   : > { %v854_v23 = vpop.f32.mrf.mxu0 }
  0xef   : > { %v855_v26 = vpop.f32.mrf.mxu0 }
  0xf0   : > { %v856_v27 = vadd.f32 %v855_v26, %v854_v23 }
  0xf1   : > { %v857_v28 = vpop.f32.mrf.mxu0 }
  0xf2   : > { %v540_v29 = vadd.f32 %v856_v27, %v804_v25 }
  0xf3   : > { %v858_v32 = vpop.f32.mrf.mxu0 }
  0xf4   : > { %v859_v33 = vadd.f32 %v858_v32, %v857_v28  ;;  %v561_v35 = vmul.f32 %v823_v31, %v540_v29 }
  0xf6   : > { %v541_v36 = vadd.f32 %v859_v33, %v804_v25  ;;  %v570_v39 = vmul.f32 %v561_v35, %v561_v35 }
  0xf8   : > { %v562_v37 = vmul.f32 %v824_v34, %v541_v36  ;;  %v836_v38 = vpack.c.bf16 %v541_v36, %v540_v29 }
  0xfa   : > { %v563_v40 = vadd.f32 %v562_v37, %v561_v35  ;;  %v571_v41 = vmul.f32 %v562_v37, %v562_v37  ;;  %837 = vst [vmem:[%s326_s25] sm:$0xff] %v836_v38  }
  0xfc   : > { %v564_v42 = vrot.slane %v563_v40, 4  ;;  %v572_v43 = vadd.f32 %v571_v41, %v570_v39 }
  0xfe   : > { %v565_v44 = vadd.f32 %v564_v42, %v563_v40  ;;  %v573_v45 = vrot.slane %v572_v43, 4 }
 0x100   : > { %v566_v46 = vrot.slane %v565_v44, 2  ;;  %v574_v47 = vadd.f32 %v573_v45, %v572_v43 }
 0x102   : > { %v567_v48 = vadd.f32 %v566_v46, %v565_v44  ;;  %v575_v49 = vrot.slane %v574_v47, 2 }
 0x104   : > { %v568_v50 = vrot.slane %v567_v48, 1  ;;  %v576_v51 = vadd.f32 %v575_v49, %v574_v47 }
 0x106   : > { %v569_v53 = vadd.f32 %v568_v50, %v567_v48  ;;  %v577_v54 = vrot.slane %v576_v51, 1 }
 0x108   : > { %v578_v55 = vadd.f32 %v577_v54, %v576_v51  ;;  %v582_v56 = vmul.f32 %v825_v52, %v569_v53 }
 0x10a   : > { %583 = vst [vmem:[%s334_s28] sm:$0xff] %v582_v56  ;;  %v584_v57 = vmul.f32 %v825_v52, %v578_v55 }
 0x10c   : > { %585 = vst [vmem:[%s341_s6] sm:$0xff] %v584_v57 }
 0x10d PF: > { %s16_s20 = sadd.s32 1, %s926_s20   ;;  %s1065_s18 = smov %s922_s19 }
 0x10e   : > { %p13_p6 = scmp.ge.s32.totalorder %s16_s20, 4   ;;  %s1066_s19 = smov %s1068_s21 }
 0x110   :  { %15 = sbr.rel (!%p13_p6) target bundleno = 2 (0x2), region = 100 }

// kernel: multiscale_forward.29
= control target key start
LH: loop header
LB: loop body
LE: loop exit
PB: predicated region body
PF: predicated region fallthrough
CT: control target
= control target key end

     0   :  { %s1199_s18 = smov 0   ;;  %s1201_s19 = smov 0   ;;  %s1347_s0 = inlined_call_operand.vmem [shape: bf16[32,512], index: 0, kind: input, shape index: {}]   ;;  %s1348_s1 = inlined_call_operand.vmem [shape: bf16[512,128], index: 1, kind: input, shape index: {}]   ;;  %s1349_s2 = inlined_call_operand.vmem [shape: f32[1,128], index: 2, kind: input, shape index: {}]   ;;  %s1350_s3 = inlined_call_operand.vmem [shape: bf16[32,128], index: 3, kind: output, shape index: {0}]   ;;  %s1351_s4 = inlined_call_operand.vmem [shape: f32[16,128], index: 4, kind: output, shape index: {1}]   ;;  %s1352_s5 = inlined_call_operand.vmem [shape: f32[16,128], index: 5, kind: output, shape index: {2}]  }
   0x1   :  { %s1203_s20 = smov 0  }
   0x2 LB: > { %s31_s21 = sadd.s32 1, %s1162_s19  ;;  %p976_p0 = scmp.ge.s32.totalorder %s1166_s20, 1  ;;  %s1166_s20 = sphi %s1203_s20, %s16_s20   ;;  %s1162_s19 = sphi %s1201_s19, %s1354_s19   ;;  %s1158_s18 = sphi %s1199_s18, %s1353_s18  }
   0x3   : > { %p33_p1 = scmp.ge.s32.totalorder %s31_s21, 2  ;;  %p243_p2 = scmp.lt.s32.totalorder %s1166_s20, 3 }
   0x5   : > { %s1356_s21 = smov (%p33_p1, %s31_s21), 0  ;;  %p244_p3 = pnand %p976_p0, %p243_p2 }
   0x6   : > { %s977_s8 = sshll.u32 (!%p244_p3), %s1158_s18, 1  ;;  %s984_s29 = sshll.u32 (!%p244_p3), %s1158_s18, 4 }
   0x7   : > { %247 = sbr.rel (%p244_p3) target bundleno = 273 (0x111), region = 32  ;;  %p302_p4 = scmp.lt.s32.totalorder (!%p244_p3), %s977_s8, 3 }
   0x8   : > { %p328_p5 = scmp.lt.s32.totalorder (!%p244_p3), %s1158_s18, 1 }
   0xc   : > { %v1106_v0 = vld [vmem:[%s1348_s1 + $0x78] sm:$0xff]   ;;  %v1110_v4 = vld [vmem:[%s1348_s1 + $0x70] sm:$0xff]   ;;  %v1114_v8 = vld [vmem:[%s1348_s1 + $0x68] sm:$0xff]   ;;  %s1358_s8 = smov (!%p302_p4, %s977_s8), 3  ;;  %v730_v36 = vlaneseq  ;;  %v733_v38 = vstv %s984_s29  ;;  %v1168_v57 = vmov 0.0   ;;  %s1360_s18 = smov (!%p328_p5, %s1158_s18), 1 }
   0xd   : > { %v1107_v1 = vld [vmem:[%s1348_s1 + $0xf8] sm:$0xff]   ;;  %1037 = vmatprep.subr.bf16.mxu0 %v1106_v0  ;;  %v1111_v5 = vld [vmem:[%s1348_s1 + $0xf0] sm:$0xff]   ;;  %v1115_v9 = vld [vmem:[%s1348_s1 + $0xe8] sm:$0xff]   ;;  %s1029_s11 = sshll.u32 %s1358_s8, 4  ;;  %s981_s7 = sshll.u32 %s1358_s8, 2 }
   0xe   : > { %v1108_v2 = vld [vmem:[%s1348_s1 + $0x38] sm:$0xff]   ;;  %1059 = vmatprep.subr.bf16.mxu1 %v1107_v1  ;;  %v1112_v6 = vld [vmem:[%s1348_s1 + $0x30] sm:$0xff]   ;;  %v1116_v10 = vld [vmem:[%s1348_s1 + $0x28] sm:$0xff]   ;;  %s309_s24 = scalar_lea.vmem %s1347_s0, %s1029_s11  ;;  %v731_v37 = vshrl.u32 %v730_v36, 7  ;;  %s326_s11 = scalar_lea.vmem %s1350_s3, %s981_s7 }
   0xf   : > { %v1109_v3 = vld [vmem:[%s1348_s1 + $0xb8] sm:$0xff]   ;;  %1038 = vmatpush3.bf16.msra.mxu0 %v1108_v2  ;;  %v1113_v7 = vld [vmem:[%s1348_s1 + $0xb0] sm:$0xff]   ;;  %v1117_v11 = vld [vmem:[%s1348_s1 + $0xa8] sm:$0xff]   ;;  %s982_s8 = sshll.u32 %s1360_s18, 3 }
  0x10   : > { %1060 = vmatpush3.bf16.msra.mxu1 %v1109_v3  ;;  %1039 = vmatprep.subr.bf16.mxu0 %v1110_v4  ;;  %v1118_v12 = vld [vmem:[%s1348_s1 + $0x60] sm:$0xff]   ;;  %v1122_v16 = vld [vmem:[%s1348_s1 + $0x58] sm:$0xff]   ;;  %v1126_v20 = vld [vmem:[%s1348_s1 + $0x50] sm:$0xff]   ;;  %v732_v40 = vadd.s32 8, %v731_v37  ;;  %v734_v43 = vadd.s32 %v733_v38, %v731_v37  ;;  %vm760_vm2 = vcmp.eq.s32.totalorder %v731_v37, 0  ;;  %s334_s14 = scalar_lea.vmem %s1351_s4, %s982_s8  ;;  %s341_s17 = scalar_lea.vmem %s1352_s5, %s982_s8 }
  0x11   : > { %1061 = vmatprep.subr.bf16.mxu1 %v1111_v5  ;;  %v1119_v13 = vld [vmem:[%s1348_s1 + $0xe0] sm:$0xff]   ;;  %v1123_v17 = vld [vmem:[%s1348_s1 + $0xd8] sm:$0xff]   ;;  %v1127_v21 = vld [vmem:[%s1348_s1 + $0xd0] sm:$0xff]  }
  0x12   : > { %v1120_v14 = vld [vmem:[%s1348_s1 + $0x20] sm:$0xff]   ;;  %v1124_v18 = vld [vmem:[%s1348_s1 + $0x18] sm:$0xff]   ;;  %v1128_v22 = vld [vmem:[%s1348_s1 + $0x10] sm:$0xff]   ;;  %v735_v48 = vadd.s32 %v733_v38, %v732_v40  ;;  %vm736_vm0 = vcmp.lt.s32.totalorder %v734_v43, 32 }
  0x13   : > { %1040 = vmatpush3.bf16.msra.mxu0 %v1112_v6  ;;  %v1121_v15 = vld [vmem:[%s1348_s1 + $0xa0] sm:$0xff]   ;;  %v1125_v19 = vld [vmem:[%s1348_s1 + $0x98] sm:$0xff]   ;;  %v1129_v23 = vld [vmem:[%s1348_s1 + $0x90] sm:$0xff]   ;;  %v1022_v58 = vsel %vm736_vm0, 1.0, %v1168_v57 }
  0x14   : > { %1062 = vmatpush3.bf16.msra.mxu1 %v1113_v7  ;;  %1041 = vmatprep.subr.bf16.mxu0 %v1114_v8  ;;  %v1130_v24 = vld [vmem:[%s1348_s1 + $0x48] sm:$0xff]   ;;  %v1134_v28 = vld [vmem:[%s1348_s1 + $0x40] sm:$0xff]   ;;  %vm737_vm1 = vcmp.lt.s32.totalorder %v735_v48, 32 }
  0x15   : > { %1063 = vmatprep.subr.bf16.mxu1 %v1115_v9  ;;  %v1131_v25 = vld [vmem:[%s1348_s1 + $0xc8] sm:$0xff]   ;;  %v1135_v29 = vld [vmem:[%s1348_s1 + $0xc0] sm:$0xff]   ;;  %v1023_v60 = vsel %vm737_vm1, 1.0, %v1168_v57 }
  0x16   : > { %v1132_v26 = vld [vmem:[%s1348_s1 + $0x8] sm:$0xff]   ;;  %v1136_v30 = vld [vmem:[%s1348_s1] sm:$0xff]  }
  0x17   : > { %1042 = vmatpush3.bf16.msra.mxu0 %v1116_v10  ;;  %v1133_v27 = vld [vmem:[%s1348_s1 + $0x88] sm:$0xff]   ;;  %v1137_v31 = vld [vmem:[%s1348_s1 + $0x80] sm:$0xff]  }
  0x18   : > { %1064 = vmatpush3.bf16.msra.mxu1 %v1117_v11  ;;  %1043 = vmatprep.subr.bf16.mxu0 %v1118_v12  ;;  %v1138_v32 = vld [vmem:[%s309_s24] ss:$16 sps:$4 sm:$0xff]   ;;  %v1140_v33 = vld [vmem:[%s309_s24 + $0x4] ss:$16 sps:$4 sm:$0xff]   ;;  %v1141_v34 = vld [vmem:[%s309_s24 + $0x8] ss:$16 sps:$4 sm:$0xff]  }
  0x19   : > { %1065 = vmatprep.subr.bf16.mxu1 %v1119_v13  ;;  %v1143_v35 = vld [vmem:[%s309_s24 + $0xc] ss:$16 sps:$4 sm:$0xff]   ;;  %671 = vmatprep.mubr.bf16.mxu0 %v1140_v33  ;;  %v985_v49 = vld [vmem:[%s1349_s2] ss:$0 sm:$0xff] }
  0x1a   : > { %712 = vmatprep.mubr.bf16.mxu1 %v1143_v35 }
  0x1b   : > { %1044 = vmatpush3.bf16.msra.mxu0 %v1120_v14  ;;  %v1024_v14 = vsel %vm760_vm2, 1.0, %v1168_v57 }
  0x1c   : > { %1066 = vmatpush3.bf16.msra.mxu1 %v1121_v15  ;;  %1045 = vmatprep.subr.bf16.mxu0 %v1122_v16 }
  0x1d   : > { %1067 = vmatprep.subr.bf16.mxu1 %v1123_v17 }
  0x1f   : > { %1046 = vmatpush3.bf16.msra.mxu0 %v1124_v18 }
  0x20   : > { %1068 = vmatpush3.bf16.msra.mxu1 %v1125_v19  ;;  %1047 = vmatprep.subr.bf16.mxu0 %v1126_v20 }
  0x21   : > { %1069 = vmatprep.subr.bf16.mxu1 %v1127_v21 }
  0x23   : > { %1048 = vmatpush3.bf16.msra.mxu0 %v1128_v22 }
  0x24   : > { %1070 = vmatpush3.bf16.msra.mxu1 %v1129_v23  ;;  %1049 = vmatprep.subr.bf16.mxu0 %v1130_v24 }
  0x25   : > { %1071 = vmatprep.subr.bf16.mxu1 %v1131_v25 }
  0x27   : > { %1050 = vmatpush3.bf16.msra.mxu0 %v1132_v26 }
  0x28   : > { %1072 = vmatpush3.bf16.msra.mxu1 %v1133_v27  ;;  %1051 = vmatprep.subr.bf16.mxu0 %v1134_v28 }
  0x29   : > { %1073 = vmatprep.subr.bf16.mxu1 %v1135_v29 }
  0x2b   : > { %1052 = vmatpush3.bf16.msra.mxu0 %v1136_v30 }
  0x2c   : > { %1074 = vmatpush3.bf16.msra.mxu1 %v1137_v31 }
  0x2e   : > { %672 = vmatmul.mubr.bf16.vlgmr.msra.gmra.mxu0 %v1138_v32 }
  0x2f   : > { %713 = vmatmul.mubr.bf16.vlgmr.msra.gmra.mxu1 %v1141_v34 }
  0xee   : > { %v1053_v39 = vpop.f32.mrf.mxu0 }
  0xef   : > { %v1075_v41 = vpop.f32.mrf.mxu1 }
  0xf0   : > { %v1054_v42 = vpop.f32.mrf.mxu0 }
  0xf1   : > { %v1055_v44 = vadd.f32 %v1054_v42, %v1053_v39  ;;  %v1076_v45 = vpop.f32.mrf.mxu1 }
  0xf2   : > { %v1077_v46 = vadd.f32 %v1076_v45, %v1075_v41  ;;  %v1056_v47 = vpop.f32.mrf.mxu0 }
  0xf3   : > { %v1078_v50 = vpop.f32.mrf.mxu1 }
  0xf4   : > { %v715_v51 = vadd.f32 %v1077_v46, %v1055_v44  ;;  %v1057_v52 = vpop.f32.mrf.mxu0 }
  0xf5   : > { %v1058_v53 = vadd.f32 %v1057_v52, %v1056_v47  ;;  %v1079_v54 = vpop.f32.mrf.mxu1 }
  0xf6   : > { %v721_v55 = vadd.f32 %v985_v49, %v715_v51  ;;  %v1080_v56 = vadd.f32 %v1079_v54, %v1078_v50 }
  0xf8   : > { %v718_v59 = vadd.f32 %v1080_v56, %v1058_v53  ;;  %v742_v61 = vmul.f32 %v1022_v58, %v721_v55 }
  0xfa   : > { %v722_v62 = vadd.f32 %v985_v49, %v718_v59  ;;  %v751_v1 = vmul.f32 %v742_v61, %v742_v61 }
  0xfc   : > { %v743_v63 = vmul.f32 %v1023_v60, %v722_v62  ;;  %v1035_v0 = vpack.c.bf16 %v722_v62, %v721_v55 }
  0xfe   : > { %v744_v2 = vadd.f32 %v743_v63, %v742_v61  ;;  %v752_v3 = vmul.f32 %v743_v63, %v743_v63  ;;  %1036 = vst [vmem:[%s326_s11] sm:$0xff] %v1035_v0  }
 0x100   : > { %v745_v4 = vrot.slane %v744_v2, 4  ;;  %v753_v5 = vadd.f32 %v752_v3, %v751_v1 }
 0x102   : > { %v746_v6 = vadd.f32 %v745_v4, %v744_v2  ;;  %v754_v7 = vrot.slane %v753_v5, 4 }
 0x104   : > { %v747_v8 = vrot.slane %v746_v6, 2  ;;  %v755_v9 = vadd.f32 %v754_v7, %v753_v5 }
 0x106   : > { %v748_v10 = vadd.f32 %v747_v8, %v746_v6  ;;  %v756_v11 = vrot.slane %v755_v9, 2 }
 0x108   : > { %v749_v12 = vrot.slane %v748_v10, 1  ;;  %v757_v13 = vadd.f32 %v756_v11, %v755_v9 }
 0x10a   : > { %v750_v15 = vadd.f32 %v749_v12, %v748_v10  ;;  %v758_v16 = vrot.slane %v757_v13, 1 }
 0x10c   : > { %v759_v17 = vadd.f32 %v758_v16, %v757_v13  ;;  %v763_v18 = vmul.f32 %v1024_v14, %v750_v15 }
 0x10e   : > { %764 = vst [vmem:[%s334_s14] sm:$0xff] %v763_v18  ;;  %v765_v19 = vmul.f32 %v1024_v14, %v759_v17 }
 0x110   : > { %766 = vst [vmem:[%s341_s17] sm:$0xff] %v765_v19 }
 0x111 PF: > { %s16_s20 = sadd.s32 1, %s1166_s20   ;;  %s1353_s18 = smov %s1162_s19 }
 0x112   : > { %p13_p6 = scmp.ge.s32.totalorder %s16_s20, 4   ;;  %s1354_s19 = smov %s1356_s21 }
 0x114   :  { %15 = sbr.rel (!%p13_p6) target bundleno = 2 (0x2), region = 100 }

// kernel: multiscale_forward.31
= control target key start
LH: loop header
LB: loop body
LE: loop exit
PB: predicated region body
PF: predicated region fallthrough
CT: control target
= control target key end

     0   :  { %s1545_s12 = smov 0   ;;  %s1547_s13 = smov 0   ;;  %s1804_s0 = inlined_call_operand.vmem [shape: bf16[64,1024], index: 0, kind: input, shape index: {}]   ;;  %s1805_s1 = inlined_call_operand.vmem [shape: bf16[1024,128], index: 1, kind: input, shape index: {}]   ;;  %s1806_s2 = inlined_call_operand.vmem [shape: f32[1,128], index: 2, kind: input, shape index: {}]   ;;  %s1807_s3 = inlined_call_operand.vmem [shape: f32[64,128], index: 3, kind: output, shape index: {}]  }
   0x1   :  { %s1549_s14 = smov 0  }
   0x2 LB: > { %s28_s15 = sadd.s32 1, %s1519_s13  ;;  %p1211_p0 = scmp.ge.s32.totalorder %s1523_s14, 1  ;;  %s1523_s14 = sphi %s1549_s14, %s13_s14   ;;  %s1519_s13 = sphi %s1547_s13, %s1809_s13   ;;  %s1515_s12 = sphi %s1545_s12, %s1808_s12  }
   0x3   : > { %p30_p1 = scmp.ge.s32.totalorder %s28_s15, 2  ;;  %p184_p2 = scmp.lt.s32.totalorder %s1523_s14, 3 }
   0x5   : > { %s1811_s15 = smov (%p30_p1, %s28_s15), 0  ;;  %p185_p3 = pnand %p1211_p0, %p184_p2 }
   0x6   : > { %s1212_s25 = sshll.u32 (!%p185_p3), %s1515_s12, 2 }
   0x7   : > { %188 = sbr.rel (%p185_p3) target bundleno = 294 (0x126), region = 32  ;;  %p225_p4 = scmp.lt.s32.totalorder (!%p185_p3), %s1212_s25, 7 }
   0xc   : > { %v1437_v0 = vld [vmem:[%s1805_s1 + $0x78] sm:$0xff]   ;;  %v1441_v4 = vld [vmem:[%s1805_s1 + $0x70] sm:$0xff]   ;;  %v1445_v8 = vld [vmem:[%s1805_s1 + $0x68] sm:$0xff]   ;;  %s1813_s25 = smov (!%p225_p4, %s1212_s25), 7 }
   0xd   : > { %v1438_v1 = vld [vmem:[%s1805_s1 + $0xf8] sm:$0xff]   ;;  %1301 = vmatprep.subr.bf16.mxu0 %v1437_v0  ;;  %v1442_v5 = vld [vmem:[%s1805_s1 + $0xf0] sm:$0xff]   ;;  %v1446_v9 = vld [vmem:[%s1805_s1 + $0xe8] sm:$0xff]   ;;  %s1300_s24 = sshll.u32 %s1813_s25, 5 }
   0xe   : > { %v1439_v2 = vld [vmem:[%s1805_s1 + $0x38] sm:$0xff]   ;;  %1329 = vmatprep.subr.bf16.mxu1 %v1438_v1  ;;  %v1443_v6 = vld [vmem:[%s1805_s1 + $0x30] sm:$0xff]   ;;  %v1447_v10 = vld [vmem:[%s1805_s1 + $0x28] sm:$0xff]   ;;  %s1662_s12 = scalar_lea.vmem %s1804_s0, %s1300_s24 }
   0xf   : > { %v1440_v3 = vld [vmem:[%s1805_s1 + $0xb8] sm:$0xff]   ;;  %1302 = vmatpush3.bf16.msra.mxu0 %v1439_v2  ;;  %v1444_v7 = vld [vmem:[%s1805_s1 + $0xb0] sm:$0xff]   ;;  %v1448_v11 = vld [vmem:[%s1805_s1 + $0xa8] sm:$0xff]  }
  0x10   : > { %1330 = vmatpush3.bf16.msra.mxu1 %v1440_v3  ;;  %1303 = vmatprep.subr.bf16.mxu0 %v1441_v4  ;;  %v1449_v12 = vld [vmem:[%s1805_s1 + $0x60] sm:$0xff]   ;;  %v1453_v16 = vld [vmem:[%s1805_s1 + $0x58] sm:$0xff]   ;;  %v1457_v20 = vld [vmem:[%s1805_s1 + $0x50] sm:$0xff]  }
  0x11   : > { %1331 = vmatprep.subr.bf16.mxu1 %v1442_v5  ;;  %v1450_v13 = vld [vmem:[%s1805_s1 + $0xe0] sm:$0xff]   ;;  %v1454_v17 = vld [vmem:[%s1805_s1 + $0xd8] sm:$0xff]   ;;  %v1458_v21 = vld [vmem:[%s1805_s1 + $0xd0] sm:$0xff]  }
  0x12   : > { %v1451_v14 = vld [vmem:[%s1805_s1 + $0x20] sm:$0xff]   ;;  %v1455_v18 = vld [vmem:[%s1805_s1 + $0x18] sm:$0xff]   ;;  %v1459_v22 = vld [vmem:[%s1805_s1 + $0x10] sm:$0xff]  }
  0x13   : > { %1304 = vmatpush3.bf16.msra.mxu0 %v1443_v6  ;;  %v1452_v15 = vld [vmem:[%s1805_s1 + $0xa0] sm:$0xff]   ;;  %v1456_v19 = vld [vmem:[%s1805_s1 + $0x98] sm:$0xff]   ;;  %v1460_v23 = vld [vmem:[%s1805_s1 + $0x90] sm:$0xff]  }
  0x14   : > { %1332 = vmatpush3.bf16.msra.mxu1 %v1444_v7  ;;  %1305 = vmatprep.subr.bf16.mxu0 %v1445_v8  ;;  %v1461_v24 = vld [vmem:[%s1805_s1 + $0x48] sm:$0xff]   ;;  %v1465_v28 = vld [vmem:[%s1805_s1 + $0x40] sm:$0xff]   ;;  %v1469_v40 = vld [vmem:[%s1805_s1 + $0x178] sm:$0xff]  }
  0x15   : > { %1333 = vmatprep.subr.bf16.mxu1 %v1446_v9  ;;  %v1462_v25 = vld [vmem:[%s1805_s1 + $0xc8] sm:$0xff]   ;;  %v1466_v29 = vld [vmem:[%s1805_s1 + $0xc0] sm:$0xff]   ;;  %v1470_v41 = vld [vmem:[%s1805_s1 + $0x1f8] sm:$0xff]  }
  0x16   : > { %v1463_v26 = vld [vmem:[%s1805_s1 + $0x8] sm:$0xff]   ;;  %v1467_v30 = vld [vmem:[%s1805_s1] sm:$0xff]   ;;  %v1471_v42 = vld [vmem:[%s1805_s1 + $0x138] sm:$0xff]  }
  0x17   : > { %1306 = vmatpush3.bf16.msra.mxu0 %v1447_v10  ;;  %v1464_v27 = vld [vmem:[%s1805_s1 + $0x88] sm:$0xff]   ;;  %v1468_v31 = vld [vmem:[%s1805_s1 + $0x80] sm:$0xff]   ;;  %v1472_v43 = vld [vmem:[%s1805_s1 + $0x1b8] sm:$0xff]  }
  0x18   : > { %1334 = vmatpush3.bf16.msra.mxu1 %v1448_v11  ;;  %1307 = vmatprep.subr.bf16.mxu0 %v1449_v12  ;;  %v399_v32 = vld [vmem:[%s1662_s12] sm:$0xff]  ;;  %v400_v34 = vld [vmem:[%s1662_s12 + $0x8] sm:$0xff]  ;;  %v1473_v44 = vld [vmem:[%s1805_s1 + $0x170] sm:$0xff]  }
  0x19   : > { %1335 = vmatprep.subr.bf16.mxu1 %v1450_v13  ;;  %v403_v33 = vld [vmem:[%s1662_s12 + $0x20] sm:$0xff]  ;;  %v404_v37 = vld [vmem:[%s1662_s12 + $0x28] sm:$0xff]  ;;  %v1474_v45 = vld [vmem:[%s1805_s1 + $0x1f0] sm:$0xff]  }
  0x1a   : > { %v1218_v35 = vcombine.low %v399_v32, %v403_v33  ;;  %v1219_v36 = vcombine.high %v399_v32, %v403_v33  ;;  %v1220_v38 = vcombine.low %v400_v34, %v404_v37  ;;  %v1221_v39 = vcombine.high %v400_v34, %v404_v37  ;;  %v1475_v46 = vld [vmem:[%s1805_s1 + $0x130] sm:$0xff]   ;;  %v1477_v48 = vld [vmem:[%s1805_s1 + $0x168] sm:$0xff]   ;;  %v1481_v52 = vld [vmem:[%s1805_s1 + $0x160] sm:$0xff]  }
  0x1b   : > { %1308 = vmatpush3.bf16.msra.mxu0 %v1451_v14  ;;  %v1476_v47 = vld [vmem:[%s1805_s1 + $0x1b0] sm:$0xff]   ;;  %v1478_v49 = vld [vmem:[%s1805_s1 + $0x1e8] sm:$0xff]   ;;  %v1482_v53 = vld [vmem:[%s1805_s1 + $0x1e0] sm:$0xff]  }
  0x1c   : > { %1336 = vmatpush3.bf16.msra.mxu1 %v1452_v15  ;;  %1309 = vmatprep.subr.bf16.mxu0 %v1453_v16  ;;  %v1479_v50 = vld [vmem:[%s1805_s1 + $0x128] sm:$0xff]   ;;  %v1483_v54 = vld [vmem:[%s1805_s1 + $0x120] sm:$0xff]   ;;  %v1485_v56 = vld [vmem:[%s1805_s1 + $0x158] sm:$0xff]  }
  0x1d   : > { %1337 = vmatprep.subr.bf16.mxu1 %v1454_v17  ;;  %911 = vmatprep.mubr.bf16.mxu0 %v1219_v36  ;;  %v1480_v51 = vld [vmem:[%s1805_s1 + $0x1a8] sm:$0xff]   ;;  %v1484_v55 = vld [vmem:[%s1805_s1 + $0x1a0] sm:$0xff]   ;;  %v1486_v57 = vld [vmem:[%s1805_s1 + $0x1d8] sm:$0xff]  }
  0x1e   : > { %960 = vmatprep.mubr.bf16.mxu1 %v1221_v39  ;;  %v407_v58 = vld [vmem:[%s1662_s12 + $0x40] sm:$0xff]  ;;  %v408_v61 = vld [vmem:[%s1662_s12 + $0x48] sm:$0xff]  ;;  %v1487_v1 = vld [vmem:[%s1805_s1 + $0x118] sm:$0xff]  }
  0x1f   : > { %1310 = vmatpush3.bf16.msra.mxu0 %v1455_v18  ;;  %v411_v59 = vld [vmem:[%s1662_s12 + $0x60] sm:$0xff]  ;;  %v412_v62 = vld [vmem:[%s1662_s12 + $0x68] sm:$0xff]  ;;  %v1488_v3 = vld [vmem:[%s1805_s1 + $0x198] sm:$0xff]  }
  0x20   : > { %1338 = vmatpush3.bf16.msra.mxu1 %v1456_v19  ;;  %1311 = vmatprep.subr.bf16.mxu0 %v1457_v20  ;;  %v1227_v60 = vcombine.high %v407_v58, %v411_v59  ;;  %v1226_v63 = vcombine.low %v407_v58, %v411_v59  ;;  %v1229_v0 = vcombine.high %v408_v61, %v412_v62  ;;  %v1489_v4 = vld [vmem:[%s1805_s1 + $0x150] sm:$0xff]   ;;  %v1493_v8 = vld [vmem:[%s1805_s1 + $0x148] sm:$0xff]   ;;  %v1497_v12 = vld [vmem:[%s1805_s1 + $0x140] sm:$0xff]  }
  0x21   : > { %1339 = vmatprep.subr.bf16.mxu1 %v1458_v21  ;;  %v1228_v2 = vcombine.low %v408_v61, %v412_v62  ;;  %v1490_v5 = vld [vmem:[%s1805_s1 + $0x1d0] sm:$0xff]   ;;  %v1494_v9 = vld [vmem:[%s1805_s1 + $0x1c8] sm:$0xff]   ;;  %v1498_v13 = vld [vmem:[%s1805_s1 + $0x1c0] sm:$0xff]  }
  0x22   : > { %v1491_v6 = vld [vmem:[%s1805_s1 + $0x110] sm:$0xff]   ;;  %v1495_v10 = vld [vmem:[%s1805_s1 + $0x108] sm:$0xff]   ;;  %v1499_v14 = vld [vmem:[%s1805_s1 + $0x100] sm:$0xff]  }
  0x23   : > { %1312 = vmatpush3.bf16.msra.mxu0 %v1459_v22  ;;  %v1492_v7 = vld [vmem:[%s1805_s1 + $0x190] sm:$0xff]   ;;  %v1496_v11 = vld [vmem:[%s1805_s1 + $0x188] sm:$0xff]   ;;  %v1500_v15 = vld [vmem:[%s1805_s1 + $0x180] sm:$0xff]  }
  0x24   : > { %1340 = vmatpush3.bf16.msra.mxu1 %v1460_v23  ;;  %1313 = vmatprep.subr.bf16.mxu0 %v1461_v24  ;;  %v401_v16 = vld [vmem:[%s1662_s12 + $0x10] sm:$0xff]  ;;  %v402_v18 = vld [vmem:[%s1662_s12 + $0x18] sm:$0xff] }
  0x25   : > { %1341 = vmatprep.subr.bf16.mxu1 %v1462_v25  ;;  %v405_v17 = vld [vmem:[%s1662_s12 + $0x30] sm:$0xff]  ;;  %v406_v19 = vld [vmem:[%s1662_s12 + $0x38] sm:$0xff] }
  0x26   : > { %v1222_v20 = vcombine.low %v401_v16, %v405_v17  ;;  %v1223_v21 = vcombine.high %v401_v16, %v405_v17  ;;  %v1224_v22 = vcombine.low %v402_v18, %v406_v19  ;;  %v1225_v23 = vcombine.high %v402_v18, %v406_v19  ;;  %v409_v24 = vld [vmem:[%s1662_s12 + $0x50] sm:$0xff] }
  0x27   : > { %1314 = vmatpush3.bf16.msra.mxu0 %v1463_v26  ;;  %v413_v25 = vld [vmem:[%s1662_s12 + $0x70] sm:$0xff]  ;;  %v410_v26 = vld [vmem:[%s1662_s12 + $0x58] sm:$0xff] }
  0x28   : > { %1342 = vmatpush3.bf16.msra.mxu1 %v1464_v27  ;;  %1315 = vmatprep.subr.bf16.mxu0 %v1465_v28  ;;  %v1231_v27 = vcombine.high %v409_v24, %v413_v25  ;;  %v414_v28 = vld [vmem:[%s1662_s12 + $0x78] sm:$0xff]  ;;  %s1216_s12 = sshll.u32 %s1813_s25, 3 }
  0x29   : > { %1343 = vmatprep.subr.bf16.mxu1 %v1466_v29  ;;  %v1233_v29 = vcombine.high %v410_v26, %v414_v28  ;;  %s1789_s17 = scalar_lea.vmem %s1807_s3, %s1216_s12 }
  0x2b   : > { %1316 = vmatpush3.bf16.msra.mxu0 %v1467_v30  ;;  %v1230_v30 = vcombine.low %v409_v24, %v413_v25 }
  0x2c   : > { %1344 = vmatpush3.bf16.msra.mxu1 %v1468_v31  ;;  %1357 = vmatprep.subr.bf16.mxu0 %v1469_v40  ;;  %v1232_v31 = vcombine.low %v410_v26, %v414_v28 }
  0x2d   : > { %1385 = vmatprep.subr.bf16.mxu1 %v1470_v41 }
  0x2e   : > { %912 = vmatmul.mubr.bf16.vlgmr.msra.gmra.mxu0 %v1218_v35 }
  0x2f   : > { %961 = vmatmul.mubr.bf16.vlgmr.msra.gmra.mxu1 %v1220_v38  ;;  %1358 = vmatpush3.bf16.msra.mxu0 %v1471_v42 }
  0x30   : > { %1386 = vmatpush3.bf16.msra.mxu1 %v1472_v43  ;;  %1359 = vmatprep.subr.bf16.mxu0 %v1473_v44 }
  0x31   : > { %1387 = vmatprep.subr.bf16.mxu1 %v1474_v45  ;;  %919 = vmatprep.mubr.bf16.mxu0 %v1227_v60 }
  0x32   : > { %968 = vmatprep.mubr.bf16.mxu1 %v1229_v0  ;;  %v1217_v0 = vld [vmem:[%s1806_s2] ss:$0 sm:$0xff] }
  0x33   : > { %1360 = vmatpush3.bf16.msra.mxu0 %v1475_v46 }
  0x34   : > { %1388 = vmatpush3.bf16.msra.mxu1 %v1476_v47  ;;  %1361 = vmatprep.subr.bf16.mxu0 %v1477_v48 }
  0x35   : > { %1389 = vmatprep.subr.bf16.mxu1 %v1478_v49 }
  0x36   : > { %920 = vmatmul.mubr.bf16.gmra.mxu0 %v1226_v63 }
  0x37   : > { %1362 = vmatpush3.bf16.msra.mxu0 %v1479_v50  ;;  %969 = vmatmul.mubr.bf16.gmra.mxu1 %v1228_v2 }
  0x38   : > { %1390 = vmatpush3.bf16.msra.mxu1 %v1480_v51  ;;  %1363 = vmatprep.subr.bf16.mxu0 %v1481_v52 }
  0x39   : > { %1391 = vmatprep.subr.bf16.mxu1 %v1482_v53  ;;  %1009 = vmatprep.mubr.bf16.mxu0 %v1223_v21 }
  0x3a   : > { %1058 = vmatprep.mubr.bf16.mxu1 %v1225_v23 }
  0x3b   : > { %1364 = vmatpush3.bf16.msra.mxu0 %v1483_v54 }
  0x3c   : > { %1392 = vmatpush3.bf16.msra.mxu1 %v1484_v55  ;;  %1365 = vmatprep.subr.bf16.mxu0 %v1485_v56 }
  0x3d   : > { %1393 = vmatprep.subr.bf16.mxu1 %v1486_v57 }
  0x3f   : > { %1366 = vmatpush3.bf16.msra.mxu0 %v1487_v1 }
  0x40   : > { %1394 = vmatpush3.bf16.msra.mxu1 %v1488_v3  ;;  %1367 = vmatprep.subr.bf16.mxu0 %v1489_v4 }
  0x41   : > { %1395 = vmatprep.subr.bf16.mxu1 %v1490_v5 }
  0x43   : > { %1368 = vmatpush3.bf16.msra.mxu0 %v1491_v6 }
  0x44   : > { %1396 = vmatpush3.bf16.msra.mxu1 %v1492_v7  ;;  %1369 = vmatprep.subr.bf16.mxu0 %v1493_v8 }
  0x45   : > { %1397 = vmatprep.subr.bf16.mxu1 %v1494_v9 }
  0x47   : > { %1370 = vmatpush3.bf16.msra.mxu0 %v1495_v10 }
  0x48   : > { %1398 = vmatpush3.bf16.msra.mxu1 %v1496_v11  ;;  %1371 = vmatprep.subr.bf16.mxu0 %v1497_v12 }
  0x49   : > { %1399 = vmatprep.subr.bf16.mxu1 %v1498_v13 }
  0x4b   : > { %1372 = vmatpush3.bf16.msra.mxu0 %v1499_v14 }
  0x4c   : > { %1400 = vmatpush3.bf16.msra.mxu1 %v1500_v15 }
  0x4e   : > { %1010 = vmatmul.mubr.bf16.vlgmr.msra.gmra.mxu0 %v1222_v20 }
  0x4f   : > { %1059 = vmatmul.mubr.bf16.vlgmr.msra.gmra.mxu1 %v1224_v22  ;;  %1017 = vmatprep.mubr.bf16.mxu0 %v1231_v27 }
  0x50   : > { %1066 = vmatprep.mubr.bf16.mxu1 %v1233_v29 }
  0x56   : > { %1018 = vmatmul.mubr.bf16.gmra.mxu0 %v1230_v30 }
  0x57   : > { %1067 = vmatmul.mubr.bf16.gmra.mxu1 %v1232_v31 }
  0xee   : > { %v1317_v32 = vpop.f32.mrf.mxu0 }
  0xef   : > { %v1345_v33 = vpop.f32.mrf.mxu1 }
  0xf0   : > { %v1318_v34 = vpop.f32.mrf.mxu0 }
  0xf1   : > { %v1346_v35 = vpop.f32.mrf.mxu1  ;;  %v1319_v48 = vadd.f32 %v1318_v34, %v1317_v32 }
  0xf2   : > { %v1320_v36 = vpop.f32.mrf.mxu0  ;;  %v1347_v49 = vadd.f32 %v1346_v35, %v1345_v33 }
  0xf3   : > { %v1348_v37 = vpop.f32.mrf.mxu1 }
  0xf4   : > { %v1321_v38 = vpop.f32.mrf.mxu0  ;;  %v963_v54 = vadd.f32 %v1347_v49, %v1319_v48 }
  0xf5   : > { %v1349_v39 = vpop.f32.mrf.mxu1  ;;  %v1322_v55 = vadd.f32 %v1321_v38, %v1320_v36 }
  0xf6   : > { %v1323_v40 = vpop.f32.mrf.mxu0  ;;  %v1350_v56 = vadd.f32 %v1349_v39, %v1348_v37 }
  0xf7   : > { %v1351_v41 = vpop.f32.mrf.mxu1 }
  0xf8   : > { %v1324_v42 = vpop.f32.mrf.mxu0  ;;  %v966_v3 = vadd.f32 %v1350_v56, %v1322_v55 }
  0xf9   : > { %v1352_v43 = vpop.f32.mrf.mxu1  ;;  %v1325_v62 = vadd.f32 %v1324_v42, %v1323_v40 }
  0xfa   : > { %v1326_v44 = vpop.f32.mrf.mxu0  ;;  %v1353_v63 = vadd.f32 %v1352_v43, %v1351_v41 }
  0xfb   : > { %v1354_v45 = vpop.f32.mrf.mxu1 }
  0xfc   : > { %v1327_v46 = vpop.f32.mrf.mxu0  ;;  %v971_v11 = vadd.f32 %v1353_v63, %v1325_v62 }
  0xfd   : > { %v1355_v47 = vpop.f32.mrf.mxu1  ;;  %v1328_v14 = vadd.f32 %v1327_v46, %v1326_v44 }
  0xfe   : > { %v1356_v15 = vadd.f32 %v1355_v47, %v1354_v45 }
 0x100   : > { %v974_v25 = vadd.f32 %v1356_v15, %v1328_v14 }
 0x10e   : > { %v1373_v50 = vpop.f32.mrf.mxu0 }
 0x10f   : > { %v1401_v51 = vpop.f32.mrf.mxu1 }
 0x110   : > { %v1374_v52 = vpop.f32.mrf.mxu0 }
 0x111   : > { %v1402_v53 = vpop.f32.mrf.mxu1  ;;  %v1375_v57 = vadd.f32 %v1374_v52, %v1373_v50 }
 0x112   : > { %v1376_v58 = vpop.f32.mrf.mxu0  ;;  %v1403_v61 = vadd.f32 %v1402_v53, %v1401_v51 }
 0x113   : > { %v1404_v59 = vpop.f32.mrf.mxu1  ;;  %v1012_v60 = vadd.f32 %v1375_v57, %v963_v54 }
 0x114   : > { %v1377_v1 = vpop.f32.mrf.mxu0 }
 0x115   : > { %v1405_v2 = vpop.f32.mrf.mxu1  ;;  %v1061_v4 = vadd.f32 %v1403_v61, %v1012_v60  ;;  %v1378_v5 = vadd.f32 %v1377_v1, %v1376_v58 }
 0x116   : > { %v1379_v6 = vpop.f32.mrf.mxu0  ;;  %v1406_v10 = vadd.f32 %v1405_v2, %v1404_v59 }
 0x117   : > { %v1407_v7 = vpop.f32.mrf.mxu1  ;;  %v1075_v8 = vadd.f32 %v1217_v0, %v1061_v4  ;;  %v1015_v9 = vadd.f32 %v1378_v5, %v966_v3 }
 0x118   : > { %v1380_v12 = vpop.f32.mrf.mxu0 }
 0x119   : > { %v1408_v13 = vpop.f32.mrf.mxu1  ;;  %1090 = vst [vmem:[%s1789_s17] sm:$0xff] %v1075_v8  ;;  %v1064_v16 = vadd.f32 %v1406_v10, %v1015_v9  ;;  %v1381_v17 = vadd.f32 %v1380_v12, %v1379_v6 }
 0x11a   : > { %v1382_v18 = vpop.f32.mrf.mxu0  ;;  %v1409_v22 = vadd.f32 %v1408_v13, %v1407_v7 }
 0x11b   : > { %v1410_v19 = vpop.f32.mrf.mxu1  ;;  %v1076_v20 = vadd.f32 %v1217_v0, %v1064_v16  ;;  %v1020_v21 = vadd.f32 %v1381_v17, %v971_v11 }
 0x11c   : > { %v1383_v23 = vpop.f32.mrf.mxu0 }
 0x11d   : > { %v1411_v24 = vpop.f32.mrf.mxu1  ;;  %1091 = vst [vmem:[%s1789_s17 + $0x8] sm:$0xff] %v1076_v20  ;;  %v1069_v26 = vadd.f32 %v1409_v22, %v1020_v21  ;;  %v1384_v27 = vadd.f32 %v1383_v23, %v1382_v18 }
 0x11e   : > { %v1412_v30 = vadd.f32 %v1411_v24, %v1410_v19 }
 0x11f   : > { %v1077_v28 = vadd.f32 %v1217_v0, %v1069_v26  ;;  %v1023_v29 = vadd.f32 %v1384_v27, %v974_v25 }
 0x121   : > { %1092 = vst [vmem:[%s1789_s17 + $0x10] sm:$0xff] %v1077_v28  ;;  %v1072_v31 = vadd.f32 %v1412_v30, %v1023_v29 }
 0x123   : > { %v1078_v32 = vadd.f32 %v1217_v0, %v1072_v31 }
 0x125   : > { %1093 = vst [vmem:[%s1789_s17 + $0x18] sm:$0xff] %v1078_v32 }
 0x126 PF: > { %s13_s14 = sadd.s32 1, %s1523_s14   ;;  %s1808_s12 = smov %s1519_s13 }
 0x127   : > { %p10_p5 = scmp.ge.s32.totalorder %s13_s14, 4   ;;  %s1809_s13 = smov %s1811_s15 }
 0x129   :  { %12 = sbr.rel (!%p10_p5) target bundleno = 2 (0x2), region = 76 }

// kernel: multiscale_forward.32
= control target key start
LH: loop header
LB: loop body
LE: loop exit
PB: predicated region body
PF: predicated region fallthrough
CT: control target
= control target key end

     0   :  { %s663_s12 = smov 0   ;;  %s665_s13 = smov 0   ;;  %s727_s0 = inlined_call_operand.vmem [shape: bf16[64,128], index: 0, kind: input, shape index: {}]   ;;  %s728_s1 = inlined_call_operand.vmem [shape: bf16[128,128], index: 1, kind: input, shape index: {}]   ;;  %s729_s2 = inlined_call_operand.vmem [shape: f32[1,128], index: 2, kind: input, shape index: {}]   ;;  %s730_s3 = inlined_call_operand.vmem [shape: f32[64,128], index: 3, kind: output, shape index: {}]  }
   0x1   :  { %s667_s14 = smov 0  }
   0x2 LB: > { %s28_s15 = sadd.s32 1, %s637_s13  ;;  %p537_p0 = scmp.ge.s32.totalorder %s641_s14, 1  ;;  %s641_s14 = sphi %s667_s14, %s13_s14   ;;  %s637_s13 = sphi %s665_s13, %s732_s13   ;;  %s633_s12 = sphi %s663_s12, %s731_s12  }
   0x3   : > { %p30_p1 = scmp.ge.s32.totalorder %s28_s15, 2  ;;  %p181_p2 = scmp.lt.s32.totalorder %s641_s14, 3 }
   0x5   : > { %s734_s15 = smov (%p30_p1, %s28_s15), 0  ;;  %p182_p3 = pnand %p537_p0, %p181_p2 }
   0x6   : > { %s538_s18 = sshll.u32 (!%p182_p3), %s633_s12, 2 }
   0x7   : > { %185 = sbr.rel (%p182_p3) target bundleno = 250 (0xfa), region = 32  ;;  %p219_p4 = scmp.lt.s32.totalorder (!%p182_p3), %s538_s18, 7 }
   0xc   : > { %v609_v0 = vld [vmem:[%s728_s1 + $0x38] sm:$0xff]   ;;  %v610_v1 = vld [vmem:[%s728_s1 + $0x30] sm:$0xff]   ;;  %s736_s18 = smov (!%p219_p4, %s538_s18), 7  ;;  %v611_v2 = vld [vmem:[%s728_s1 + $0x28] sm:$0xff]  }
   0xd   : > { %565 = vmatprep.subr.bf16.mxu0 %v609_v0  ;;  %s539_s23 = sshll.u32 %s736_s18, 2  ;;  %v612_v3 = vld [vmem:[%s728_s1 + $0x20] sm:$0xff]   ;;  %v613_v5 = vld [vmem:[%s728_s1 + $0x18] sm:$0xff]   ;;  %v614_v6 = vld [vmem:[%s728_s1 + $0x10] sm:$0xff]   ;;  %s541_s12 = sshll.u32 %s736_s18, 3 }
   0xe   : > { %566 = vmatpush3.bf16.msra.mxu0 %v609_v0  ;;  %s225_s26 = scalar_lea.vmem %s727_s0, %s539_s23  ;;  %v615_v7 = vld [vmem:[%s728_s1 + $0x8] sm:$0xff]   ;;  %v616_v8 = vld [vmem:[%s728_s1] sm:$0xff]   ;;  %s241_s19 = scalar_lea.vmem %s730_s3, %s541_s12 }
   0xf   : > { %567 = vmatprep.subr.bf16.mxu0 %v610_v1  ;;  %v617_v4 = vld [vmem:[%s225_s26] sm:$0xff]   ;;  %v618_v9 = vld [vmem:[%s225_s26 + $0x8] sm:$0xff]  }
  0x10   : > { %581 = vmatprep.mubr.bf16.mxu0 %v617_v4  ;;  %v542_v11 = vld [vmem:[%s729_s2] ss:$0 sm:$0xff] }
  0x12   : > { %568 = vmatpush3.bf16.msra.mxu0 %v610_v1 }
  0x13   : > { %569 = vmatprep.subr.bf16.mxu0 %v611_v2 }
  0x16   : > { %570 = vmatpush3.bf16.msra.mxu0 %v611_v2 }
  0x17   : > { %571 = vmatprep.subr.bf16.mxu0 %v612_v3 }
  0x1a   : > { %572 = vmatpush3.bf16.msra.mxu0 %v612_v3 }
  0x1b   : > { %573 = vmatprep.subr.bf16.mxu0 %v613_v5 }
  0x1e   : > { %574 = vmatpush3.bf16.msra.mxu0 %v613_v5 }
  0x1f   : > { %575 = vmatprep.subr.bf16.mxu0 %v614_v6 }
  0x22   : > { %576 = vmatpush3.bf16.msra.mxu0 %v614_v6 }
  0x23   : > { %577 = vmatprep.subr.bf16.mxu0 %v615_v7 }
  0x26   : > { %578 = vmatpush3.bf16.msra.mxu0 %v615_v7 }
  0x27   : > { %579 = vmatprep.subr.bf16.mxu0 %v616_v8 }
  0x2a   : > { %580 = vmatpush3.bf16.msra.mxu0 %v616_v8 }
  0x2d   : > { %582 = vmatmul.mubr.bf16.vlgmr.msra.gmra.mxu0 %v618_v9 }
  0xed   : > { %v583_v10 = vpop.f32.mrf.mxu0 }
  0xee   : > { %v394_v14 = vadd.f32 %v583_v10, %v542_v11 }
  0xef   : > { %v377_v12 = vpop.f32.mrf.mxu0 }
  0xf0   : > { %v392_v13 = vadd.f32 %v542_v11, %v377_v12  ;;  %v413_v21 = vmul.f32 0.2, %v394_v14  ;;  %vm409_vm1 = vcmp.ge.f32.partialorder %v394_v14, 0.0 }
  0xf1   : > { %v584_v15 = vpop.f32.mrf.mxu0 }
  0xf2   : > { %vm407_vm0 = vcmp.ge.f32.partialorder %v392_v13, 0.0  ;;  %v411_v16 = vmul.f32 0.2, %v392_v13  ;;  %v395_v17 = vadd.f32 %v584_v15, %v542_v11  ;;  %v417_v25 = vsel %vm409_vm1, %v394_v14, %v413_v21 }
  0xf3   : > { %v380_v18 = vpop.f32.mrf.mxu0  ;;  %421 = vst [vmem:[%s241_s19 + $0x10] sm:$0xff] %v417_v25 }
  0xf4   : > { %v415_v19 = vsel %vm407_vm0, %v392_v13, %v411_v16  ;;  %v393_v20 = vadd.f32 %v542_v11, %v380_v18  ;;  %v414_v22 = vmul.f32 0.2, %v395_v17  ;;  %vm410_vm3 = vcmp.ge.f32.partialorder %v395_v17, 0.0 }
  0xf5   : > { %419 = vst [vmem:[%s241_s19] sm:$0xff] %v415_v19 }
  0xf6   : > { %vm408_vm2 = vcmp.ge.f32.partialorder %v393_v20, 0.0  ;;  %v412_v23 = vmul.f32 0.2, %v393_v20  ;;  %v418_v26 = vsel %vm410_vm3, %v395_v17, %v414_v22 }
  0xf7   : > { %422 = vst [vmem:[%s241_s19 + $0x18] sm:$0xff] %v418_v26 }
  0xf8   : > { %v416_v24 = vsel %vm408_vm2, %v393_v20, %v412_v23 }
  0xf9   : > { %420 = vst [vmem:[%s241_s19 + $0x8] sm:$0xff] %v416_v24 }
  0xfa PF: > { %s13_s14 = sadd.s32 1, %s641_s14   ;;  %s731_s12 = smov %s637_s13 }
  0xfb   : > { %p10_p5 = scmp.ge.s32.totalorder %s13_s14, 4   ;;  %s732_s13 = smov %s734_s15 }
  0xfd   :  { %12 = sbr.rel (!%p10_p5) target bundleno = 2 (0x2), region = 76 }

// kernel: multiscale_forward.33
= control target key start
LH: loop header
LB: loop body
LE: loop exit
PB: predicated region body
PF: predicated region fallthrough
CT: control target
= control target key end

     0   :  { %s868_s18 = smov 0   ;;  %s870_s19 = smov 0   ;;  %s959_s0 = inlined_call_operand.vmem [shape: bf16[32,128], index: 0, kind: input, shape index: {}]   ;;  %s960_s1 = inlined_call_operand.vmem [shape: bf16[128,128], index: 1, kind: input, shape index: {}]   ;;  %s961_s2 = inlined_call_operand.vmem [shape: f32[1,128], index: 2, kind: input, shape index: {}]   ;;  %s962_s3 = inlined_call_operand.vmem [shape: bf16[32,128], index: 3, kind: output, shape index: {0}]   ;;  %s963_s4 = inlined_call_operand.vmem [shape: f32[16,128], index: 4, kind: output, shape index: {1}]   ;;  %s964_s5 = inlined_call_operand.vmem [shape: f32[16,128], index: 5, kind: output, shape index: {2}]  }
   0x1   :  { %s872_s20 = smov 0  }
   0x2 LB: > { %s31_s21 = sadd.s32 1, %s830_s19  ;;  %p716_p0 = scmp.ge.s32.totalorder %s834_s20, 1  ;;  %s834_s20 = sphi %s872_s20, %s16_s20   ;;  %s830_s19 = sphi %s870_s19, %s966_s19   ;;  %s826_s18 = sphi %s868_s18, %s965_s18  }
   0x3   : > { %p33_p1 = scmp.ge.s32.totalorder %s31_s21, 2  ;;  %p240_p2 = scmp.lt.s32.totalorder %s834_s20, 3 }
   0x5   : > { %s968_s21 = smov (%p33_p1, %s31_s21), 0  ;;  %p241_p3 = pnand %p716_p0, %p240_p2 }
   0x6   : > { %s717_s26 = sshll.u32 (!%p241_p3), %s826_s18, 1  ;;  %s723_s22 = sshll.u32 (!%p241_p3), %s826_s18, 4 }
   0x7   : > { %244 = sbr.rel (%p241_p3) target bundleno = 265 (0x109), region = 32  ;;  %p296_p4 = scmp.lt.s32.totalorder (!%p241_p3), %s717_s26, 3 }
   0x8   : > { %p320_p5 = scmp.lt.s32.totalorder (!%p241_p3), %s826_s18, 1 }
   0xc   : > { %v803_v0 = vld [vmem:[%s960_s1 + $0x38] sm:$0xff]   ;;  %v836_v1 = vmov 0.0   ;;  %v804_v2 = vld [vmem:[%s960_s1 + $0x30] sm:$0xff]   ;;  %vm837_vm0 = vmmov 0   ;;  %s970_s26 = smov (!%p296_p4, %s717_s26), 3  ;;  %v805_v3 = vld [vmem:[%s960_s1 + $0x28] sm:$0xff]   ;;  %v473_v10 = vlaneseq  ;;  %v476_v12 = vstv %s723_s22 }
   0xd   : > { %757 = vmatprep.subr.bf16.mxu0 %v836_v1  ;;  %773 = vmatprep.mubr.msk.bf16.mxu0 %vm837_vm0, %v836_v1  ;;  %s718_s29 = sshll.u32 %s970_s26, 2  ;;  %v806_v4 = vld [vmem:[%s960_s1 + $0x20] sm:$0xff]   ;;  %v807_v5 = vld [vmem:[%s960_s1 + $0x18] sm:$0xff]   ;;  %v808_v6 = vld [vmem:[%s960_s1 + $0x10] sm:$0xff]   ;;  %s972_s18 = smov (!%p320_p5, %s826_s18), 1 }
   0xe   : > { %758 = vmatpush3.bf16.msra.mxu0 %v803_v0  ;;  %s302_s7 = scalar_lea.vmem %s959_s0, %s718_s29  ;;  %v809_v7 = vld [vmem:[%s960_s1 + $0x8] sm:$0xff]   ;;  %v810_v8 = vld [vmem:[%s960_s1] sm:$0xff]   ;;  %v474_v11 = vshrl.u32 %v473_v10, 7  ;;  %s318_s28 = scalar_lea.vmem %s962_s3, %s718_s29 }
   0xf   : > { %759 = vmatprep.subr.bf16.mxu0 %v836_v1  ;;  %v811_v9 = vld [vmem:[%s302_s7] sm:$0xff]   ;;  %s721_s26 = sshll.u32 %s972_s18, 3 }
  0x10   : > { %v475_v13 = vadd.s32 8, %v474_v11  ;;  %v477_v14 = vadd.s32 %v476_v12, %v474_v11  ;;  %v724_v16 = vld [vmem:[%s961_s2] ss:$0 sm:$0xff]  ;;  %vm503_vm3 = vcmp.eq.s32.totalorder %v474_v11, 0  ;;  %s326_s6 = scalar_lea.vmem %s963_s4, %s721_s26  ;;  %s333_s9 = scalar_lea.vmem %s964_s5, %s721_s26 }
  0x11   : > { %v736_v41 = vsel %vm503_vm3, 1.0, %v836_v1 }
  0x12   : > { %760 = vmatpush3.bf16.msra.mxu0 %v804_v2  ;;  %v478_v15 = vadd.s32 %v476_v12, %v475_v13  ;;  %vm479_vm1 = vcmp.lt.s32.totalorder %v477_v14, 18 }
  0x13   : > { %761 = vmatprep.subr.bf16.mxu0 %v836_v1  ;;  %v734_v19 = vsel %vm479_vm1, 1.0, %v836_v1 }
  0x14   : > { %vm480_vm2 = vcmp.lt.s32.totalorder %v478_v15, 18 }
  0x15   : > { %v735_v22 = vsel %vm480_vm2, 1.0, %v836_v1 }
  0x16   : > { %762 = vmatpush3.bf16.msra.mxu0 %v805_v3 }
  0x17   : > { %763 = vmatprep.subr.bf16.mxu0 %v836_v1 }
  0x1a   : > { %764 = vmatpush3.bf16.msra.mxu0 %v806_v4 }
  0x1b   : > { %765 = vmatprep.subr.bf16.mxu0 %v836_v1 }
  0x1e   : > { %766 = vmatpush3.bf16.msra.mxu0 %v807_v5 }
  0x1f   : > { %767 = vmatprep.subr.bf16.mxu0 %v836_v1 }
  0x22   : > { %768 = vmatpush3.bf16.msra.mxu0 %v808_v6 }
  0x23   : > { %769 = vmatprep.subr.bf16.mxu0 %v836_v1 }
  0x26   : > { %770 = vmatpush3.bf16.msra.mxu0 %v809_v7 }
  0x27   : > { %771 = vmatprep.subr.bf16.mxu0 %v836_v1 }
  0x2a   : > { %772 = vmatpush3.bf16.msra.mxu0 %v810_v8 }
  0x2d   : > { %774 = vmatmul.mubr.bf16.vlgmr.msra.gmra.mxu0 %v811_v9 }
  0xed   : > { %v457_v17 = vpop.f32.mrf.mxu0 }
  0xee   : > { %v464_v18 = vadd.f32 %v724_v16, %v457_v17 }
  0xef   : > { %v775_v20 = vpop.f32.mrf.mxu0 }
  0xf0   : > { %v485_v23 = vmul.f32 %v734_v19, %v464_v18 }
  0xf1   : > { %v460_v21 = vpop.f32.mrf.mxu0 }
  0xf2   : > { %v465_v24 = vadd.f32 %v724_v16, %v460_v21  ;;  %v494_v28 = vmul.f32 %v485_v23, %v485_v23 }
  0xf3   : > { %v776_v25 = vpop.f32.mrf.mxu0 }
  0xf4   : > { %v486_v26 = vmul.f32 %v735_v22, %v465_v24  ;;  %v746_v27 = vpack.c.bf16 %v465_v24, %v464_v18 }
  0xf6   : > { %v487_v29 = vadd.f32 %v486_v26, %v485_v23  ;;  %v495_v30 = vmul.f32 %v486_v26, %v486_v26  ;;  %747 = vst [vmem:[%s318_s28] sm:$0xff] %v746_v27  }
  0xf8   : > { %v488_v31 = vrot.slane %v487_v29, 4  ;;  %v496_v32 = vadd.f32 %v495_v30, %v494_v28 }
  0xfa   : > { %v489_v33 = vadd.f32 %v488_v31, %v487_v29  ;;  %v497_v34 = vrot.slane %v496_v32, 4 }
  0xfc   : > { %v490_v35 = vrot.slane %v489_v33, 2  ;;  %v498_v36 = vadd.f32 %v497_v34, %v496_v32 }
  0xfe   : > { %v491_v37 = vadd.f32 %v490_v35, %v489_v33  ;;  %v499_v38 = vrot.slane %v498_v36, 2 }
 0x100   : > { %v492_v39 = vrot.slane %v491_v37, 1  ;;  %v500_v40 = vadd.f32 %v499_v38, %v498_v36 }
 0x102   : > { %v493_v42 = vadd.f32 %v492_v39, %v491_v37  ;;  %v501_v43 = vrot.slane %v500_v40, 1 }
 0x104   : > { %v502_v44 = vadd.f32 %v501_v43, %v500_v40  ;;  %v506_v45 = vmul.f32 %v736_v41, %v493_v42 }
 0x106   : > { %507 = vst [vmem:[%s326_s6] sm:$0xff] %v506_v45  ;;  %v508_v46 = vmul.f32 %v736_v41, %v502_v44 }
 0x108   : > { %509 = vst [vmem:[%s333_s9] sm:$0xff] %v508_v46 }
 0x109 PF: > { %s16_s20 = sadd.s32 1, %s834_s20   ;;  %s965_s18 = smov %s830_s19 }
 0x10a   : > { %p13_p6 = scmp.ge.s32.totalorder %s16_s20, 4   ;;  %s966_s19 = smov %s968_s21 }
 0x10c   :  { %15 = sbr.rel (!%p13_p6) target bundleno = 2 (0x2), region = 100 }

// kernel: multiscale_forward.36
= control target key start
LH: loop header
LB: loop body
LE: loop exit
PB: predicated region body
PF: predicated region fallthrough
CT: control target
= control target key end

     0   :  { %s74_s0 = inlined_call_operand.vmem [shape: bf16[8,128], index: 0, kind: input, shape index: {}]   ;;  %s75_s1 = inlined_call_operand.vmem [shape: f32[1,128], index: 1, kind: input, shape index: {}]   ;;  %s76_s2 = inlined_call_operand.vmem [shape: f32[1,128], index: 2, kind: input, shape index: {}]   ;;  %s77_s3 = inlined_call_operand.vmem [shape: f32[8,128], index: 3, kind: output, shape index: {}]  }
   0x1   :  { %v14_v0 = vld [vmem:[%s74_s0] sm:$0xf] }
   0x2   :  { %v40_v1 = vld [vmem:[%s75_s1] ss:$0 sm:$0xff]  ;;  %v15_v2 = vunpack.c.l.bf16 %v14_v0 }
   0x3   :  { %v41_v3 = vld [vmem:[%s76_s2] ss:$0 sm:$0xff] }
   0x4   :  { %v23_v4 = vmul.f32 %v40_v1, %v15_v2 }
   0x6   :  { %v31_v5 = vadd.f32 %v41_v3, %v23_v4 }
   0x8   :  { %vm32_vm0 = vcmp.ge.f32.partialorder %v31_v5, 0.0  ;;  %v33_v6 = vmul.f32 0.2, %v31_v5 }
   0xa   :  { %v34_v7 = vsel %vm32_vm0, %v31_v5, %v33_v6 }
   0xb   :  { %35 = vst [vmem:[%s77_s3] sm:$0xff] %v34_v7 }

// kernel: multiscale_forward.35
= control target key start
LH: loop header
LB: loop body
LE: loop exit
PB: predicated region body
PF: predicated region fallthrough
CT: control target
= control target key end

     0   :  { %v214_v25 = vlaneseq  ;;  %v317_v39 = vmov 0.0   ;;  %s411_s1 = inlined_call_operand.vmem [shape: bf16[256,128], index: 1, kind: input, shape index: {}]   ;;  %s412_s0 = inlined_call_operand.vmem [shape: bf16[8,256], index: 0, kind: input, shape index: {}]   ;;  %s413_s2 = inlined_call_operand.vmem [shape: f32[1,128], index: 2, kind: input, shape index: {}]   ;;  %s414_s3 = inlined_call_operand.vmem [shape: bf16[8,128], index: 3, kind: output, shape index: {0}]   ;;  %s415_s4 = inlined_call_operand.vmem [shape: f32[8,128], index: 4, kind: output, shape index: {1}]   ;;  %s416_s5 = inlined_call_operand.vmem [shape: f32[8,128], index: 5, kind: output, shape index: {2}]  }
   0x1   :  { %v299_v0 = vld [vmem:[%s411_s1 + $0x78] sm:$0xff]   ;;  %v301_v2 = vld [vmem:[%s411_s1 + $0x70] sm:$0xff]   ;;  %v303_v4 = vld [vmem:[%s411_s1 + $0x68] sm:$0xff]  }
   0x2   :  { %v300_v1 = vld [vmem:[%s411_s1 + $0x38] sm:$0xff]   ;;  %276 = vmatprep.subr.bf16.mxu0 %v299_v0  ;;  %v302_v3 = vld [vmem:[%s411_s1 + $0x30] sm:$0xff]   ;;  %v304_v5 = vld [vmem:[%s411_s1 + $0x28] sm:$0xff]   ;;  %v215_v30 = vshrl.u32 %v214_v25, 7 }
   0x3   :  { %277 = vmatpush3.bf16.msra.mxu0 %v300_v1  ;;  %v305_v6 = vld [vmem:[%s411_s1 + $0x60] sm:$0xff]   ;;  %v307_v8 = vld [vmem:[%s411_s1 + $0x58] sm:$0xff]   ;;  %v309_v10 = vld [vmem:[%s411_s1 + $0x50] sm:$0xff]  }
   0x4   :  { %278 = vmatprep.subr.bf16.mxu0 %v301_v2  ;;  %v306_v7 = vld [vmem:[%s411_s1 + $0x20] sm:$0xff]   ;;  %v308_v9 = vld [vmem:[%s411_s1 + $0x18] sm:$0xff]   ;;  %v310_v13 = vld [vmem:[%s411_s1 + $0x10] sm:$0xff]   ;;  %vm235_vm0 = vcmp.eq.s32.totalorder %v215_v30, 0 }
   0x5   :  { %v64_v11 = vld [vmem:[%s412_s0] sm:$0xff]  ;;  %v311_v14 = vld [vmem:[%s411_s1 + $0x48] sm:$0xff]   ;;  %v275_v40 = vsel %vm235_vm0, 1.0, %v317_v39 }
   0x6   :  { %v258_v12 = vcombine.high %v64_v11, %v64_v11  ;;  %v312_v15 = vld [vmem:[%s411_s1 + $0x8] sm:$0xff]   ;;  %v313_v16 = vld [vmem:[%s411_s1 + $0x40] sm:$0xff]   ;;  %v257_v18 = vcombine.low %v64_v11, %v64_v11 }
   0x7   :  { %279 = vmatpush3.bf16.msra.mxu0 %v302_v3  ;;  %v314_v17 = vld [vmem:[%s411_s1] sm:$0xff]  }
   0x8   :  { %280 = vmatprep.subr.bf16.mxu0 %v303_v4  ;;  %200 = vmatprep.mubr.bf16.mxu0 %v258_v12  ;;  %v256_v20 = vld [vmem:[%s413_s2] ss:$0 sm:$0xff] }
   0xb   :  { %281 = vmatpush3.bf16.msra.mxu0 %v304_v5 }
   0xc   :  { %282 = vmatprep.subr.bf16.mxu0 %v305_v6 }
   0xf   :  { %283 = vmatpush3.bf16.msra.mxu0 %v306_v7 }
  0x10   :  { %284 = vmatprep.subr.bf16.mxu0 %v307_v8 }
  0x13   :  { %285 = vmatpush3.bf16.msra.mxu0 %v308_v9 }
  0x14   :  { %286 = vmatprep.subr.bf16.mxu0 %v309_v10 }
  0x17   :  { %287 = vmatpush3.bf16.msra.mxu0 %v310_v13 }
  0x18   :  { %288 = vmatprep.subr.bf16.mxu0 %v311_v14 }
  0x1b   :  { %289 = vmatpush3.bf16.msra.mxu0 %v312_v15 }
  0x1c   :  { %290 = vmatprep.subr.bf16.mxu0 %v313_v16 }
  0x1f   :  { %291 = vmatpush3.bf16.msra.mxu0 %v314_v17 }
  0x22   :  { %201 = vmatmul.mubr.bf16.vlgmr.msra.gmra.mxu0 %v257_v18 }
  0xe2   :  { %v292_v19 = vpop.f32.mrf.mxu0 }
  0xe4   :  { %v293_v21 = vpop.f32.mrf.mxu0 }
  0xe5   :  { %v294_v22 = vadd.f32 %v293_v21, %v292_v19 }
  0xe6   :  { %v295_v23 = vpop.f32.mrf.mxu0 }
  0xe7   :  { %v208_v24 = vadd.f32 %v294_v22, %v256_v20 }
  0xe8   :  { %v296_v26 = vpop.f32.mrf.mxu0 }
  0xe9   :  { %v222_v27 = vrot.slane %v208_v24, 4  ;;  %v228_v28 = vmul.f32 %v208_v24, %v208_v24  ;;  %v242_v29 = vpack.c.bf16 %v208_v24, %v208_v24 }
  0xeb   :  { %v223_v31 = vadd.f32 %v222_v27, %v208_v24  ;;  %v229_v32 = vrot.slane %v228_v28, 4  ;;  %243 = vst [vmem:[%s414_s3] sm:$0xf] %v242_v29 }
  0xed   :  { %v224_v33 = vrot.slane %v223_v31, 2  ;;  %v230_v34 = vadd.f32 %v229_v32, %v228_v28 }
  0xef   :  { %v225_v35 = vadd.f32 %v224_v33, %v223_v31  ;;  %v231_v36 = vrot.slane %v230_v34, 2 }
  0xf1   :  { %v226_v37 = vrot.slane %v225_v35, 1  ;;  %v232_v38 = vadd.f32 %v231_v36, %v230_v34 }
  0xf3   :  { %v227_v41 = vadd.f32 %v226_v37, %v225_v35  ;;  %v233_v42 = vrot.slane %v232_v38, 1 }
  0xf5   :  { %v234_v43 = vadd.f32 %v233_v42, %v232_v38  ;;  %v238_v44 = vmul.f32 %v275_v40, %v227_v41 }
  0xf7   :  { %239 = vst [vmem:[%s415_s4] sm:$0xff] %v238_v44  ;;  %v240_v45 = vmul.f32 %v275_v40, %v234_v43 }
  0xf9   :  { %241 = vst [vmem:[%s416_s5] sm:$0xff] %v240_v45 }

// kernel: multiscale_forward.37
= control target key start
LH: loop header
LB: loop body
LE: loop exit
PB: predicated region body
PF: predicated region fallthrough
CT: control target
= control target key end

     0   :  { %s1199_s18 = smov 0   ;;  %s1201_s19 = smov 0   ;;  %s1347_s0 = inlined_call_operand.vmem [shape: bf16[32,512], index: 0, kind: input, shape index: {}]   ;;  %s1348_s1 = inlined_call_operand.vmem [shape: bf16[512,128], index: 1, kind: input, shape index: {}]   ;;  %s1349_s2 = inlined_call_operand.vmem [shape: f32[1,128], index: 2, kind: input, shape index: {}]   ;;  %s1350_s3 = inlined_call_operand.vmem [shape: bf16[32,128], index: 3, kind: output, shape index: {0}]   ;;  %s1351_s4 = inlined_call_operand.vmem [shape: f32[16,128], index: 4, kind: output, shape index: {1}]   ;;  %s1352_s5 = inlined_call_operand.vmem [shape: f32[16,128], index: 5, kind: output, shape index: {2}]  }
   0x1   :  { %s1203_s20 = smov 0  }
   0x2 LB: > { %s31_s21 = sadd.s32 1, %s1162_s19  ;;  %p976_p0 = scmp.ge.s32.totalorder %s1166_s20, 1  ;;  %s1166_s20 = sphi %s1203_s20, %s16_s20   ;;  %s1162_s19 = sphi %s1201_s19, %s1354_s19   ;;  %s1158_s18 = sphi %s1199_s18, %s1353_s18  }
   0x3   : > { %p33_p1 = scmp.ge.s32.totalorder %s31_s21, 2  ;;  %p243_p2 = scmp.lt.s32.totalorder %s1166_s20, 3 }
   0x5   : > { %s1356_s21 = smov (%p33_p1, %s31_s21), 0  ;;  %p244_p3 = pnand %p976_p0, %p243_p2 }
   0x6   : > { %s977_s8 = sshll.u32 (!%p244_p3), %s1158_s18, 1  ;;  %s984_s29 = sshll.u32 (!%p244_p3), %s1158_s18, 4 }
   0x7   : > { %247 = sbr.rel (%p244_p3) target bundleno = 273 (0x111), region = 32  ;;  %p302_p4 = scmp.lt.s32.totalorder (!%p244_p3), %s977_s8, 3 }
   0x8   : > { %p328_p5 = scmp.lt.s32.totalorder (!%p244_p3), %s1158_s18, 1 }
   0xc   : > { %v1106_v0 = vld [vmem:[%s1348_s1 + $0x78] sm:$0xff]   ;;  %v1110_v4 = vld [vmem:[%s1348_s1 + $0x70] sm:$0xff]   ;;  %v1114_v8 = vld [vmem:[%s1348_s1 + $0x68] sm:$0xff]   ;;  %s1358_s8 = smov (!%p302_p4, %s977_s8), 3  ;;  %v730_v36 = vlaneseq  ;;  %v733_v38 = vstv %s984_s29  ;;  %v1168_v57 = vmov 0.0   ;;  %s1360_s18 = smov (!%p328_p5, %s1158_s18), 1 }
   0xd   : > { %v1107_v1 = vld [vmem:[%s1348_s1 + $0xf8] sm:$0xff]   ;;  %1037 = vmatprep.subr.bf16.mxu0 %v1106_v0  ;;  %v1111_v5 = vld [vmem:[%s1348_s1 + $0xf0] sm:$0xff]   ;;  %v1115_v9 = vld [vmem:[%s1348_s1 + $0xe8] sm:$0xff]   ;;  %s1029_s11 = sshll.u32 %s1358_s8, 4  ;;  %s981_s7 = sshll.u32 %s1358_s8, 2 }
   0xe   : > { %v1108_v2 = vld [vmem:[%s1348_s1 + $0x38] sm:$0xff]   ;;  %1059 = vmatprep.subr.bf16.mxu1 %v1107_v1  ;;  %v1112_v6 = vld [vmem:[%s1348_s1 + $0x30] sm:$0xff]   ;;  %v1116_v10 = vld [vmem:[%s1348_s1 + $0x28] sm:$0xff]   ;;  %s309_s24 = scalar_lea.vmem %s1347_s0, %s1029_s11  ;;  %v731_v37 = vshrl.u32 %v730_v36, 7  ;;  %s326_s11 = scalar_lea.vmem %s1350_s3, %s981_s7 }
   0xf   : > { %v1109_v3 = vld [vmem:[%s1348_s1 + $0xb8] sm:$0xff]   ;;  %1038 = vmatpush3.bf16.msra.mxu0 %v1108_v2  ;;  %v1113_v7 = vld [vmem:[%s1348_s1 + $0xb0] sm:$0xff]   ;;  %v1117_v11 = vld [vmem:[%s1348_s1 + $0xa8] sm:$0xff]   ;;  %s982_s8 = sshll.u32 %s1360_s18, 3 }
  0x10   : > { %1060 = vmatpush3.bf16.msra.mxu1 %v1109_v3  ;;  %1039 = vmatprep.subr.bf16.mxu0 %v1110_v4  ;;  %v1118_v12 = vld [vmem:[%s1348_s1 + $0x60] sm:$0xff]   ;;  %v1122_v16 = vld [vmem:[%s1348_s1 + $0x58] sm:$0xff]   ;;  %v1126_v20 = vld [vmem:[%s1348_s1 + $0x50] sm:$0xff]   ;;  %v732_v40 = vadd.s32 8, %v731_v37  ;;  %v734_v43 = vadd.s32 %v733_v38, %v731_v37  ;;  %vm760_vm2 = vcmp.eq.s32.totalorder %v731_v37, 0  ;;  %s334_s14 = scalar_lea.vmem %s1351_s4, %s982_s8  ;;  %s341_s17 = scalar_lea.vmem %s1352_s5, %s982_s8 }
  0x11   : > { %1061 = vmatprep.subr.bf16.mxu1 %v1111_v5  ;;  %v1119_v13 = vld [vmem:[%s1348_s1 + $0xe0] sm:$0xff]   ;;  %v1123_v17 = vld [vmem:[%s1348_s1 + $0xd8] sm:$0xff]   ;;  %v1127_v21 = vld [vmem:[%s1348_s1 + $0xd0] sm:$0xff]  }
  0x12   : > { %v1120_v14 = vld [vmem:[%s1348_s1 + $0x20] sm:$0xff]   ;;  %v1124_v18 = vld [vmem:[%s1348_s1 + $0x18] sm:$0xff]   ;;  %v1128_v22 = vld [vmem:[%s1348_s1 + $0x10] sm:$0xff]   ;;  %v735_v48 = vadd.s32 %v733_v38, %v732_v40  ;;  %vm736_vm0 = vcmp.lt.s32.totalorder %v734_v43, 18 }
  0x13   : > { %1040 = vmatpush3.bf16.msra.mxu0 %v1112_v6  ;;  %v1121_v15 = vld [vmem:[%s1348_s1 + $0xa0] sm:$0xff]   ;;  %v1125_v19 = vld [vmem:[%s1348_s1 + $0x98] sm:$0xff]   ;;  %v1129_v23 = vld [vmem:[%s1348_s1 + $0x90] sm:$0xff]   ;;  %v1022_v58 = vsel %vm736_vm0, 1.0, %v1168_v57 }
  0x14   : > { %1062 = vmatpush3.bf16.msra.mxu1 %v1113_v7  ;;  %1041 = vmatprep.subr.bf16.mxu0 %v1114_v8  ;;  %v1130_v24 = vld [vmem:[%s1348_s1 + $0x48] sm:$0xff]   ;;  %v1134_v28 = vld [vmem:[%s1348_s1 + $0x40] sm:$0xff]   ;;  %vm737_vm1 = vcmp.lt.s32.totalorder %v735_v48, 18 }
  0x15   : > { %1063 = vmatprep.subr.bf16.mxu1 %v1115_v9  ;;  %v1131_v25 = vld [vmem:[%s1348_s1 + $0xc8] sm:$0xff]   ;;  %v1135_v29 = vld [vmem:[%s1348_s1 + $0xc0] sm:$0xff]   ;;  %v1023_v60 = vsel %vm737_vm1, 1.0, %v1168_v57 }
  0x16   : > { %v1132_v26 = vld [vmem:[%s1348_s1 + $0x8] sm:$0xff]   ;;  %v1136_v30 = vld [vmem:[%s1348_s1] sm:$0xff]  }
  0x17   : > { %1042 = vmatpush3.bf16.msra.mxu0 %v1116_v10  ;;  %v1133_v27 = vld [vmem:[%s1348_s1 + $0x88] sm:$0xff]   ;;  %v1137_v31 = vld [vmem:[%s1348_s1 + $0x80] sm:$0xff]  }
  0x18   : > { %1064 = vmatpush3.bf16.msra.mxu1 %v1117_v11  ;;  %1043 = vmatprep.subr.bf16.mxu0 %v1118_v12  ;;  %v1138_v32 = vld [vmem:[%s309_s24] ss:$16 sps:$4 sm:$0xff]   ;;  %v1140_v33 = vld [vmem:[%s309_s24 + $0x4] ss:$16 sps:$4 sm:$0xff]   ;;  %v1141_v34 = vld [vmem:[%s309_s24 + $0x8] ss:$16 sps:$4 sm:$0xff]  }
  0x19   : > { %1065 = vmatprep.subr.bf16.mxu1 %v1119_v13  ;;  %v1143_v35 = vld [vmem:[%s309_s24 + $0xc] ss:$16 sps:$4 sm:$0xff]   ;;  %671 = vmatprep.mubr.bf16.mxu0 %v1140_v33  ;;  %v985_v49 = vld [vmem:[%s1349_s2] ss:$0 sm:$0xff] }
  0x1a   : > { %712 = vmatprep.mubr.bf16.mxu1 %v1143_v35 }
  0x1b   : > { %1044 = vmatpush3.bf16.msra.mxu0 %v1120_v14  ;;  %v1024_v14 = vsel %vm760_vm2, 1.0, %v1168_v57 }
  0x1c   : > { %1066 = vmatpush3.bf16.msra.mxu1 %v1121_v15  ;;  %1045 = vmatprep.subr.bf16.mxu0 %v1122_v16 }
  0x1d   : > { %1067 = vmatprep.subr.bf16.mxu1 %v1123_v17 }
  0x1f   : > { %1046 = vmatpush3.bf16.msra.mxu0 %v1124_v18 }
  0x20   : > { %1068 = vmatpush3.bf16.msra.mxu1 %v1125_v19  ;;  %1047 = vmatprep.subr.bf16.mxu0 %v1126_v20 }
  0x21   : > { %1069 = vmatprep.subr.bf16.mxu1 %v1127_v21 }
  0x23   : > { %1048 = vmatpush3.bf16.msra.mxu0 %v1128_v22 }
  0x24   : > { %1070 = vmatpush3.bf16.msra.mxu1 %v1129_v23  ;;  %1049 = vmatprep.subr.bf16.mxu0 %v1130_v24 }
  0x25   : > { %1071 = vmatprep.subr.bf16.mxu1 %v1131_v25 }
  0x27   : > { %1050 = vmatpush3.bf16.msra.mxu0 %v1132_v26 }
  0x28   : > { %1072 = vmatpush3.bf16.msra.mxu1 %v1133_v27  ;;  %1051 = vmatprep.subr.bf16.mxu0 %v1134_v28 }
  0x29   : > { %1073 = vmatprep.subr.bf16.mxu1 %v1135_v29 }
  0x2b   : > { %1052 = vmatpush3.bf16.msra.mxu0 %v1136_v30 }
  0x2c   : > { %1074 = vmatpush3.bf16.msra.mxu1 %v1137_v31 }
  0x2e   : > { %672 = vmatmul.mubr.bf16.vlgmr.msra.gmra.mxu0 %v1138_v32 }
  0x2f   : > { %713 = vmatmul.mubr.bf16.vlgmr.msra.gmra.mxu1 %v1141_v34 }
  0xee   : > { %v1053_v39 = vpop.f32.mrf.mxu0 }
  0xef   : > { %v1075_v41 = vpop.f32.mrf.mxu1 }
  0xf0   : > { %v1054_v42 = vpop.f32.mrf.mxu0 }
  0xf1   : > { %v1055_v44 = vadd.f32 %v1054_v42, %v1053_v39  ;;  %v1076_v45 = vpop.f32.mrf.mxu1 }
  0xf2   : > { %v1077_v46 = vadd.f32 %v1076_v45, %v1075_v41  ;;  %v1056_v47 = vpop.f32.mrf.mxu0 }
  0xf3   : > { %v1078_v50 = vpop.f32.mrf.mxu1 }
  0xf4   : > { %v715_v51 = vadd.f32 %v1077_v46, %v1055_v44  ;;  %v1057_v52 = vpop.f32.mrf.mxu0 }
  0xf5   : > { %v1058_v53 = vadd.f32 %v1057_v52, %v1056_v47  ;;  %v1079_v54 = vpop.f32.mrf.mxu1 }
  0xf6   : > { %v721_v55 = vadd.f32 %v985_v49, %v715_v51  ;;  %v1080_v56 = vadd.f32 %v1079_v54, %v1078_v50 }
  0xf8   : > { %v718_v59 = vadd.f32 %v1080_v56, %v1058_v53  ;;  %v742_v61 = vmul.f32 %v1022_v58, %v721_v55 }
  0xfa   : > { %v722_v62 = vadd.f32 %v985_v49, %v718_v59  ;;  %v751_v1 = vmul.f32 %v742_v61, %v742_v61 }
  0xfc   : > { %v743_v63 = vmul.f32 %v1023_v60, %v722_v62  ;;  %v1035_v0 = vpack.c.bf16 %v722_v62, %v721_v55 }
  0xfe   : > { %v744_v2 = vadd.f32 %v743_v63, %v742_v61  ;;  %v752_v3 = vmul.f32 %v743_v63, %v743_v63  ;;  %1036 = vst [vmem:[%s326_s11] sm:$0xff] %v1035_v0  }
 0x100   : > { %v745_v4 = vrot.slane %v744_v2, 4  ;;  %v753_v5 = vadd.f32 %v752_v3, %v751_v1 }
 0x102   : > { %v746_v6 = vadd.f32 %v745_v4, %v744_v2  ;;  %v754_v7 = vrot.slane %v753_v5, 4 }
 0x104   : > { %v747_v8 = vrot.slane %v746_v6, 2  ;;  %v755_v9 = vadd.f32 %v754_v7, %v753_v5 }
 0x106   : > { %v748_v10 = vadd.f32 %v747_v8, %v746_v6  ;;  %v756_v11 = vrot.slane %v755_v9, 2 }
 0x108   : > { %v749_v12 = vrot.slane %v748_v10, 1  ;;  %v757_v13 = vadd.f32 %v756_v11, %v755_v9 }
 0x10a   : > { %v750_v15 = vadd.f32 %v749_v12, %v748_v10  ;;  %v758_v16 = vrot.slane %v757_v13, 1 }
 0x10c   : > { %v759_v17 = vadd.f32 %v758_v16, %v757_v13  ;;  %v763_v18 = vmul.f32 %v1024_v14, %v750_v15 }
 0x10e   : > { %764 = vst [vmem:[%s334_s14] sm:$0xff] %v763_v18  ;;  %v765_v19 = vmul.f32 %v1024_v14, %v759_v17 }
 0x110   : > { %766 = vst [vmem:[%s341_s17] sm:$0xff] %v765_v19 }
 0x111 PF: > { %s16_s20 = sadd.s32 1, %s1166_s20   ;;  %s1353_s18 = smov %s1162_s19 }
 0x112   : > { %p13_p6 = scmp.ge.s32.totalorder %s16_s20, 4   ;;  %s1354_s19 = smov %s1356_s21 }
 0x114   :  { %15 = sbr.rel (!%p13_p6) target bundleno = 2 (0x2), region = 100 }

// kernel: multiscale_forward.39
= control target key start
LH: loop header
LB: loop body
LE: loop exit
PB: predicated region body
PF: predicated region fallthrough
CT: control target
= control target key end

     0   :  { %s1421_s12 = smov 0   ;;  %s1423_s13 = smov 0   ;;  %s1666_s0 = inlined_call_operand.vmem [shape: bf16[32,1024], index: 0, kind: input, shape index: {}]   ;;  %s1667_s1 = inlined_call_operand.vmem [shape: bf16[1024,128], index: 1, kind: input, shape index: {}]   ;;  %s1668_s2 = inlined_call_operand.vmem [shape: f32[1,128], index: 2, kind: input, shape index: {}]   ;;  %s1669_s3 = inlined_call_operand.vmem [shape: f32[32,128], index: 3, kind: output, shape index: {}]  }
   0x1   :  { %s1425_s14 = smov 0  }
   0x2 LB: > { %s28_s15 = sadd.s32 1, %s1395_s13  ;;  %p1119_p0 = scmp.ge.s32.totalorder %s1399_s14, 1  ;;  %s1399_s14 = sphi %s1425_s14, %s13_s14   ;;  %s1395_s13 = sphi %s1423_s13, %s1671_s13   ;;  %s1391_s12 = sphi %s1421_s12, %s1670_s12  }
   0x3   : > { %p30_p1 = scmp.ge.s32.totalorder %s28_s15, 2  ;;  %p184_p2 = scmp.lt.s32.totalorder %s1399_s14, 3 }
   0x5   : > { %s1673_s15 = smov (%p30_p1, %s28_s15), 0  ;;  %p185_p3 = pnand %p1119_p0, %p184_p2 }
   0x6   : > { %s1120_s25 = sshll.u32 (!%p185_p3), %s1391_s12, 1 }
   0x7   : > { %188 = sbr.rel (%p185_p3) target bundleno = 286 (0x11e), region = 32  ;;  %p225_p4 = scmp.lt.s32.totalorder (!%p185_p3), %s1120_s25, 3 }
   0xc   : > { %v1313_v0 = vld [vmem:[%s1667_s1 + $0x78] sm:$0xff]   ;;  %v1317_v4 = vld [vmem:[%s1667_s1 + $0x70] sm:$0xff]   ;;  %v1321_v8 = vld [vmem:[%s1667_s1 + $0x68] sm:$0xff]   ;;  %s1675_s25 = smov (!%p225_p4, %s1120_s25), 3 }
   0xd   : > { %v1314_v1 = vld [vmem:[%s1667_s1 + $0xf8] sm:$0xff]   ;;  %1201 = vmatprep.subr.bf16.mxu0 %v1313_v0  ;;  %v1318_v5 = vld [vmem:[%s1667_s1 + $0xf0] sm:$0xff]   ;;  %v1322_v9 = vld [vmem:[%s1667_s1 + $0xe8] sm:$0xff]   ;;  %s1200_s24 = sshll.u32 %s1675_s25, 5 }
   0xe   : > { %v1315_v2 = vld [vmem:[%s1667_s1 + $0x38] sm:$0xff]   ;;  %1223 = vmatprep.subr.bf16.mxu1 %v1314_v1  ;;  %v1319_v6 = vld [vmem:[%s1667_s1 + $0x30] sm:$0xff]   ;;  %v1323_v10 = vld [vmem:[%s1667_s1 + $0x28] sm:$0xff]   ;;  %s1538_s12 = scalar_lea.vmem %s1666_s0, %s1200_s24 }
   0xf   : > { %v1316_v3 = vld [vmem:[%s1667_s1 + $0xb8] sm:$0xff]   ;;  %1202 = vmatpush3.bf16.msra.mxu0 %v1315_v2  ;;  %v1320_v7 = vld [vmem:[%s1667_s1 + $0xb0] sm:$0xff]   ;;  %v1324_v11 = vld [vmem:[%s1667_s1 + $0xa8] sm:$0xff]  }
  0x10   : > { %1224 = vmatpush3.bf16.msra.mxu1 %v1316_v3  ;;  %1203 = vmatprep.subr.bf16.mxu0 %v1317_v4  ;;  %v1325_v12 = vld [vmem:[%s1667_s1 + $0x60] sm:$0xff]   ;;  %v1329_v16 = vld [vmem:[%s1667_s1 + $0x58] sm:$0xff]   ;;  %v1333_v20 = vld [vmem:[%s1667_s1 + $0x50] sm:$0xff]  }
  0x11   : > { %1225 = vmatprep.subr.bf16.mxu1 %v1318_v5  ;;  %v1326_v13 = vld [vmem:[%s1667_s1 + $0xe0] sm:$0xff]   ;;  %v1330_v17 = vld [vmem:[%s1667_s1 + $0xd8] sm:$0xff]   ;;  %v1334_v21 = vld [vmem:[%s1667_s1 + $0xd0] sm:$0xff]  }
  0x12   : > { %v1327_v14 = vld [vmem:[%s1667_s1 + $0x20] sm:$0xff]   ;;  %v1331_v18 = vld [vmem:[%s1667_s1 + $0x18] sm:$0xff]   ;;  %v1335_v22 = vld [vmem:[%s1667_s1 + $0x10] sm:$0xff]  }
  0x13   : > { %1204 = vmatpush3.bf16.msra.mxu0 %v1319_v6  ;;  %v1328_v15 = vld [vmem:[%s1667_s1 + $0xa0] sm:$0xff]   ;;  %v1332_v19 = vld [vmem:[%s1667_s1 + $0x98] sm:$0xff]   ;;  %v1336_v23 = vld [vmem:[%s1667_s1 + $0x90] sm:$0xff]  }
  0x14   : > { %1226 = vmatpush3.bf16.msra.mxu1 %v1320_v7  ;;  %1205 = vmatprep.subr.bf16.mxu0 %v1321_v8  ;;  %v1337_v24 = vld [vmem:[%s1667_s1 + $0x48] sm:$0xff]   ;;  %v1341_v28 = vld [vmem:[%s1667_s1 + $0x40] sm:$0xff]   ;;  %v1345_v40 = vld [vmem:[%s1667_s1 + $0x178] sm:$0xff]  }
  0x15   : > { %1227 = vmatprep.subr.bf16.mxu1 %v1322_v9  ;;  %v1338_v25 = vld [vmem:[%s1667_s1 + $0xc8] sm:$0xff]   ;;  %v1342_v29 = vld [vmem:[%s1667_s1 + $0xc0] sm:$0xff]   ;;  %v1346_v41 = vld [vmem:[%s1667_s1 + $0x1f8] sm:$0xff]  }
  0x16   : > { %v1339_v26 = vld [vmem:[%s1667_s1 + $0x8] sm:$0xff]   ;;  %v1343_v30 = vld [vmem:[%s1667_s1] sm:$0xff]   ;;  %v1347_v42 = vld [vmem:[%s1667_s1 + $0x138] sm:$0xff]  }
  0x17   : > { %1206 = vmatpush3.bf16.msra.mxu0 %v1323_v10  ;;  %v1340_v27 = vld [vmem:[%s1667_s1 + $0x88] sm:$0xff]   ;;  %v1344_v31 = vld [vmem:[%s1667_s1 + $0x80] sm:$0xff]   ;;  %v1348_v43 = vld [vmem:[%s1667_s1 + $0x1b8] sm:$0xff]  }
  0x18   : > { %1228 = vmatpush3.bf16.msra.mxu1 %v1324_v11  ;;  %1207 = vmatprep.subr.bf16.mxu0 %v1325_v12  ;;  %v395_v32 = vld [vmem:[%s1538_s12] sm:$0xff]  ;;  %v396_v34 = vld [vmem:[%s1538_s12 + $0x8] sm:$0xff]  ;;  %v1349_v44 = vld [vmem:[%s1667_s1 + $0x170] sm:$0xff]  }
  0x19   : > { %1229 = vmatprep.subr.bf16.mxu1 %v1326_v13  ;;  %v399_v33 = vld [vmem:[%s1538_s12 + $0x20] sm:$0xff]  ;;  %v400_v37 = vld [vmem:[%s1538_s12 + $0x28] sm:$0xff]  ;;  %v1350_v45 = vld [vmem:[%s1667_s1 + $0x1f0] sm:$0xff]  }
  0x1a   : > { %v1126_v35 = vcombine.low %v395_v32, %v399_v33  ;;  %v1127_v36 = vcombine.high %v395_v32, %v399_v33  ;;  %v1128_v38 = vcombine.low %v396_v34, %v400_v37  ;;  %v1129_v39 = vcombine.high %v396_v34, %v400_v37  ;;  %v1351_v46 = vld [vmem:[%s1667_s1 + $0x130] sm:$0xff]   ;;  %v1353_v48 = vld [vmem:[%s1667_s1 + $0x168] sm:$0xff]   ;;  %v1357_v52 = vld [vmem:[%s1667_s1 + $0x160] sm:$0xff]  }
  0x1b   : > { %1208 = vmatpush3.bf16.msra.mxu0 %v1327_v14  ;;  %v1352_v47 = vld [vmem:[%s1667_s1 + $0x1b0] sm:$0xff]   ;;  %v1354_v49 = vld [vmem:[%s1667_s1 + $0x1e8] sm:$0xff]   ;;  %v1358_v53 = vld [vmem:[%s1667_s1 + $0x1e0] sm:$0xff]  }
  0x1c   : > { %1230 = vmatpush3.bf16.msra.mxu1 %v1328_v15  ;;  %1209 = vmatprep.subr.bf16.mxu0 %v1329_v16  ;;  %v1355_v50 = vld [vmem:[%s1667_s1 + $0x128] sm:$0xff]   ;;  %v1359_v54 = vld [vmem:[%s1667_s1 + $0x120] sm:$0xff]   ;;  %v1361_v56 = vld [vmem:[%s1667_s1 + $0x158] sm:$0xff]  }
  0x1d   : > { %1231 = vmatprep.subr.bf16.mxu1 %v1330_v17  ;;  %859 = vmatprep.mubr.bf16.mxu0 %v1127_v36  ;;  %v1356_v51 = vld [vmem:[%s1667_s1 + $0x1a8] sm:$0xff]   ;;  %v1360_v55 = vld [vmem:[%s1667_s1 + $0x1a0] sm:$0xff]   ;;  %v1362_v57 = vld [vmem:[%s1667_s1 + $0x1d8] sm:$0xff]  }
  0x1e   : > { %900 = vmatprep.mubr.bf16.mxu1 %v1129_v39  ;;  %v1363_v58 = vld [vmem:[%s1667_s1 + $0x118] sm:$0xff]   ;;  %v1365_v60 = vld [vmem:[%s1667_s1 + $0x150] sm:$0xff]   ;;  %v1369_v0 = vld [vmem:[%s1667_s1 + $0x148] sm:$0xff]  }
  0x1f   : > { %1210 = vmatpush3.bf16.msra.mxu0 %v1331_v18  ;;  %v1364_v59 = vld [vmem:[%s1667_s1 + $0x198] sm:$0xff]   ;;  %v1366_v61 = vld [vmem:[%s1667_s1 + $0x1d0] sm:$0xff]   ;;  %v1370_v1 = vld [vmem:[%s1667_s1 + $0x1c8] sm:$0xff]  }
  0x20   : > { %1232 = vmatpush3.bf16.msra.mxu1 %v1332_v19  ;;  %1211 = vmatprep.subr.bf16.mxu0 %v1333_v20  ;;  %v1367_v62 = vld [vmem:[%s1667_s1 + $0x110] sm:$0xff]   ;;  %v1371_v2 = vld [vmem:[%s1667_s1 + $0x108] sm:$0xff]   ;;  %v1373_v4 = vld [vmem:[%s1667_s1 + $0x140] sm:$0xff]  }
  0x21   : > { %1233 = vmatprep.subr.bf16.mxu1 %v1334_v21  ;;  %v1368_v63 = vld [vmem:[%s1667_s1 + $0x190] sm:$0xff]   ;;  %v1372_v3 = vld [vmem:[%s1667_s1 + $0x188] sm:$0xff]   ;;  %v1374_v5 = vld [vmem:[%s1667_s1 + $0x1c0] sm:$0xff]  }
  0x22   : > { %v1375_v6 = vld [vmem:[%s1667_s1 + $0x100] sm:$0xff]   ;;  %v397_v8 = vld [vmem:[%s1538_s12 + $0x10] sm:$0xff]  ;;  %v398_v12 = vld [vmem:[%s1538_s12 + $0x18] sm:$0xff] }
  0x23   : > { %1212 = vmatpush3.bf16.msra.mxu0 %v1335_v22  ;;  %v1376_v7 = vld [vmem:[%s1667_s1 + $0x180] sm:$0xff]   ;;  %v401_v9 = vld [vmem:[%s1538_s12 + $0x30] sm:$0xff]  ;;  %v402_v13 = vld [vmem:[%s1538_s12 + $0x38] sm:$0xff]  ;;  %s1124_s12 = sshll.u32 %s1675_s25, 3 }
  0x24   : > { %1234 = vmatpush3.bf16.msra.mxu1 %v1336_v23  ;;  %1213 = vmatprep.subr.bf16.mxu0 %v1337_v24  ;;  %v1130_v10 = vcombine.low %v397_v8, %v401_v9  ;;  %v1131_v11 = vcombine.high %v397_v8, %v401_v9  ;;  %v1132_v14 = vcombine.low %v398_v12, %v402_v13  ;;  %s249_s17 = scalar_lea.vmem %s1669_s3, %s1124_s12 }
  0x25   : > { %1235 = vmatprep.subr.bf16.mxu1 %v1338_v25  ;;  %v1133_v15 = vcombine.high %v398_v12, %v402_v13 }
  0x27   : > { %1214 = vmatpush3.bf16.msra.mxu0 %v1339_v26 }
  0x28   : > { %1236 = vmatpush3.bf16.msra.mxu1 %v1340_v27  ;;  %1215 = vmatprep.subr.bf16.mxu0 %v1341_v28 }
  0x29   : > { %1237 = vmatprep.subr.bf16.mxu1 %v1342_v29 }
  0x2b   : > { %1216 = vmatpush3.bf16.msra.mxu0 %v1343_v30 }
  0x2c   : > { %1238 = vmatpush3.bf16.msra.mxu1 %v1344_v31  ;;  %1245 = vmatprep.subr.bf16.mxu0 %v1345_v40 }
  0x2d   : > { %1267 = vmatprep.subr.bf16.mxu1 %v1346_v41 }
  0x2e   : > { %860 = vmatmul.mubr.bf16.vlgmr.msra.gmra.mxu0 %v1126_v35 }
  0x2f   : > { %901 = vmatmul.mubr.bf16.vlgmr.msra.gmra.mxu1 %v1128_v38  ;;  %1246 = vmatpush3.bf16.msra.mxu0 %v1347_v42  ;;  %v1125_v38 = vld [vmem:[%s1668_s2] ss:$0 sm:$0xff] }
  0x30   : > { %1268 = vmatpush3.bf16.msra.mxu1 %v1348_v43  ;;  %1247 = vmatprep.subr.bf16.mxu0 %v1349_v44 }
  0x31   : > { %1269 = vmatprep.subr.bf16.mxu1 %v1350_v45  ;;  %941 = vmatprep.mubr.bf16.mxu0 %v1131_v11 }
  0x32   : > { %982 = vmatprep.mubr.bf16.mxu1 %v1133_v15 }
  0x33   : > { %1248 = vmatpush3.bf16.msra.mxu0 %v1351_v46 }
  0x34   : > { %1270 = vmatpush3.bf16.msra.mxu1 %v1352_v47  ;;  %1249 = vmatprep.subr.bf16.mxu0 %v1353_v48 }
  0x35   : > { %1271 = vmatprep.subr.bf16.mxu1 %v1354_v49 }
  0x37   : > { %1250 = vmatpush3.bf16.msra.mxu0 %v1355_v50 }
  0x38   : > { %1272 = vmatpush3.bf16.msra.mxu1 %v1356_v51  ;;  %1251 = vmatprep.subr.bf16.mxu0 %v1357_v52 }
  0x39   : > { %1273 = vmatprep.subr.bf16.mxu1 %v1358_v53 }
  0x3b   : > { %1252 = vmatpush3.bf16.msra.mxu0 %v1359_v54 }
  0x3c   : > { %1274 = vmatpush3.bf16.msra.mxu1 %v1360_v55  ;;  %1253 = vmatprep.subr.bf16.mxu0 %v1361_v56 }
  0x3d   : > { %1275 = vmatprep.subr.bf16.mxu1 %v1362_v57 }
  0x3f   : > { %1254 = vmatpush3.bf16.msra.mxu0 %v1363_v58 }
  0x40   : > { %1276 = vmatpush3.bf16.msra.mxu1 %v1364_v59  ;;  %1255 = vmatprep.subr.bf16.mxu0 %v1365_v60 }
  0x41   : > { %1277 = vmatprep.subr.bf16.mxu1 %v1366_v61 }
  0x43   : > { %1256 = vmatpush3.bf16.msra.mxu0 %v1367_v62 }
  0x44   : > { %1278 = vmatpush3.bf16.msra.mxu1 %v1368_v63  ;;  %1257 = vmatprep.subr.bf16.mxu0 %v1369_v0 }
  0x45   : > { %1279 = vmatprep.subr.bf16.mxu1 %v1370_v1 }
  0x47   : > { %1258 = vmatpush3.bf16.msra.mxu0 %v1371_v2 }
  0x48   : > { %1280 = vmatpush3.bf16.msra.mxu1 %v1372_v3  ;;  %1259 = vmatprep.subr.bf16.mxu0 %v1373_v4 }
  0x49   : > { %1281 = vmatprep.subr.bf16.mxu1 %v1374_v5 }
  0x4b   : > { %1260 = vmatpush3.bf16.msra.mxu0 %v1375_v6 }
  0x4c   : > { %1282 = vmatpush3.bf16.msra.mxu1 %v1376_v7 }
  0x4e   : > { %942 = vmatmul.mubr.bf16.vlgmr.msra.gmra.mxu0 %v1130_v10 }
  0x4f   : > { %983 = vmatmul.mubr.bf16.vlgmr.msra.gmra.mxu1 %v1132_v14 }
  0xee   : > { %v1217_v16 = vpop.f32.mrf.mxu0 }
  0xef   : > { %v1239_v17 = vpop.f32.mrf.mxu1 }
  0xf0   : > { %v1218_v18 = vpop.f32.mrf.mxu0 }
  0xf1   : > { %v1240_v19 = vpop.f32.mrf.mxu1  ;;  %v1219_v23 = vadd.f32 %v1218_v18, %v1217_v16 }
  0xf2   : > { %v1220_v20 = vpop.f32.mrf.mxu0  ;;  %v1241_v24 = vadd.f32 %v1240_v19, %v1239_v17 }
  0xf3   : > { %v1242_v21 = vpop.f32.mrf.mxu1 }
  0xf4   : > { %v1221_v22 = vpop.f32.mrf.mxu0  ;;  %v903_v29 = vadd.f32 %v1241_v24, %v1219_v23 }
  0xf5   : > { %v1243_v25 = vpop.f32.mrf.mxu1  ;;  %v1222_v30 = vadd.f32 %v1221_v22, %v1220_v20 }
  0xf6   : > { %v1244_v31 = vadd.f32 %v1243_v25, %v1242_v21 }
  0xf8   : > { %v906_v40 = vadd.f32 %v1244_v31, %v1222_v30 }
 0x10e   : > { %v1261_v26 = vpop.f32.mrf.mxu0 }
 0x10f   : > { %v1283_v27 = vpop.f32.mrf.mxu1 }
 0x110   : > { %v1262_v28 = vpop.f32.mrf.mxu0 }
 0x111   : > { %v1263_v32 = vadd.f32 %v1262_v28, %v1261_v26  ;;  %v1284_v33 = vpop.f32.mrf.mxu1 }
 0x112   : > { %v1264_v34 = vpop.f32.mrf.mxu0  ;;  %v1285_v36 = vadd.f32 %v1284_v33, %v1283_v27 }
 0x113   : > { %v944_v35 = vadd.f32 %v1263_v32, %v903_v29  ;;  %v1286_v37 = vpop.f32.mrf.mxu1 }
 0x114   : > { %v1265_v39 = vpop.f32.mrf.mxu0 }
 0x115   : > { %v985_v41 = vadd.f32 %v1285_v36, %v944_v35  ;;  %v1266_v42 = vadd.f32 %v1265_v39, %v1264_v34  ;;  %v1287_v43 = vpop.f32.mrf.mxu1 }
 0x116   : > { %v1288_v46 = vadd.f32 %v1287_v43, %v1286_v37 }
 0x117   : > { %v991_v44 = vadd.f32 %v1125_v38, %v985_v41  ;;  %v947_v45 = vadd.f32 %v1266_v42, %v906_v40 }
 0x119   : > { %1000 = vst [vmem:[%s249_s17] sm:$0xff] %v991_v44  ;;  %v988_v47 = vadd.f32 %v1288_v46, %v947_v45 }
 0x11b   : > { %v992_v48 = vadd.f32 %v1125_v38, %v988_v47 }
 0x11d   : > { %1001 = vst [vmem:[%s249_s17 + $0x8] sm:$0xff] %v992_v48 }
 0x11e PF: > { %s13_s14 = sadd.s32 1, %s1399_s14   ;;  %s1670_s12 = smov %s1395_s13 }
 0x11f   : > { %p10_p5 = scmp.ge.s32.totalorder %s13_s14, 4   ;;  %s1671_s13 = smov %s1673_s15 }
 0x121   :  { %12 = sbr.rel (!%p10_p5) target bundleno = 2 (0x2), region = 76 }

// kernel: multiscale_forward.40
= control target key start
LH: loop header
LB: loop body
LE: loop exit
PB: predicated region body
PF: predicated region fallthrough
CT: control target
= control target key end

     0   :  { %s630_s12 = smov 0   ;;  %s632_s13 = smov 0   ;;  %s694_s0 = inlined_call_operand.vmem [shape: bf16[32,128], index: 0, kind: input, shape index: {}]   ;;  %s695_s1 = inlined_call_operand.vmem [shape: bf16[128,128], index: 1, kind: input, shape index: {}]   ;;  %s696_s2 = inlined_call_operand.vmem [shape: f32[1,128], index: 2, kind: input, shape index: {}]   ;;  %s697_s3 = inlined_call_operand.vmem [shape: f32[32,128], index: 3, kind: output, shape index: {}]  }
   0x1   :  { %s634_s14 = smov 0  }
   0x2 LB: > { %s28_s15 = sadd.s32 1, %s602_s13  ;;  %p503_p0 = scmp.ge.s32.totalorder %s606_s14, 1  ;;  %s606_s14 = sphi %s634_s14, %s13_s14   ;;  %s602_s13 = sphi %s632_s13, %s699_s13   ;;  %s598_s12 = sphi %s630_s12, %s698_s12  }
   0x3   : > { %p30_p1 = scmp.ge.s32.totalorder %s28_s15, 2  ;;  %p181_p2 = scmp.lt.s32.totalorder %s606_s14, 3 }
   0x5   : > { %s701_s15 = smov (%p30_p1, %s28_s15), 0  ;;  %p182_p3 = pnand %p503_p0, %p181_p2 }
   0x6   : > { %s504_s20 = sshll.u32 (!%p182_p3), %s598_s12, 1 }
   0x7   : > { %185 = sbr.rel (%p182_p3) target bundleno = 248 (0xf8), region = 32  ;;  %p219_p4 = scmp.lt.s32.totalorder (!%p182_p3), %s504_s20, 3 }
   0xc   : > { %v575_v0 = vld [vmem:[%s695_s1 + $0x38] sm:$0xff]   ;;  %v608_v1 = vmov 0.0   ;;  %v576_v2 = vld [vmem:[%s695_s1 + $0x30] sm:$0xff]   ;;  %vm609_vm0 = vmmov 0   ;;  %s703_s20 = smov (!%p219_p4, %s504_s20), 3  ;;  %v577_v3 = vld [vmem:[%s695_s1 + $0x28] sm:$0xff]  }
   0xd   : > { %529 = vmatprep.subr.bf16.mxu0 %v608_v1  ;;  %545 = vmatprep.mubr.msk.bf16.mxu0 %vm609_vm0, %v608_v1  ;;  %s505_s23 = sshll.u32 %s703_s20, 2  ;;  %v578_v4 = vld [vmem:[%s695_s1 + $0x20] sm:$0xff]   ;;  %v579_v5 = vld [vmem:[%s695_s1 + $0x18] sm:$0xff]   ;;  %v580_v6 = vld [vmem:[%s695_s1 + $0x10] sm:$0xff]   ;;  %s507_s12 = sshll.u32 %s703_s20, 3 }
   0xe   : > { %530 = vmatpush3.bf16.msra.mxu0 %v575_v0  ;;  %s225_s26 = scalar_lea.vmem %s694_s0, %s505_s23  ;;  %v581_v7 = vld [vmem:[%s695_s1 + $0x8] sm:$0xff]   ;;  %v582_v8 = vld [vmem:[%s695_s1] sm:$0xff]   ;;  %s241_s18 = scalar_lea.vmem %s697_s3, %s507_s12 }
   0xf   : > { %531 = vmatprep.subr.bf16.mxu0 %v608_v1  ;;  %v583_v9 = vld [vmem:[%s225_s26] sm:$0xff]  }
  0x10   : > { %v508_v10 = vld [vmem:[%s696_s2] ss:$0 sm:$0xff] }
  0x12   : > { %532 = vmatpush3.bf16.msra.mxu0 %v576_v2 }
  0x13   : > { %533 = vmatprep.subr.bf16.mxu0 %v608_v1 }
  0x16   : > { %534 = vmatpush3.bf16.msra.mxu0 %v577_v3 }
  0x17   : > { %535 = vmatprep.subr.bf16.mxu0 %v608_v1 }
  0x1a   : > { %536 = vmatpush3.bf16.msra.mxu0 %v578_v4 }
  0x1b   : > { %537 = vmatprep.subr.bf16.mxu0 %v608_v1 }
  0x1e   : > { %538 = vmatpush3.bf16.msra.mxu0 %v579_v5 }
  0x1f   : > { %539 = vmatprep.subr.bf16.mxu0 %v608_v1 }
  0x22   : > { %540 = vmatpush3.bf16.msra.mxu0 %v580_v6 }
  0x23   : > { %541 = vmatprep.subr.bf16.mxu0 %v608_v1 }
  0x26   : > { %542 = vmatpush3.bf16.msra.mxu0 %v581_v7 }
  0x27   : > { %543 = vmatprep.subr.bf16.mxu0 %v608_v1 }
  0x2a   : > { %544 = vmatpush3.bf16.msra.mxu0 %v582_v8 }
  0x2d   : > { %546 = vmatmul.mubr.bf16.vlgmr.msra.gmra.mxu0 %v583_v9 }
  0xed   : > { %v365_v11 = vpop.f32.mrf.mxu0 }
  0xee   : > { %v372_v12 = vadd.f32 %v508_v10, %v365_v11 }
  0xef   : > { %v547_v13 = vpop.f32.mrf.mxu0 }
  0xf0   : > { %vm381_vm1 = vcmp.ge.f32.partialorder %v372_v12, 0.0  ;;  %v383_v14 = vmul.f32 0.2, %v372_v12 }
  0xf1   : > { %v368_v15 = vpop.f32.mrf.mxu0 }
  0xf2   : > { %v385_v16 = vsel %vm381_vm1, %v372_v12, %v383_v14  ;;  %v373_v17 = vadd.f32 %v508_v10, %v368_v15 }
  0xf3   : > { %387 = vst [vmem:[%s241_s18] sm:$0xff] %v385_v16  ;;  %v548_v18 = vpop.f32.mrf.mxu0 }
  0xf4   : > { %vm382_vm2 = vcmp.ge.f32.partialorder %v373_v17, 0.0  ;;  %v384_v19 = vmul.f32 0.2, %v373_v17 }
  0xf6   : > { %v386_v20 = vsel %vm382_vm2, %v373_v17, %v384_v19 }
  0xf7   : > { %388 = vst [vmem:[%s241_s18 + $0x8] sm:$0xff] %v386_v20 }
  0xf8 PF: > { %s13_s14 = sadd.s32 1, %s606_s14   ;;  %s698_s12 = smov %s602_s13 }
  0xf9   : > { %p10_p5 = scmp.ge.s32.totalorder %s13_s14, 4   ;;  %s699_s13 = smov %s701_s15 }
  0xfb   :  { %12 = sbr.rel (!%p10_p5) target bundleno = 2 (0x2), region = 76 }

// kernel: multiscale_forward.41
= control target key start
LH: loop header
LB: loop body
LE: loop exit
PB: predicated region body
PF: predicated region fallthrough
CT: control target
= control target key end

     0   :  { %v234_v0 = vmov 0.0   ;;  %vm235_vm0 = vmmov 0   ;;  %v143_v13 = vlaneseq  ;;  %s305_s1 = inlined_call_operand.vmem [shape: bf16[128,128], index: 1, kind: input, shape index: {}]   ;;  %s306_s0 = inlined_call_operand.vmem [shape: bf16[8,128], index: 0, kind: input, shape index: {}]   ;;  %s307_s2 = inlined_call_operand.vmem [shape: f32[1,128], index: 2, kind: input, shape index: {}]   ;;  %s308_s3 = inlined_call_operand.vmem [shape: bf16[8,128], index: 3, kind: output, shape index: {0}]   ;;  %s309_s4 = inlined_call_operand.vmem [shape: f32[8,128], index: 4, kind: output, shape index: {1}]   ;;  %s310_s5 = inlined_call_operand.vmem [shape: f32[8,128], index: 5, kind: output, shape index: {2}]  }
   0x1   :  { %204 = vmatprep.subr.bf16.mxu0 %v234_v0  ;;  %v226_v1 = vld [vmem:[%s305_s1 + $0x38] sm:$0xff]   ;;  %220 = vmatprep.mubr.msk.bf16.mxu0 %vm235_vm0, %v234_v0  ;;  %v227_v2 = vld [vmem:[%s305_s1 + $0x30] sm:$0xff]   ;;  %v228_v3 = vld [vmem:[%s305_s1 + $0x28] sm:$0xff]  }
   0x2   :  { %205 = vmatpush3.bf16.msra.mxu0 %v226_v1  ;;  %v229_v4 = vld [vmem:[%s305_s1 + $0x20] sm:$0xff]   ;;  %v230_v5 = vld [vmem:[%s305_s1 + $0x18] sm:$0xff]   ;;  %v231_v6 = vld [vmem:[%s305_s1 + $0x10] sm:$0xff]   ;;  %v144_v19 = vshrl.u32 %v143_v13, 7 }
   0x3   :  { %206 = vmatprep.subr.bf16.mxu0 %v234_v0  ;;  %v232_v7 = vld [vmem:[%s305_s1 + $0x8] sm:$0xff]   ;;  %v233_v8 = vld [vmem:[%s305_s1] sm:$0xff]  }
   0x4   :  { %v48_v9 = vld [vmem:[%s306_s0] sm:$0xf]  ;;  %vm164_vm1 = vcmp.eq.s32.totalorder %v144_v19, 0 }
   0x5   :  { %v185_v10 = vld [vmem:[%s307_s2] ss:$0 sm:$0xff]  ;;  %v194_v29 = vsel %vm164_vm1, 1.0, %v234_v0 }
   0x6   :  { %207 = vmatpush3.bf16.msra.mxu0 %v227_v2 }
   0x7   :  { %208 = vmatprep.subr.bf16.mxu0 %v234_v0 }
   0xa   :  { %209 = vmatpush3.bf16.msra.mxu0 %v228_v3 }
   0xb   :  { %210 = vmatprep.subr.bf16.mxu0 %v234_v0 }
   0xe   :  { %211 = vmatpush3.bf16.msra.mxu0 %v229_v4 }
   0xf   :  { %212 = vmatprep.subr.bf16.mxu0 %v234_v0 }
  0x12   :  { %213 = vmatpush3.bf16.msra.mxu0 %v230_v5 }
  0x13   :  { %214 = vmatprep.subr.bf16.mxu0 %v234_v0 }
  0x16   :  { %215 = vmatpush3.bf16.msra.mxu0 %v231_v6 }
  0x17   :  { %216 = vmatprep.subr.bf16.mxu0 %v234_v0 }
  0x1a   :  { %217 = vmatpush3.bf16.msra.mxu0 %v232_v7 }
  0x1b   :  { %218 = vmatprep.subr.bf16.mxu0 %v234_v0 }
  0x1e   :  { %219 = vmatpush3.bf16.msra.mxu0 %v233_v8 }
  0x21   :  { %221 = vmatmul.mubr.bf16.vlgmr.msra.gmra.mxu0 %v48_v9 }
  0xe1   :  { %v131_v11 = vpop.f32.mrf.mxu0 }
  0xe2   :  { %v137_v12 = vadd.f32 %v185_v10, %v131_v11 }
  0xe3   :  { %v222_v14 = vpop.f32.mrf.mxu0 }
  0xe4   :  { %v151_v15 = vrot.slane %v137_v12, 4  ;;  %v157_v16 = vmul.f32 %v137_v12, %v137_v12  ;;  %v171_v17 = vpack.c.bf16 %v137_v12, %v137_v12 }
  0xe5   :  { %v134_v18 = vpop.f32.mrf.mxu0 }
  0xe6   :  { %v152_v20 = vadd.f32 %v151_v15, %v137_v12  ;;  %v158_v21 = vrot.slane %v157_v16, 4  ;;  %172 = vst [vmem:[%s308_s3] sm:$0xf] %v171_v17 }
  0xe7   :  { %v223_v22 = vpop.f32.mrf.mxu0 }
  0xe8   :  { %v153_v23 = vrot.slane %v152_v20, 2  ;;  %v159_v24 = vadd.f32 %v158_v21, %v157_v16 }
  0xea   :  { %v154_v25 = vadd.f32 %v153_v23, %v152_v20  ;;  %v160_v26 = vrot.slane %v159_v24, 2 }
  0xec   :  { %v155_v27 = vrot.slane %v154_v25, 1  ;;  %v161_v28 = vadd.f32 %v160_v26, %v159_v24 }
  0xee   :  { %v156_v30 = vadd.f32 %v155_v27, %v154_v25  ;;  %v162_v31 = vrot.slane %v161_v28, 1 }
  0xf0   :  { %v163_v32 = vadd.f32 %v162_v31, %v161_v28  ;;  %v167_v33 = vmul.f32 %v194_v29, %v156_v30 }
  0xf2   :  { %168 = vst [vmem:[%s309_s4] sm:$0xff] %v167_v33  ;;  %v169_v34 = vmul.f32 %v194_v29, %v163_v32 }
  0xf4   :  { %170 = vst [vmem:[%s310_s5] sm:$0xff] %v169_v34 }

</bundles_post_ra>
